<compile_context>
chip_gen: v6e
topology: v6e:2x2x1
jax: 0.10.0
libtpu: 0.0.40
codegen_flags: <defaults>
</compile_context>

<pallas_src>
import jax
import jax.numpy as jnp
from jax.experimental import pallas as pl
from jax.experimental.pallas import tpu as pltpu

NEG_SLOPE = 0.01          # nn.LeakyReLU() default
BN_EPS = 1e-5             # nn.BatchNorm2d default
# MXU-operand dtype: bf16 uses the native full-rate MXU path on v5e/v6e/v7x with f32
# accumulation; elementwise (BN affine, LeakyReLU, stats) math stays in f32 everywhere.
# Flip to jnp.float32 for bit-level fidelity (then the test passes at atol=rtol=1e-5).
COMPUTE_DTYPE = jnp.bfloat16


def _vmem_limit(request_bytes):
    """Explicit VMEM limit clamped to the physical per-core capacity (64 MiB on v7x)."""
    try:
        cap = pltpu.get_tpu_info().vmem_capacity_bytes
    except Exception:          # conservative fallback if the query is unavailable
        cap = 64 << 20
    return int(min(max(request_bytes + (8 << 20), 32 << 20), cap - (4 << 20)))


def _pad_hw1(h):
    """Zero-pad an (H, W, C) value by 1 pixel on each spatial edge.  Built as values (no
    scratch ref, no per-step halo re-zeroing); concats are on non-minor axes only."""
    H, W, C = h.shape
    zrow = jnp.zeros((1, W, C), h.dtype)
    h = jnp.concatenate([zrow, h, zrow], axis=0)          # (H+2, W,   C)
    zcol = jnp.zeros((H + 2, 1, C), h.dtype)
    return jnp.concatenate([zcol, h, zcol], axis=1)       # (H+2, W+2, C)


def _im2col_3x3(h, extra=()):
    """Pack the 9 shifted 3x3 windows of h:(H, W, C) (plus optional extra channel blocks,
    e.g. the 1x1-residual input) along the channel axis -> (H*W, 9*C + extra_C).
    One MXU dot then performs the whole conv: 9x fewer MXU passes than per-tap dots and
    only K = real channels is contracted (no zero-lane padding)."""
    H, W, C = h.shape
    p = _pad_hw1(h)
    taps = [p[kh:kh + H, kw:kw + W, :] for kh in range(3) for kw in range(3)]
    taps.extend(extra)
    cat = jnp.concatenate(taps, axis=-1)
    return cat.reshape(H * W, cat.shape[-1])


# --------------------------------- kernels ---------------------------------------------

def _stage1_kernel(x_ref, s1_ref, t1_ref, w1_ref, y_ref, stats_ref):
    """bn1 (precomputed affine) -> LeakyReLU -> conv1 (3x3, no bias) for one batch element,
    plus per-image per-channel sum / sum-of-squares of the conv output (bn2 partials)."""
    _, H, W, Ci = x_ref.shape
    Co = y_ref.shape[3]
    h = x_ref[0].reshape(H * W, Ci) * s1_ref[...] + t1_ref[...]     # f32 BN affine
    h = jnp.where(h > 0, h, NEG_SLOPE * h)                          # f32 LeakyReLU
    cols = _im2col_3x3(h.reshape(H, W, Ci))                         # (H*W, 9*Ci) f32
    acc = jnp.dot(cols.astype(COMPUTE_DTYPE), w1_ref[...],
                  preferred_element_type=jnp.float32)               # (H*W, Co) f32
    y_ref[0] = acc.reshape(H, W, Co).astype(y_ref.dtype)
    # bn2 partial statistics while the data is still in VMEM (saves an HBM pass over y1).
    s = jnp.sum(acc, axis=0, keepdims=True)
    ss = jnp.sum(acc * acc, axis=0, keepdims=True)
    stats_ref[0] = jnp.concatenate([s, ss], axis=0)                 # (2, Co)


def _stage2_kernel(y_ref, x_ref, s2_ref, t2_ref, w_ref, b_ref, o_ref):
    """bn2 (precomputed affine) -> LeakyReLU -> conv2 (3x3) fused with the conv3 (1x1)
    residual: a single im2col dot with K = 9*Cout + Cin; bias2 + bias3 folded into one add."""
    _, H, W, Co = y_ref.shape
    Ci = x_ref.shape[3]
    h = y_ref[0].reshape(H * W, Co).astype(jnp.float32) * s2_ref[...] + t2_ref[...]
    h = jnp.where(h > 0, h, NEG_SLOPE * h)
    cols = _im2col_3x3(h.reshape(H, W, Co), extra=(x_ref[0],))      # (H*W, 9*Co + Ci) f32
    acc = jnp.dot(cols.astype(COMPUTE_DTYPE), w_ref[...],
                  preferred_element_type=jnp.float32) + b_ref[...]
    o_ref[0] = acc.reshape(H, W, Co).astype(o_ref.dtype)


# --------------------------------- wrapper ---------------------------------------------

def _resblock_pallas(x_nchw, params):
    """x_nchw: (N, Cin, H, W) float32 (PyTorch convention). Returns (N, Cout, H, W)."""
    x_nchw = x_nchw.astype(jnp.float32)
    N, Cin, H, W = x_nchw.shape
    Cout = params["w1"].shape[0]
    cdt = COMPUTE_DTYPE
    csz = jnp.dtype(cdt).itemsize

    # ---- bn1 batch statistics (training mode, biased variance) as cheap XLA reductions ---
    mean1 = jnp.mean(x_nchw, axis=(0, 2, 3))
    var1 = jnp.var(x_nchw, axis=(0, 2, 3))
    scale1 = params["bn1_gamma"] * jax.lax.rsqrt(var1 + BN_EPS)
    s1 = scale1.reshape(1, Cin)
    t1 = (params["bn1_beta"] - mean1 * scale1).reshape(1, Cin)

    # NCHW -> NHWC with REAL channels only (im2col packs the taps into the contraction dim,
    # so no 128-lane channel padding and no 16x-inflated intermediates).
    x_nhwc = jnp.transpose(x_nchw, (0, 2, 3, 1))

    # Conv weights packed for the single im2col dot: K index = (kh*3 + kw)*C + c.
    w1p = jnp.transpose(params["w1"], (2, 3, 1, 0)).reshape(9 * Cin, Cout).astype(cdt)
    w2p = jnp.transpose(params["w2"], (2, 3, 1, 0)).reshape(9 * Cout, Cout)
    w3p = params["w3"][:, :, 0, 0].T                                  # (Cin, Cout)
    w23 = jnp.concatenate([w2p, w3p], axis=0).astype(cdt)             # (9*Cout + Cin, Cout)
    bias = (params["conv2_bias"] + params["conv3_bias"]).reshape(1, Cout)

    nmap = lambda n: (n, 0, 0, 0)
    cmap = lambda n: (0, 0)
    smap = lambda n: (n, 0, 0)

    # ---- stage 1: bn1 + LeakyReLU + conv1 (+ bn2 partial stats), gridded over the batch --
    io1 = 2 * (H * W * (Cin * 4 + Cout * csz) + (2 + Cout) * 4 * 2) + 9 * Cin * Cout * csz
    tmp1 = H * W * (9 * Cin * (4 + csz) + Cout * 4) + (H + 2) * (W + 2) * Cin * 4
    y1, stats = pl.pallas_call(
        _stage1_kernel,
        grid=(N,),
        in_specs=[
            pl.BlockSpec((1, H, W, Cin), nmap),
            pl.BlockSpec((1, Cin), cmap),
            pl.BlockSpec((1, Cin), cmap),
            pl.BlockSpec((9 * Cin, Cout), cmap),
        ],
        out_specs=[
            pl.BlockSpec((1, H, W, Cout), nmap),
            pl.BlockSpec((1, 2, Cout), smap),
        ],
        out_shape=[
            jax.ShapeDtypeStruct((N, H, W, Cout), cdt),       # bf16 intermediate (1/2 HBM)
            jax.ShapeDtypeStruct((N, 2, Cout), jnp.float32),  # bn2 partial sum / sumsq
        ],
        compiler_params=pltpu.CompilerParams(
            dimension_semantics=("parallel",),
            vmem_limit_bytes=_vmem_limit(io1 + tmp1)),
    )(x_nhwc, s1, t1, w1p)

    # ---- finish bn2 statistics from the in-kernel partials (no extra pass over y1) -------
    cnt = N * H * W
    mean2 = jnp.sum(stats[:, 0, :], axis=0) / cnt
    var2 = jnp.sum(stats[:, 1, :], axis=0) / cnt - mean2 * mean2      # biased, like PyTorch
    scale2 = params["bn2_gamma"] * jax.lax.rsqrt(var2 + BN_EPS)
    s2 = scale2.reshape(1, Cout)
    t2 = (params["bn2_beta"] - mean2 * scale2).reshape(1, Cout)

    # ---- stage 2: bn2 + LeakyReLU + (conv2 fused with 1x1 residual), gridded over batch --
    Kt = 9 * Cout + Cin
    io2 = 2 * (H * W * (Cout * csz + Cin * 4 + Cout * 4) + 3 * Cout * 4) + Kt * Cout * csz
    tmp2 = H * W * (Kt * (4 + csz) + Cout * 4) + (H + 2) * (W + 2) * Cout * 4
    out_nhwc = pl.pallas_call(
        _stage2_kernel,
        grid=(N,),
        in_specs=[
            pl.BlockSpec((1, H, W, Cout), nmap),
            pl.BlockSpec((1, H, W, Cin), nmap),
            pl.BlockSpec((1, Cout), cmap),
            pl.BlockSpec((1, Cout), cmap),
            pl.BlockSpec((Kt, Cout), cmap),
            pl.BlockSpec((1, Cout), cmap),
        ],
        out_specs=pl.BlockSpec((1, H, W, Cout), nmap),
        out_shape=jax.ShapeDtypeStruct((N, H, W, Cout), jnp.float32),
        compiler_params=pltpu.CompilerParams(
            dimension_semantics=("parallel",),
            vmem_limit_bytes=_vmem_limit(io2 + tmp2)),
    )(y1, x_nhwc, s2, t2, w23, bias)

    return jnp.transpose(out_nhwc, (0, 3, 1, 2))                      # -> NCHW


resblock_pallas = jax.jit(_resblock_pallas)


# ------------------------- glue / reference (plain JAX) --------------------------------

def _spectral_normalize(w, key, n_iter=1, eps=1e-12):
    """PyTorch-style spectral_norm: divide by top singular value (1 power iteration).
    (Test-weight construction only; the persistent `u` buffer is not tracked.)"""
    w_mat = w.reshape(w.shape[0], -1)
    u = jax.random.normal(key, (w.shape[0],), dtype=w.dtype)
    u = u / (jnp.linalg.norm(u) + eps)
    v = None
    for _ in range(n_iter):
        v = w_mat.T @ u
        v = v / (jnp.linalg.norm(v) + eps)
        u = w_mat @ v
        u = u / (jnp.linalg.norm(u) + eps)
    sigma = u @ (w_mat @ v)
    return w / sigma


def resblock_reference(x, p):
    hp = jax.lax.Precision.HIGHEST

    def bn(h, g, b):
        mean = h.mean(axis=(0, 2, 3), keepdims=True)
        var = h.var(axis=(0, 2, 3), keepdims=True)          # biased, like PyTorch BN
        return g.reshape(1, -1, 1, 1) * (h - mean) / jnp.sqrt(var + BN_EPS) \
            + b.reshape(1, -1, 1, 1)

    def lrelu(h):
        return jnp.where(h > 0, h, NEG_SLOPE * h)

    def conv(h, w, b=None, pad=1):
        y = jax.lax.conv_general_dilated(h, w, (1, 1), [(pad, pad), (pad, pad)],
                                         dimension_numbers=("NCHW", "OIHW", "NCHW"),
                                         precision=hp)
        if b is not None:
            y = y + b.reshape(1, -1, 1, 1)
        return y

    h = conv(lrelu(bn(x, p["bn1_gamma"], p["bn1_beta"])), p["w1"])
    h = conv(lrelu(bn(h, p["bn2_gamma"], p["bn2_beta"])), p["w2"], p["conv2_bias"])
    return h + conv(x, p["w3"], p["conv3_bias"], pad=0)


if __name__ == "__main__":
    N, Cin, Cout, H, W = 2, 4, 8, 16, 16
    ks = jax.random.split(jax.random.PRNGKey(0), 13)

    params = {
        "w1": _spectral_normalize(0.2 * jax.random.normal(ks[0], (Cout, Cin, 3, 3), jnp.float32), ks[1]),
        "w2": _spectral_normalize(0.2 * jax.random.normal(ks[2], (Cout, Cout, 3, 3), jnp.float32), ks[3]),
        "w3": _spectral_normalize(0.2 * jax.random.normal(ks[4], (Cout, Cin, 1, 1), jnp.float32), ks[5]),
        "conv2_bias": 0.1 * jax.random.normal(ks[6], (Cout,), jnp.float32),
        "conv3_bias": 0.1 * jax.random.normal(ks[7], (Cout,), jnp.float32),
        "bn1_gamma": 1.0 + 0.1 * jax.random.normal(ks[8], (Cin,), jnp.float32),
        "bn1_beta": 0.1 * jax.random.normal(ks[9], (Cin,), jnp.float32),
        "bn2_gamma": 1.0 + 0.1 * jax.random.normal(ks[10], (Cout,), jnp.float32),
        "bn2_beta": 0.1 * jax.random.normal(ks[11], (Cout,), jnp.float32),
    }

    x = jax.random.normal(ks[12], (N, Cin, H, W), jnp.float32)

    out = jax.block_until_ready(resblock_pallas(x, params))
    ref = jax.block_until_ready(resblock_reference(x, params))

    assert out.shape == (N, Cout, H, W), out.shape
    max_err = float(jnp.abs(out - ref).max())
    # Tolerance sized for bf16 MXU operands and the bf16 y1 intermediate (f32 accumulation
    # throughout); setting COMPUTE_DTYPE = jnp.float32 passes at atol=rtol=1e-5.
    assert jnp.allclose(out, ref, atol=2e-2, rtol=2e-2), f"max abs err = {max_err}"
    print("KERNEL_OK")
</pallas_src>

<mosaic_0001>
module attributes {stable_mosaic.version = 11 : i64} {
  func.func @_stage1_kernel(%arg0: i32, %arg1: memref<1x16x16x4xf32, #tpu.memory_space<vmem>>, %arg2: memref<1x4xf32, #tpu.memory_space<vmem>>, %arg3: memref<1x4xf32, #tpu.memory_space<vmem>>, %arg4: memref<36x8xbf16, #tpu.memory_space<vmem>>, %arg5: memref<1x16x16x8xbf16, #tpu.memory_space<vmem>>, %arg6: memref<1x2x8xf32, #tpu.memory_space<vmem>>) attributes {dimension_semantics = [#tpu.dimension_semantics<parallel>], iteration_bounds = array<i64: 2>, scalar_prefetch = 0 : i64, scratch_operands = 0 : i64, tpu.core_type = #tpu.core_type<tc>, window_params = [{transform_indices = @transform_0, window_bounds = array<i64: 1, 16, 16, 4>}, {pipeline_mode = #tpu.pipeline_mode<synchronous>, transform_indices = @transform_1, window_bounds = array<i64: 1, 4>}, {pipeline_mode = #tpu.pipeline_mode<synchronous>, transform_indices = @transform_2, window_bounds = array<i64: 1, 4>}, {pipeline_mode = #tpu.pipeline_mode<synchronous>, transform_indices = @transform_3, window_bounds = array<i64: 36, 8>}, {transform_indices = @transform_4, window_bounds = array<i64: 1, 16, 16, 8>}, {transform_indices = @transform_5, window_bounds = array<i64: 1, 2, 8>}]} {
    %c0 = arith.constant 0 : index
    %c0_0 = arith.constant 0 : index
    %c0_1 = arith.constant 0 : index
    %c0_2 = arith.constant 0 : index
    %0 = vector.load %arg1[%c0, %c0_0, %c0_1, %c0_2] : memref<1x16x16x4xf32, #tpu.memory_space<vmem>>, vector<1x16x16x4xf32>
    %1 = vector.shape_cast %0 : vector<1x16x16x4xf32> to vector<16x16x4xf32>
    %2 = vector.shape_cast %1 : vector<16x16x4xf32> to vector<256x4xf32>
    %c0_3 = arith.constant 0 : index
    %c0_4 = arith.constant 0 : index
    %3 = vector.load %arg2[%c0_3, %c0_4] : memref<1x4xf32, #tpu.memory_space<vmem>>, vector<1x4xf32>
    %4 = vector.broadcast %3 : vector<1x4xf32> to vector<256x4xf32>
    %5 = arith.mulf %2, %4 : vector<256x4xf32>
    %c0_5 = arith.constant 0 : index
    %c0_6 = arith.constant 0 : index
    %6 = vector.load %arg3[%c0_5, %c0_6] : memref<1x4xf32, #tpu.memory_space<vmem>>, vector<1x4xf32>
    %7 = vector.broadcast %6 : vector<1x4xf32> to vector<256x4xf32>
    %8 = arith.addf %5, %7 : vector<256x4xf32>
    %cst = arith.constant 0.000000e+00 : f32
    %9 = vector.broadcast %cst : f32 to vector<256x4xf32>
    %10 = arith.cmpf ogt, %8, %9 : vector<256x4xf32>
    %cst_7 = arith.constant 0.00999999977 : f32
    %11 = vector.broadcast %cst_7 : f32 to vector<256x4xf32>
    %12 = arith.mulf %11, %8 : vector<256x4xf32>
    %13 = arith.select %10, %8, %12 : vector<256x4xi1>, vector<256x4xf32>
    %14 = vector.shape_cast %13 : vector<256x4xf32> to vector<16x16x4xf32>
    %cst_8 = arith.constant 0.000000e+00 : f32
    %15 = vector.broadcast %cst_8 : f32 to vector<1x16x4xf32>
    %16 = tpu.concatenate %15, %14, %15 in 0 : vector<1x16x4xf32>, vector<16x16x4xf32>, vector<1x16x4xf32> -> vector<18x16x4xf32>
    %cst_9 = arith.constant 0.000000e+00 : f32
    %17 = vector.broadcast %cst_9 : f32 to vector<18x1x4xf32>
    %18 = tpu.concatenate %17, %16, %17 in 1 : vector<18x1x4xf32>, vector<18x16x4xf32>, vector<18x1x4xf32> -> vector<18x18x4xf32>
    %19 = vector.extract_strided_slice %18 {offsets = [0, 0, 0], sizes = [16, 16, 4], strides = [1, 1, 1]} : vector<18x18x4xf32> to vector<16x16x4xf32>
    %20 = vector.extract_strided_slice %18 {offsets = [0, 1, 0], sizes = [16, 16, 4], strides = [1, 1, 1]} : vector<18x18x4xf32> to vector<16x16x4xf32>
    %21 = vector.extract_strided_slice %18 {offsets = [0, 2, 0], sizes = [16, 16, 4], strides = [1, 1, 1]} : vector<18x18x4xf32> to vector<16x16x4xf32>
    %22 = vector.extract_strided_slice %18 {offsets = [1, 0, 0], sizes = [16, 16, 4], strides = [1, 1, 1]} : vector<18x18x4xf32> to vector<16x16x4xf32>
    %23 = vector.extract_strided_slice %18 {offsets = [1, 1, 0], sizes = [16, 16, 4], strides = [1, 1, 1]} : vector<18x18x4xf32> to vector<16x16x4xf32>
    %24 = vector.extract_strided_slice %18 {offsets = [1, 2, 0], sizes = [16, 16, 4], strides = [1, 1, 1]} : vector<18x18x4xf32> to vector<16x16x4xf32>
    %25 = vector.extract_strided_slice %18 {offsets = [2, 0, 0], sizes = [16, 16, 4], strides = [1, 1, 1]} : vector<18x18x4xf32> to vector<16x16x4xf32>
    %26 = vector.extract_strided_slice %18 {offsets = [2, 1, 0], sizes = [16, 16, 4], strides = [1, 1, 1]} : vector<18x18x4xf32> to vector<16x16x4xf32>
    %27 = vector.extract_strided_slice %18 {offsets = [2, 2, 0], sizes = [16, 16, 4], strides = [1, 1, 1]} : vector<18x18x4xf32> to vector<16x16x4xf32>
    %28 = tpu.concatenate %19, %20, %21, %22, %23, %24, %25, %26, %27 in 2 : vector<16x16x4xf32>, vector<16x16x4xf32>, vector<16x16x4xf32>, vector<16x16x4xf32>, vector<16x16x4xf32>, vector<16x16x4xf32>, vector<16x16x4xf32>, vector<16x16x4xf32>, vector<16x16x4xf32> -> vector<16x16x36xf32>
    %29 = vector.shape_cast %28 : vector<16x16x36xf32> to vector<256x36xf32>
    %30 = arith.truncf %29 : vector<256x36xf32> to vector<256x36xbf16>
    %c0_10 = arith.constant 0 : index
    %c0_11 = arith.constant 0 : index
    %31 = vector.load %arg4[%c0_10, %c0_11] : memref<36x8xbf16, #tpu.memory_space<vmem>>, vector<36x8xbf16>
    %cst_12 = arith.constant dense<0.000000e+00> : vector<256x8xf32>
    %32 = tpu.matmul %30, %31, %cst_12 {dimension_numbers = #tpu.dot_dimension_numbers<[1], [0], [0], [1], [0, 0, 1, 1], [], []>} : vector<256x36xbf16>, vector<36x8xbf16>, vector<256x8xf32> -> vector<256x8xf32>
    %33 = vector.shape_cast %32 : vector<256x8xf32> to vector<16x16x8xf32>
    %34 = arith.truncf %33 : vector<16x16x8xf32> to vector<16x16x8xbf16>
    %c0_13 = arith.constant 0 : index
    %c0_14 = arith.constant 0 : index
    %c0_15 = arith.constant 0 : index
    %c0_16 = arith.constant 0 : index
    %35 = vector.load %arg5[%c0_13, %c0_14, %c0_15, %c0_16] : memref<1x16x16x8xbf16, #tpu.memory_space<vmem>>, vector<1x16x16x8xbf16>
    %36 = vector.shape_cast %35 : vector<1x16x16x8xbf16> to vector<16x16x8xbf16>
    %37 = vector.shape_cast %34 : vector<16x16x8xbf16> to vector<1x16x16x8xbf16>
    tpu.vector_store %arg5[%c0_13, %c0_14, %c0_15, %c0_16], %37 {strides = array<i32>} : memref<1x16x16x8xbf16, #tpu.memory_space<vmem>>, vector<1x16x16x8xbf16>,
    %cst_17 = arith.constant dense<0.000000e+00> : vector<8xf32>
    %38 = vector.multi_reduction <add>, %32, %cst_17 [0] : vector<256x8xf32> to vector<8xf32>
    %39 = vector.shape_cast %38 : vector<8xf32> to vector<1x8xf32>
    %40 = arith.mulf %32, %32 : vector<256x8xf32>
    %cst_18 = arith.constant dense<0.000000e+00> : vector<8xf32>
    %41 = vector.multi_reduction <add>, %40, %cst_18 [0] : vector<256x8xf32> to vector<8xf32>
    %42 = vector.shape_cast %41 : vector<8xf32> to vector<1x8xf32>
    %43 = tpu.concatenate %39, %42 in 0 : vector<1x8xf32>, vector<1x8xf32> -> vector<2x8xf32>
    %c0_19 = arith.constant 0 : index
    %c0_20 = arith.constant 0 : index
    %c0_21 = arith.constant 0 : index
    %44 = vector.load %arg6[%c0_19, %c0_20, %c0_21] : memref<1x2x8xf32, #tpu.memory_space<vmem>>, vector<1x2x8xf32>
    %45 = vector.shape_cast %44 : vector<1x2x8xf32> to vector<2x8xf32>
    %46 = vector.shape_cast %43 : vector<2x8xf32> to vector<1x2x8xf32>
    tpu.vector_store %arg6[%c0_19, %c0_20, %c0_21], %46 {strides = array<i32>} : memref<1x2x8xf32, #tpu.memory_space<vmem>>, vector<1x2x8xf32>,
    return
  }
  func.func @transform_0(%arg0: i32) -> (i32, i32, i32, i32) {
    %c0_i32 = arith.constant 0 : i32
    %c0_i32_0 = arith.constant 0 : i32
    %c0_i32_1 = arith.constant 0 : i32
    %c0_i32_2 = arith.constant 0 : i32
    return %arg0, %c0_i32, %c0_i32_0, %c0_i32_1 : i32, i32, i32, i32
  }
  func.func @transform_1(%arg0: i32) -> (i32, i32) {
    %c0_i32 = arith.constant 0 : i32
    %c0_i32_0 = arith.constant 0 : i32
    %c0_i32_1 = arith.constant 0 : i32
    return %c0_i32, %c0_i32_0 : i32, i32
  }
  func.func @transform_2(%arg0: i32) -> (i32, i32) {
    %c0_i32 = arith.constant 0 : i32
    %c0_i32_0 = arith.constant 0 : i32
    %c0_i32_1 = arith.constant 0 : i32
    return %c0_i32, %c0_i32_0 : i32, i32
  }
  func.func @transform_3(%arg0: i32) -> (i32, i32) {
    %c0_i32 = arith.constant 0 : i32
    %c0_i32_0 = arith.constant 0 : i32
    %c0_i32_1 = arith.constant 0 : i32
    return %c0_i32, %c0_i32_0 : i32, i32
  }
  func.func @transform_4(%arg0: i32) -> (i32, i32, i32, i32) {
    %c0_i32 = arith.constant 0 : i32
    %c0_i32_0 = arith.constant 0 : i32
    %c0_i32_1 = arith.constant 0 : i32
    %c0_i32_2 = arith.constant 0 : i32
    return %arg0, %c0_i32, %c0_i32_0, %c0_i32_1 : i32, i32, i32, i32
  }
  func.func @transform_5(%arg0: i32) -> (i32, i32, i32) {
    %c0_i32 = arith.constant 0 : i32
    %c0_i32_0 = arith.constant 0 : i32
    %c0_i32_1 = arith.constant 0 : i32
    return %arg0, %c0_i32, %c0_i32_0 : i32, i32, i32
  }
}

module attributes {stable_mosaic.version = 11 : i64} {
  func.func @_stage2_kernel(%arg0: i32, %arg1: memref<1x16x16x8xbf16, #tpu.memory_space<vmem>>, %arg2: memref<1x16x16x4xf32, #tpu.memory_space<vmem>>, %arg3: memref<1x8xf32, #tpu.memory_space<vmem>>, %arg4: memref<1x8xf32, #tpu.memory_space<vmem>>, %arg5: memref<76x8xbf16, #tpu.memory_space<vmem>>, %arg6: memref<1x8xf32, #tpu.memory_space<vmem>>, %arg7: memref<1x16x16x8xf32, #tpu.memory_space<vmem>>) attributes {dimension_semantics = [#tpu.dimension_semantics<parallel>], iteration_bounds = array<i64: 2>, scalar_prefetch = 0 : i64, scratch_operands = 0 : i64, tpu.core_type = #tpu.core_type<tc>, window_params = [{transform_indices = @transform_0, window_bounds = array<i64: 1, 16, 16, 8>}, {transform_indices = @transform_1, window_bounds = array<i64: 1, 16, 16, 4>}, {pipeline_mode = #tpu.pipeline_mode<synchronous>, transform_indices = @transform_2, window_bounds = array<i64: 1, 8>}, {pipeline_mode = #tpu.pipeline_mode<synchronous>, transform_indices = @transform_3, window_bounds = array<i64: 1, 8>}, {pipeline_mode = #tpu.pipeline_mode<synchronous>, transform_indices = @transform_4, window_bounds = array<i64: 76, 8>}, {pipeline_mode = #tpu.pipeline_mode<synchronous>, transform_indices = @transform_5, window_bounds = array<i64: 1, 8>}, {transform_indices = @transform_6, window_bounds = array<i64: 1, 16, 16, 8>}]} {
    %c0 = arith.constant 0 : index
    %c0_0 = arith.constant 0 : index
    %c0_1 = arith.constant 0 : index
    %c0_2 = arith.constant 0 : index
    %0 = vector.load %arg1[%c0, %c0_0, %c0_1, %c0_2] : memref<1x16x16x8xbf16, #tpu.memory_space<vmem>>, vector<1x16x16x8xbf16>
    %1 = vector.shape_cast %0 : vector<1x16x16x8xbf16> to vector<16x16x8xbf16>
    %2 = vector.shape_cast %1 : vector<16x16x8xbf16> to vector<256x8xbf16>
    %3 = arith.extf %2 : vector<256x8xbf16> to vector<256x8xf32>
    %c0_3 = arith.constant 0 : index
    %c0_4 = arith.constant 0 : index
    %4 = vector.load %arg3[%c0_3, %c0_4] : memref<1x8xf32, #tpu.memory_space<vmem>>, vector<1x8xf32>
    %5 = vector.broadcast %4 : vector<1x8xf32> to vector<256x8xf32>
    %6 = arith.mulf %3, %5 : vector<256x8xf32>
    %c0_5 = arith.constant 0 : index
    %c0_6 = arith.constant 0 : index
    %7 = vector.load %arg4[%c0_5, %c0_6] : memref<1x8xf32, #tpu.memory_space<vmem>>, vector<1x8xf32>
    %8 = vector.broadcast %7 : vector<1x8xf32> to vector<256x8xf32>
    %9 = arith.addf %6, %8 : vector<256x8xf32>
    %cst = arith.constant 0.000000e+00 : f32
    %10 = vector.broadcast %cst : f32 to vector<256x8xf32>
    %11 = arith.cmpf ogt, %9, %10 : vector<256x8xf32>
    %cst_7 = arith.constant 0.00999999977 : f32
    %12 = vector.broadcast %cst_7 : f32 to vector<256x8xf32>
    %13 = arith.mulf %12, %9 : vector<256x8xf32>
    %14 = arith.select %11, %9, %13 : vector<256x8xi1>, vector<256x8xf32>
    %15 = vector.shape_cast %14 : vector<256x8xf32> to vector<16x16x8xf32>
    %c0_8 = arith.constant 0 : index
    %c0_9 = arith.constant 0 : index
    %c0_10 = arith.constant 0 : index
    %c0_11 = arith.constant 0 : index
    %16 = vector.load %arg2[%c0_8, %c0_9, %c0_10, %c0_11] : memref<1x16x16x4xf32, #tpu.memory_space<vmem>>, vector<1x16x16x4xf32>
    %17 = vector.shape_cast %16 : vector<1x16x16x4xf32> to vector<16x16x4xf32>
    %cst_12 = arith.constant 0.000000e+00 : f32
    %18 = vector.broadcast %cst_12 : f32 to vector<1x16x8xf32>
    %19 = tpu.concatenate %18, %15, %18 in 0 : vector<1x16x8xf32>, vector<16x16x8xf32>, vector<1x16x8xf32> -> vector<18x16x8xf32>
    %cst_13 = arith.constant 0.000000e+00 : f32
    %20 = vector.broadcast %cst_13 : f32 to vector<18x1x8xf32>
    %21 = tpu.concatenate %20, %19, %20 in 1 : vector<18x1x8xf32>, vector<18x16x8xf32>, vector<18x1x8xf32> -> vector<18x18x8xf32>
    %22 = vector.extract_strided_slice %21 {offsets = [0, 0, 0], sizes = [16, 16, 8], strides = [1, 1, 1]} : vector<18x18x8xf32> to vector<16x16x8xf32>
    %23 = vector.extract_strided_slice %21 {offsets = [0, 1, 0], sizes = [16, 16, 8], strides = [1, 1, 1]} : vector<18x18x8xf32> to vector<16x16x8xf32>
    %24 = vector.extract_strided_slice %21 {offsets = [0, 2, 0], sizes = [16, 16, 8], strides = [1, 1, 1]} : vector<18x18x8xf32> to vector<16x16x8xf32>
    %25 = vector.extract_strided_slice %21 {offsets = [1, 0, 0], sizes = [16, 16, 8], strides = [1, 1, 1]} : vector<18x18x8xf32> to vector<16x16x8xf32>
    %26 = vector.extract_strided_slice %21 {offsets = [1, 1, 0], sizes = [16, 16, 8], strides = [1, 1, 1]} : vector<18x18x8xf32> to vector<16x16x8xf32>
    %27 = vector.extract_strided_slice %21 {offsets = [1, 2, 0], sizes = [16, 16, 8], strides = [1, 1, 1]} : vector<18x18x8xf32> to vector<16x16x8xf32>
    %28 = vector.extract_strided_slice %21 {offsets = [2, 0, 0], sizes = [16, 16, 8], strides = [1, 1, 1]} : vector<18x18x8xf32> to vector<16x16x8xf32>
    %29 = vector.extract_strided_slice %21 {offsets = [2, 1, 0], sizes = [16, 16, 8], strides = [1, 1, 1]} : vector<18x18x8xf32> to vector<16x16x8xf32>
    %30 = vector.extract_strided_slice %21 {offsets = [2, 2, 0], sizes = [16, 16, 8], strides = [1, 1, 1]} : vector<18x18x8xf32> to vector<16x16x8xf32>
    %31 = tpu.concatenate %22, %23, %24, %25, %26, %27, %28, %29, %30, %17 in 2 : vector<16x16x8xf32>, vector<16x16x8xf32>, vector<16x16x8xf32>, vector<16x16x8xf32>, vector<16x16x8xf32>, vector<16x16x8xf32>, vector<16x16x8xf32>, vector<16x16x8xf32>, vector<16x16x8xf32>, vector<16x16x4xf32> -> vector<16x16x76xf32>
    %32 = vector.shape_cast %31 : vector<16x16x76xf32> to vector<256x76xf32>
    %33 = arith.truncf %32 : vector<256x76xf32> to vector<256x76xbf16>
    %c0_14 = arith.constant 0 : index
    %c0_15 = arith.constant 0 : index
    %34 = vector.load %arg5[%c0_14, %c0_15] : memref<76x8xbf16, #tpu.memory_space<vmem>>, vector<76x8xbf16>
    %cst_16 = arith.constant dense<0.000000e+00> : vector<256x8xf32>
    %35 = tpu.matmul %33, %34, %cst_16 {dimension_numbers = #tpu.dot_dimension_numbers<[1], [0], [0], [1], [0, 0, 1, 1], [], []>} : vector<256x76xbf16>, vector<76x8xbf16>, vector<256x8xf32> -> vector<256x8xf32>
    %c0_17 = arith.constant 0 : index
    %c0_18 = arith.constant 0 : index
    %36 = vector.load %arg6[%c0_17, %c0_18] : memref<1x8xf32, #tpu.memory_space<vmem>>, vector<1x8xf32>
    %37 = vector.broadcast %36 : vector<1x8xf32> to vector<256x8xf32>
    %38 = arith.addf %35, %37 : vector<256x8xf32>
    %39 = vector.shape_cast %38 : vector<256x8xf32> to vector<16x16x8xf32>
    %c0_19 = arith.constant 0 : index
    %c0_20 = arith.constant 0 : index
    %c0_21 = arith.constant 0 : index
    %c0_22 = arith.constant 0 : index
    %40 = vector.load %arg7[%c0_19, %c0_20, %c0_21, %c0_22] : memref<1x16x16x8xf32, #tpu.memory_space<vmem>>, vector<1x16x16x8xf32>
    %41 = vector.shape_cast %40 : vector<1x16x16x8xf32> to vector<16x16x8xf32>
    %42 = vector.shape_cast %39 : vector<16x16x8xf32> to vector<1x16x16x8xf32>
    tpu.vector_store %arg7[%c0_19, %c0_20, %c0_21, %c0_22], %42 {strides = array<i32>} : memref<1x16x16x8xf32, #tpu.memory_space<vmem>>, vector<1x16x16x8xf32>,
    return
  }
  func.func @transform_0(%arg0: i32) -> (i32, i32, i32, i32) {
    %c0_i32 = arith.constant 0 : i32
    %c0_i32_0 = arith.constant 0 : i32
    %c0_i32_1 = arith.constant 0 : i32
    %c0_i32_2 = arith.constant 0 : i32
    return %arg0, %c0_i32, %c0_i32_0, %c0_i32_1 : i32, i32, i32, i32
  }
  func.func @transform_1(%arg0: i32) -> (i32, i32, i32, i32) {
    %c0_i32 = arith.constant 0 : i32
    %c0_i32_0 = arith.constant 0 : i32
    %c0_i32_1 = arith.constant 0 : i32
    %c0_i32_2 = arith.constant 0 : i32
    return %arg0, %c0_i32, %c0_i32_0, %c0_i32_1 : i32, i32, i32, i32
  }
  func.func @transform_2(%arg0: i32) -> (i32, i32) {
    %c0_i32 = arith.constant 0 : i32
    %c0_i32_0 = arith.constant 0 : i32
    %c0_i32_1 = arith.constant 0 : i32
    return %c0_i32, %c0_i32_0 : i32, i32
  }
  func.func @transform_3(%arg0: i32) -> (i32, i32) {
    %c0_i32 = arith.constant 0 : i32
    %c0_i32_0 = arith.constant 0 : i32
    %c0_i32_1 = arith.constant 0 : i32
    return %c0_i32, %c0_i32_0 : i32, i32
  }
  func.func @transform_4(%arg0: i32) -> (i32, i32) {
    %c0_i32 = arith.constant 0 : i32
    %c0_i32_0 = arith.constant 0 : i32
    %c0_i32_1 = arith.constant 0 : i32
    return %c0_i32, %c0_i32_0 : i32, i32
  }
  func.func @transform_5(%arg0: i32) -> (i32, i32) {
    %c0_i32 = arith.constant 0 : i32
    %c0_i32_0 = arith.constant 0 : i32
    %c0_i32_1 = arith.constant 0 : i32
    return %c0_i32, %c0_i32_0 : i32, i32
  }
  func.func @transform_6(%arg0: i32) -> (i32, i32, i32, i32) {
    %c0_i32 = arith.constant 0 : i32
    %c0_i32_0 = arith.constant 0 : i32
    %c0_i32_1 = arith.constant 0 : i32
    %c0_i32_2 = arith.constant 0 : i32
    return %arg0, %c0_i32, %c0_i32_0, %c0_i32_1 : i32, i32, i32, i32
  }
}

</mosaic_0001>

<bundles_post_ra>
// kernel: _resblock_pallas.2
= control target key start
LH: loop header
LB: loop body
LE: loop exit
PB: predicated region body
PF: predicated region fallthrough
CT: control target
= control target key end

     0   :  { %s3391_s18 = smov 0   ;;  %s4869_s0 = inlined_call_operand.vmem [shape: f32[2,16,16,4], index: 0, kind: input, shape index: {}]   ;;  %s4870_s1 = inlined_call_operand.vmem [shape: f32[1,4], index: 1, kind: input, shape index: {}]   ;;  %s4871_s2 = inlined_call_operand.vmem [shape: f32[1,4], index: 2, kind: input, shape index: {}]   ;;  %s4872_s3 = inlined_call_operand.vmem [shape: bf16[36,8], index: 3, kind: input, shape index: {}]   ;;  %s4873_s4 = inlined_call_operand.vmem [shape: bf16[2,16,16,8], index: 4, kind: output, shape index: {0}]   ;;  %s4874_s5 = inlined_call_operand.vmem [shape: f32[2,2,8], index: 5, kind: output, shape index: {1}]  }
   0x1 LB: > { %s2518_s19 = sadd.s32 4294967295, %s3350_s18   ;;  %p2522_p0 = scmp.ge.s32.totalorder %s3350_s18, 1  ;;  %s3350_s18 = sphi %s3391_s18, %s16_s18  }
   0x2   : > { %p190_p1 = scmp.lt.s32.totalorder %s3350_s18, 3 }
   0x4   : > { %p191_p2 = pnand %p2522_p0, %p190_p1 }
   0x6   : > { %194 = sbr.rel (%p191_p2) target bundleno = 671 (0x29f), region = 36 }
   0xb   : > { %vm476_vm0 = vcmask 1040384   ;;  %p222_p3 = scmp.lt.s32.totalorder %s2518_s19, 1  ;;  %v3352_v0 = vmov 0.0   ;;  %vm642_vm1 = vcmask 1046528   ;;  %vm819_vm2 = vcmask 1045504   ;;  %s3353_s28 = smov 4  }
   0xc   : > { %v3399_v1 = vrot.slane %v3352_v0, 7  ;;  %v3413_v5 = vld [vmem:[%s4870_s1] ss:$0 sm:$0xff]  ;;  %s3354_s29 = smov 8   ;;  %s3355_s30 = smov 12  }
   0xd   : > { %s5069_s19 = smov (!%p222_p3, %s2518_s19), 1  ;;  %v3421_v10 = vld [vmem:[%s4871_s2] ss:$0 sm:$0xff]  ;;  %s3356_s8 = smov 16  }
   0xe   : > { %4947 = vst [vmem:[#allocation2_spill] sm:$0xff] %v3399_v1  ;;  %v3405_v2 = vsel %vm476_vm0, 0.0, %v3399_v1  ;;  %v593_v3 = vsel %vm476_vm0, %v3399_v1, 0.0  ;;  %v644_v4 = vrot.slane %v3399_v1, 1  ;;  %v821_v6 = vrot.slane %v3399_v1, 2  ;;  %s2583_s22 = sshll.u32 %s5069_s19, 8 }
   0xf   : > { %4948 = vst [vmem:[#allocation3_spill] sm:$0xff] %v3405_v2  ;;  %v643_v7 = vrot.slane %v3405_v2, 1  ;;  %v646_v8 = vrot.slane %v593_v3, 1  ;;  %v823_v9 = vrot.slane %v593_v3, 2  ;;  %v820_v11 = vrot.slane %v3405_v2, 2  ;;  %s3427_s27 = scalar_lea.vmem %s4869_s0, %s2583_s22  ;;  %s3357_s11 = smov 20  }
  0x10   : > { %v239_v14 = vld [vmem:[%s3427_s27 + $0x10] sm:$0xff]  ;;  %v240_v15 = vld [vmem:[%s3427_s27 + $0x18] sm:$0xff]  ;;  %v237_v16 = vld [vmem:[%s3427_s27] sm:$0xff]  ;;  %s3358_s14 = smov 24   ;;  %s3359_s15 = smov 28  }
  0x11   : > { %v645_v12 = vsel %vm642_vm1, %v643_v7, %v644_v4  ;;  %v647_v13 = vsel %vm642_vm1, %v644_v4, %v646_v8  ;;  %v3435_v17 = vsel %vm819_vm2, %v820_v11, %v821_v6  ;;  %v278_v19 = vmul.f32 %v3413_v5, %v239_v14  ;;  %v238_v21 = vld [vmem:[%s3427_s27 + $0x8] sm:$0xff]  ;;  %v241_v22 = vld [vmem:[%s3427_s27 + $0x20] sm:$0xff]  ;;  %v243_v28 = vld [vmem:[%s3427_s27 + $0x30] sm:$0xff]  ;;  %s3360_s16 = smov 32   ;;  %s2584_s23 = sshll.u32 %s5069_s19, 7 }
  0x12   : > { %v3437_v18 = vpack.i.bf16 %v647_v13, %v645_v12  ;;  %v279_v20 = vmul.f32 %v3413_v5, %v240_v15  ;;  %v242_v23 = vld [vmem:[%s3427_s27 + $0x28] sm:$0xff]  ;;  %v276_v24 = vmul.f32 %v3413_v5, %v237_v16  ;;  %v277_v25 = vmul.f32 %v3413_v5, %v238_v21  ;;  %v244_v37 = vld [vmem:[%s3427_s27 + $0x38] sm:$0xff]  ;;  %v245_v7 = vld [vmem:[%s3427_s27 + $0x40] sm:$0xff]  ;;  %s4731_s26 = scalar_lea.vmem %s4873_s4, %s2584_s23 }
  0x13   : > { %v280_v26 = vmul.f32 %v3413_v5, %v241_v22  ;;  %v281_v27 = vmul.f32 %v3413_v5, %v242_v23  ;;  %v317_v29 = vadd.f32 %v3421_v10, %v278_v19  ;;  %v282_v31 = vmul.f32 %v3413_v5, %v243_v28  ;;  %v246_v21 = vld [vmem:[%s3427_s27 + $0x48] sm:$0xff]  ;;  %v247_v23 = vld [vmem:[%s3427_s27 + $0x50] sm:$0xff] }
  0x14   : > { %4949 = vst [vmem:[#allocation4_spill] sm:$0xff] %v3437_v18  ;;  %2700 = vrot.lane.b32.xlu0 %v3437_v18, %s3353_s28  ;;  %v318_v30 = vadd.f32 %v3421_v10, %v279_v20  ;;  %v3455_v32 = vsel %vm819_vm2, %v821_v6, %v823_v9  ;;  %v315_v33 = vadd.f32 %v3421_v10, %v276_v24  ;;  %v264_v18 = vld [vmem:[%s3427_s27 + $0xd8] sm:$0xff] }
  0x15   : > { %v316_v34 = vadd.f32 %v3421_v10, %v277_v25  ;;  %v319_v35 = vadd.f32 %v3421_v10, %v280_v26  ;;  %v320_v36 = vadd.f32 %v3421_v10, %v281_v27  ;;  %vm349_vm3 = vcmp.gt.f32.partialorder %v317_v29, 0.0 }
  0x16   : > { %vm350_vm4 = vcmp.gt.f32.partialorder %v318_v30, 0.0  ;;  %v381_v38 = vmul.f32 0.01, %v317_v29  ;;  %v382_v39 = vmul.f32 0.01, %v318_v30  ;;  %vm347_vm5 = vcmp.gt.f32.partialorder %v315_v33, 0.0 }
  0x17   : > { %vm348_vm6 = vcmp.gt.f32.partialorder %v316_v34, 0.0  ;;  %v379_v40 = vmul.f32 0.01, %v315_v33  ;;  %v380_v41 = vmul.f32 0.01, %v316_v34  ;;  %vm351_vm7 = vcmp.gt.f32.partialorder %v319_v35, 0.0 }
  0x18   : > { %v413_v42 = vsel %vm349_vm3, %v317_v29, %v381_v38  ;;  %v414_v43 = vsel %vm350_vm4, %v318_v30, %v382_v39  ;;  %v283_v44 = vmul.f32 %v3413_v5, %v244_v37  ;;  %vm352_vm8 = vcmp.gt.f32.partialorder %v320_v36, 0.0 }
  0x19   : > { %v482_v45 = vrot.slane %v413_v42, 7  ;;  %v483_v46 = vrot.slane %v414_v43, 7  ;;  %v411_v47 = vsel %vm347_vm5, %v315_v33, %v379_v40  ;;  %v412_v48 = vsel %vm348_vm6, %v316_v34, %v380_v41 }
  0x1a   : > { %v479_v49 = vrot.slane %v411_v47, 7  ;;  %v480_v50 = vrot.slane %v412_v48, 7  ;;  %v383_v51 = vmul.f32 0.01, %v319_v35  ;;  %v384_v55 = vmul.f32 0.01, %v320_v36 }
  0x1b   : > { %v3464_v52 = vsel %vm476_vm0, %v482_v45, %v483_v46  ;;  %v3467_v53 = vsel %vm476_vm0, 0.0, %v482_v45  ;;  %v3470_v54 = vsel %vm476_vm0, %v483_v46, 0.0  ;;  %v321_v59 = vadd.f32 %v3421_v10, %v282_v31 }
  0x1c   : > { %v653_v56 = vrot.slane %v3467_v53, 1  ;;  %v654_v57 = vrot.slane %v3464_v52, 1  ;;  %v656_v58 = vrot.slane %v3470_v54, 1  ;;  %v3477_v60 = vsel %vm476_vm0, %v479_v49, %v480_v50 }
  0x1d   : > { %v3480_v61 = vsel %vm476_vm0, 0.0, %v479_v49  ;;  %v3483_v62 = vsel %vm476_vm0, %v480_v50, 0.0  ;;  %v415_v63 = vsel %vm351_vm7, %v319_v35, %v383_v51  ;;  %v649_v6 = vrot.slane %v3477_v60, 1  ;;  %v248_v35 = vld [vmem:[%s3427_s27 + $0x58] sm:$0xff]  ;;  %v249_v51 = vld [vmem:[%s3427_s27 + $0x60] sm:$0xff] }
  0x1e   : > { %v655_v0 = vsel %vm642_vm1, %v653_v56, %v654_v57  ;;  %v657_v3 = vsel %vm642_vm1, %v654_v57, %v656_v58  ;;  %v648_v4 = vrot.slane %v3480_v61, 1  ;;  %v651_v9 = vrot.slane %v3483_v62, 1 }
  0x1f   : > { %v3491_v8 = vpack.i.bf16 %v657_v3, %v655_v0  ;;  %v416_v11 = vsel %vm352_vm8, %v320_v36, %v384_v55  ;;  %v485_v12 = vrot.slane %v415_v63, 7  ;;  %v322_v15 = vadd.f32 %v3421_v10, %v283_v44  ;;  %v250_v3 = vld [vmem:[%s3427_s27 + $0x68] sm:$0xff] }
  0x20   : > { %v650_v13 = vsel %vm642_vm1, %v648_v4, %v649_v6  ;;  %v486_v14 = vrot.slane %v416_v11, 7  ;;  %vm353_vm9 = vcmp.gt.f32.partialorder %v321_v59, 0.0  ;;  %v652_v16 = vsel %vm642_vm1, %v649_v6, %v651_v9 }
  0x21   : > { %2710 = vrot.lane.b32.xlu1 %v3491_v8, %s3353_s28  ;;  %v3501_v19 = vsel %vm476_vm0, 0.0, %v485_v12  ;;  %v385_v20 = vmul.f32 0.01, %v321_v59  ;;  %v284_v22 = vmul.f32 %v3413_v5, %v245_v7  ;;  %v3506_v24 = vpack.i.bf16 %v652_v16, %v650_v13 }
  0x22   : > { %v3509_v25 = vsel %vm476_vm0, %v485_v12, %v486_v14  ;;  %v3512_v26 = vsel %vm476_vm0, %v486_v14, 0.0  ;;  %v658_v27 = vrot.slane %v3501_v19, 1  ;;  %vm354_vm10 = vcmp.gt.f32.partialorder %v322_v15, 0.0 }
  0x23   : > { %4950 = vst [vmem:[#allocation5_spill] sm:$0xff] %v3506_v24  ;;  %v659_v28 = vrot.slane %v3509_v25, 1  ;;  %v661_v29 = vrot.slane %v3512_v26, 1  ;;  %v386_v30 = vmul.f32 0.01, %v322_v15  ;;  %2705 = vrot.lane.b32.xlu0 %v3506_v24, %s3353_s28  ;;  %v417_v31 = vsel %vm353_vm9, %v321_v59, %v385_v20 }
  0x24   : > { %v285_v33 = vmul.f32 %v3413_v5, %v246_v21  ;;  %v323_v34 = vadd.f32 %v3421_v10, %v284_v22  ;;  %v286_v36 = vmul.f32 %v3413_v5, %v247_v23  ;;  %v488_v40 = vrot.slane %v417_v31, 7 }
  0x25   : > { %v660_v37 = vsel %vm642_vm1, %v658_v27, %v659_v28  ;;  %v662_v38 = vsel %vm642_vm1, %v659_v28, %v661_v29  ;;  %v418_v39 = vsel %vm354_vm10, %v322_v15, %v386_v30  ;;  %v287_v46 = vmul.f32 %v3413_v5, %v248_v35 }
  0x26   : > { %v3526_v41 = vpack.i.bf16 %v662_v38, %v660_v37  ;;  %v489_v42 = vrot.slane %v418_v39, 7  ;;  %v324_v43 = vadd.f32 %v3421_v10, %v285_v33  ;;  %vm355_vm11 = vcmp.gt.f32.partialorder %v323_v34, 0.0 }
  0x27   : > { %v3530_v44 = vsel %vm476_vm0, 0.0, %v488_v40  ;;  %v387_v45 = vmul.f32 0.01, %v323_v34  ;;  %v325_v47 = vadd.f32 %v3421_v10, %v286_v36  ;;  %v326_v63 = vadd.f32 %v3421_v10, %v287_v46  ;;  %v251_v36 = vld [vmem:[%s3427_s27 + $0x70] sm:$0xff] }
  0x28   : > { %4951 = vst [vmem:[#allocation6_spill] sm:$0xff] %v3526_v41  ;;  %2715 = vrot.lane.b32.xlu1 %v3526_v41, %s3353_s28  ;;  %v3537_v48 = vsel %vm476_vm0, %v488_v40, %v489_v42  ;;  %v3540_v49 = vsel %vm476_vm0, %v489_v42, 0.0  ;;  %v663_v50 = vrot.slane %v3530_v44, 1  ;;  %vm356_vm12 = vcmp.gt.f32.partialorder %v324_v43, 0.0  ;;  %v252_v40 = vld [vmem:[%s3427_s27 + $0x78] sm:$0xff]  ;;  %v253_v42 = vld [vmem:[%s3427_s27 + $0x80] sm:$0xff] }
  0x29   : > { %v664_v55 = vrot.slane %v3537_v48, 1  ;;  %v666_v56 = vrot.slane %v3540_v49, 1  ;;  %v388_v57 = vmul.f32 0.01, %v324_v43  ;;  %v419_v58 = vsel %vm355_vm11, %v323_v34, %v387_v45 }
  0x2a   : > { %v491_v59 = vrot.slane %v419_v58, 7  ;;  %vm357_vm13 = vcmp.gt.f32.partialorder %v325_v47, 0.0  ;;  %v389_v0 = vmul.f32 0.01, %v325_v47  ;;  %v288_v9 = vmul.f32 %v3413_v5, %v249_v51 }
  0x2b   : > { %v665_v4 = vsel %vm642_vm1, %v663_v50, %v664_v55  ;;  %v667_v6 = vsel %vm642_vm1, %v664_v55, %v666_v56  ;;  %v420_v7 = vsel %vm356_vm12, %v324_v43, %v388_v57  ;;  %vm358_vm14 = vcmp.gt.f32.partialorder %v326_v63, 0.0  ;;  %v254_v57 = vld [vmem:[%s3427_s27 + $0x88] sm:$0xff] }
  0x2c   : > { %v3551_v11 = vpack.i.bf16 %v667_v6, %v665_v4  ;;  %v492_v12 = vrot.slane %v420_v7, 7  ;;  %v3554_v13 = vsel %vm476_vm0, 0.0, %v491_v59  ;;  %v390_v15 = vmul.f32 0.01, %v326_v63 }
  0x2d   : > { %v668_v14 = vrot.slane %v3554_v13, 1  ;;  %v421_v16 = vsel %vm357_vm13, %v325_v47, %v389_v0  ;;  %v289_v20 = vmul.f32 %v3413_v5, %v250_v3  ;;  %v327_v27 = vadd.f32 %v3421_v10, %v288_v9 }
  0x2e   : > { %4952 = vst [vmem:[#allocation7_spill] sm:$0xff] %v3551_v11  ;;  %2720 = vrot.lane.b32.xlu0 %v3551_v11, %s3353_s28  ;;  %v3561_v21 = vsel %vm476_vm0, %v491_v59, %v492_v12  ;;  %v3564_v22 = vsel %vm476_vm0, %v492_v12, 0.0  ;;  %v494_v23 = vrot.slane %v421_v16, 7  ;;  %v422_v30 = vsel %vm358_vm14, %v326_v63, %v390_v15  ;;  %v255_v16 = vld [vmem:[%s3427_s27 + $0x90] sm:$0xff] }
  0x2f   : > { %v669_v28 = vrot.slane %v3561_v21, 1  ;;  %v671_v29 = vrot.slane %v3564_v22, 1  ;;  %v328_v31 = vadd.f32 %v3421_v10, %v289_v20  ;;  %v495_v33 = vrot.slane %v422_v30, 7 }
  0x30   : > { %v3571_v34 = vsel %vm476_vm0, 0.0, %v494_v23  ;;  %vm359_vm15 = vcmp.gt.f32.partialorder %v327_v27, 0.0  ;;  %v391_v35 = vmul.f32 0.01, %v327_v27  ;;  %v290_v56 = vmul.f32 %v3413_v5, %v251_v36 }
  0x31   : > { %4953 = vst [vmem:[#allocation8_spill] sm:$0xff] %v3571_v34  ;;  %v670_v37 = vsel %vm642_vm1, %v668_v14, %v669_v28  ;;  %v672_v38 = vsel %vm642_vm1, %v669_v28, %v671_v29  ;;  %v673_v39 = vrot.slane %v3571_v34, 1  ;;  %vm360_vm3 = vcmp.gt.f32.partialorder %v328_v31, 0.0  ;;  %v256_v28 = vld [vmem:[%s3427_s27 + $0x98] sm:$0xff] }
  0x32   : > { %v3579_v43 = vpack.i.bf16 %v672_v38, %v670_v37  ;;  %v3582_v45 = vsel %vm476_vm0, %v494_v23, %v495_v33  ;;  %v3585_v46 = vsel %vm476_vm0, %v495_v33, 0.0  ;;  %v392_v47 = vmul.f32 0.01, %v328_v31 }
  0x33   : > { %4955 = vst [vmem:[#allocation10_spill] sm:$0xff] %v3582_v45  ;;  %v674_v50 = vrot.slane %v3582_v45, 1  ;;  %v676_v51 = vrot.slane %v3585_v46, 1  ;;  %v423_v55 = vsel %vm359_vm15, %v327_v27, %v391_v35  ;;  %v291_v63 = vmul.f32 %v3413_v5, %v252_v40 }
  0x34   : > { %4954 = vst [vmem:[#allocation9_spill] sm:$0xff] %v3579_v43  ;;  %2725 = vrot.lane.b32.xlu1 %v3579_v43, %s3353_s28  ;;  %v424_v58 = vsel %vm360_vm3, %v328_v31, %v392_v47  ;;  %v497_v59 = vrot.slane %v423_v55, 7  ;;  %v292_v0 = vmul.f32 %v3413_v5, %v253_v42  ;;  %v329_v7 = vadd.f32 %v3421_v10, %v290_v56  ;;  %v257_v47 = vld [vmem:[%s3427_s27 + $0xa0] sm:$0xff] }
  0x35   : > { %v675_v3 = vsel %vm642_vm1, %v673_v39, %v674_v50  ;;  %v677_v4 = vsel %vm642_vm1, %v674_v50, %v676_v51  ;;  %v498_v6 = vrot.slane %v424_v58, 7  ;;  %v330_v14 = vadd.f32 %v3421_v10, %v291_v63 }
  0x36   : > { %v3598_v9 = vpack.i.bf16 %v677_v4, %v675_v3  ;;  %v3601_v12 = vsel %vm476_vm0, 0.0, %v497_v59  ;;  %v293_v15 = vmul.f32 %v3413_v5, %v254_v57  ;;  %vm361_vm4 = vcmp.gt.f32.partialorder %v329_v7, 0.0 }
  0x37   : > { %4957 = vst [vmem:[#allocation12_spill] sm:$0xff] %v3601_v12  ;;  %v3607_v20 = vsel %vm476_vm0, %v497_v59, %v498_v6  ;;  %v3610_v23 = vsel %vm476_vm0, %v498_v6, 0.0  ;;  %v678_v27 = vrot.slane %v3601_v12, 1  ;;  %vm362_vm5 = vcmp.gt.f32.partialorder %v330_v14, 0.0 }
  0x38   : > { %4956 = vst [vmem:[#allocation11_spill] sm:$0xff] %v3598_v9  ;;  %4958 = vst [vmem:[#allocation13_spill] sm:$0xff] %v3607_v20  ;;  %2730 = vrot.lane.b32.xlu0 %v3598_v9, %s3353_s28  ;;  %v679_v29 = vrot.slane %v3607_v20, 1  ;;  %v681_v30 = vrot.slane %v3610_v23, 1  ;;  %v393_v31 = vmul.f32 0.01, %v329_v7  ;;  %v331_v35 = vadd.f32 %v3421_v10, %v292_v0 }
  0x39   : > { %v394_v33 = vmul.f32 0.01, %v330_v14  ;;  %v332_v36 = vadd.f32 %v3421_v10, %v293_v15  ;;  %v294_v37 = vmul.f32 %v3413_v5, %v255_v16  ;;  %v295_v42 = vmul.f32 %v3413_v5, %v256_v28 }
  0x3a   : > { %v680_v38 = vsel %vm642_vm1, %v678_v27, %v679_v29  ;;  %v682_v39 = vsel %vm642_vm1, %v679_v29, %v681_v30  ;;  %v425_v40 = vsel %vm361_vm4, %v329_v7, %v393_v31  ;;  %vm363_vm6 = vcmp.gt.f32.partialorder %v331_v35, 0.0 }
  0x3b   : > { %v3625_v50 = vpack.i.bf16 %v682_v39, %v680_v38  ;;  %v426_v51 = vsel %vm362_vm5, %v330_v14, %v394_v33  ;;  %v500_v55 = vrot.slane %v425_v40, 7  ;;  %vm364_vm7 = vcmp.gt.f32.partialorder %v332_v36, 0.0  ;;  %v258_v38 = vld [vmem:[%s3427_s27 + $0xa8] sm:$0xff] }
  0x3c   : > { %v501_v56 = vrot.slane %v426_v51, 7  ;;  %v395_v57 = vmul.f32 0.01, %v331_v35  ;;  %v396_v58 = vmul.f32 0.01, %v332_v36  ;;  %v333_v63 = vadd.f32 %v3421_v10, %v294_v37  ;;  %v260_v51 = vld [vmem:[%s3427_s27 + $0xb8] sm:$0xff] }
  0x3d   : > { %4959 = vst [vmem:[#allocation14_spill] sm:$0xff] %v3625_v50  ;;  %2735 = vrot.lane.b32.xlu1 %v3625_v50, %s3353_s28  ;;  %v3630_v59 = vsel %vm476_vm0, 0.0, %v500_v55  ;;  %v334_v0 = vadd.f32 %v3421_v10, %v295_v42  ;;  %v296_v3 = vmul.f32 %v3413_v5, %v257_v47  ;;  %v259_v47 = vld [vmem:[%s3427_s27 + $0xb0] sm:$0xff] }
  0x3e   : > { %4960 = vst [vmem:[#allocation15_spill] sm:$0xff] %v3630_v59  ;;  %v3636_v4 = vsel %vm476_vm0, %v500_v55, %v501_v56  ;;  %v3639_v6 = vsel %vm476_vm0, %v501_v56, 0.0  ;;  %v683_v7 = vrot.slane %v3630_v59, 1  ;;  %v427_v14 = vsel %vm363_vm6, %v331_v35, %v395_v57 }
  0x3f   : > { %4961 = vst [vmem:[#allocation16_spill] sm:$0xff] %v3636_v4  ;;  %v684_v15 = vrot.slane %v3636_v4, 1  ;;  %v686_v16 = vrot.slane %v3639_v6, 1  ;;  %v428_v27 = vsel %vm364_vm7, %v332_v36, %v396_v58  ;;  %v503_v28 = vrot.slane %v427_v14, 7 }
  0x40   : > { %v504_v29 = vrot.slane %v428_v27, 7  ;;  %vm365_vm8 = vcmp.gt.f32.partialorder %v333_v63, 0.0  ;;  %vm366_vm9 = vcmp.gt.f32.partialorder %v334_v0, 0.0  ;;  %v397_v30 = vmul.f32 0.01, %v333_v63 }
  0x41   : > { %v685_v31 = vsel %vm642_vm1, %v683_v7, %v684_v15  ;;  %v687_v33 = vsel %vm642_vm1, %v684_v15, %v686_v16  ;;  %v3647_v37 = vsel %vm476_vm0, 0.0, %v503_v28  ;;  %v398_v35 = vmul.f32 0.01, %v334_v0 }
  0x42   : > { %4962 = vst [vmem:[#allocation17_spill] sm:$0xff] %v3647_v37  ;;  %v3650_v39 = vpack.i.bf16 %v687_v33, %v685_v31  ;;  %v3653_v40 = vsel %vm476_vm0, %v503_v28, %v504_v29  ;;  %v3656_v36 = vsel %vm476_vm0, %v504_v29, 0.0  ;;  %v688_v42 = vrot.slane %v3647_v37, 1 }
  0x43   : > { %4964 = vst [vmem:[#allocation19_spill] sm:$0xff] %v3653_v40  ;;  %v689_v55 = vrot.slane %v3653_v40, 1  ;;  %v691_v56 = vrot.slane %v3656_v36, 1  ;;  %v429_v57 = vsel %vm365_vm8, %v333_v63, %v397_v30  ;;  %v430_v58 = vsel %vm366_vm9, %v334_v0, %v398_v35 }
  0x44   : > { %4963 = vst [vmem:[#allocation18_spill] sm:$0xff] %v3650_v39  ;;  %2740 = vrot.lane.b32.xlu0 %v3650_v39, %s3353_s28  ;;  %v506_v7 = vrot.slane %v429_v57, 7  ;;  %v507_v14 = vrot.slane %v430_v58, 7  ;;  %v297_v15 = vmul.f32 %v3413_v5, %v258_v38  ;;  %v335_v16 = vadd.f32 %v3421_v10, %v296_v3 }
  0x45   : > { %v690_v27 = vsel %vm642_vm1, %v688_v42, %v689_v55  ;;  %v692_v28 = vsel %vm642_vm1, %v689_v55, %v691_v56  ;;  %v298_v29 = vmul.f32 %v3413_v5, %v259_v47  ;;  %v299_v31 = vmul.f32 %v3413_v5, %v260_v51 }
  0x46   : > { %v3673_v63 = vpack.i.bf16 %v692_v28, %v690_v27  ;;  %v3676_v0 = vsel %vm476_vm0, %v506_v7, %v507_v14  ;;  %v3679_v30 = vsel %vm476_vm0, 0.0, %v506_v7  ;;  %v3682_v3 = vsel %vm476_vm0, %v507_v14, 0.0  ;;  %v261_v7 = vld [vmem:[%s3427_s27 + $0xc0] sm:$0xff]  ;;  %v262_v14 = vld [vmem:[%s3427_s27 + $0xc8] sm:$0xff]  ;;  %v263_v27 = vld [vmem:[%s3427_s27 + $0xd0] sm:$0xff] }
  0x47   : > { %4966 = vst [vmem:[#allocation21_spill] sm:$0xff] %v3676_v0  ;;  %4967 = vst [vmem:[#allocation22_spill] sm:$0xff] %v3679_v30  ;;  %v693_v33 = vrot.slane %v3679_v30, 1  ;;  %v694_v35 = vrot.slane %v3676_v0, 1  ;;  %v696_v38 = vrot.slane %v3682_v3, 1  ;;  %v336_v42 = vadd.f32 %v3421_v10, %v297_v15 }
  0x48   : > { %4965 = vst [vmem:[#allocation20_spill] sm:$0xff] %v3673_v63  ;;  %2745 = vrot.lane.b32.xlu1 %v3673_v63, %s3353_s28  ;;  %vm367_vm10 = vcmp.gt.f32.partialorder %v335_v16, 0.0  ;;  %v399_v47 = vmul.f32 0.01, %v335_v16  ;;  %v337_v51 = vadd.f32 %v3421_v10, %v298_v29  ;;  %v338_v55 = vadd.f32 %v3421_v10, %v299_v31 }
  0x49   : > { %v695_v56 = vsel %vm642_vm1, %v693_v33, %v694_v35  ;;  %v697_v57 = vsel %vm642_vm1, %v694_v35, %v696_v38  ;;  %vm368_vm11 = vcmp.gt.f32.partialorder %v336_v42, 0.0  ;;  %v400_v58 = vmul.f32 0.01, %v336_v42 }
  0x4a   : > { %v3697_v15 = vpack.i.bf16 %v697_v57, %v695_v56  ;;  %v431_v28 = vsel %vm367_vm10, %v335_v16, %v399_v47  ;;  %vm369_vm12 = vcmp.gt.f32.partialorder %v337_v51, 0.0  ;;  %vm370_vm13 = vcmp.gt.f32.partialorder %v338_v55, 0.0 }
  0x4b   : > { %v432_v2 = vsel %vm368_vm11, %v336_v42, %v400_v58  ;;  %v509_v1 = vrot.slane %v431_v28, 7  ;;  %v401_v29 = vmul.f32 0.01, %v337_v51  ;;  %v402_v63 = vmul.f32 0.01, %v338_v55 }
  0x4c   : > { %4968 = vst [vmem:[#allocation23_spill] sm:$0xff] %v3697_v15  ;;  %2750 = vrot.lane.b32.xlu0 %v3697_v15, %s3353_s28  ;;  %v510_v31 = vrot.slane %v432_v2, 7  ;;  %v300_v33 = vmul.f32 %v3413_v5, %v261_v7  ;;  %v301_v35 = vmul.f32 %v3413_v5, %v262_v14  ;;  %v302_v38 = vmul.f32 %v3413_v5, %v263_v27 }
  0x4d   : > { %v3706_v56 = vsel %vm476_vm0, 0.0, %v509_v1  ;;  %v433_v16 = vsel %vm369_vm12, %v337_v51, %v401_v29  ;;  %v434_v47 = vsel %vm370_vm13, %v338_v55, %v402_v63  ;;  %v303_v42 = vmul.f32 %v3413_v5, %v264_v18 }
  0x4e   : > { %4969 = vst [vmem:[#allocation24_spill] sm:$0xff] %v3706_v56  ;;  %v3710_v57 = vsel %vm476_vm0, %v509_v1, %v510_v31  ;;  %v3713_v58 = vsel %vm476_vm0, %v510_v31, 0.0  ;;  %v698_v2 = vrot.slane %v3706_v56, 1  ;;  %v512_v7 = vrot.slane %v433_v16, 7 }
  0x4f   : > { %4970 = vst [vmem:[#allocation25_spill] sm:$0xff] %v3710_v57  ;;  %v699_v14 = vrot.slane %v3710_v57, 1  ;;  %v701_v27 = vrot.slane %v3713_v58, 1  ;;  %v513_v28 = vrot.slane %v434_v47, 7  ;;  %v339_v51 = vadd.f32 %v3421_v10, %v300_v33 }
  0x50   : > { %v3720_v63 = vsel %vm476_vm0, 0.0, %v512_v7  ;;  %v340_v1 = vadd.f32 %v3421_v10, %v301_v35  ;;  %v341_v18 = vadd.f32 %v3421_v10, %v302_v38  ;;  %v342_v55 = vadd.f32 %v3421_v10, %v303_v42  ;;  %v265_v42 = vld [vmem:[%s3427_s27 + $0xe0] sm:$0xff] }
  0x51   : > { %4971 = vst [vmem:[#allocation26_spill] sm:$0xff] %v3720_v63  ;;  %v700_v29 = vsel %vm642_vm1, %v698_v2, %v699_v14  ;;  %v702_v31 = vsel %vm642_vm1, %v699_v14, %v701_v27  ;;  %v3728_v16 = vsel %vm476_vm0, %v512_v7, %v513_v28  ;;  %v3731_v47 = vsel %vm476_vm0, %v513_v28, 0.0  ;;  %v266_v28 = vld [vmem:[%s3427_s27 + $0xe8] sm:$0xff] }
  0x52   : > { %4972 = vst [vmem:[#allocation27_spill] sm:$0xff] %v3728_v16  ;;  %v3733_v33 = vpack.i.bf16 %v702_v31, %v700_v29  ;;  %v703_v15 = vrot.slane %v3720_v63, 1  ;;  %v704_v35 = vrot.slane %v3728_v16, 1  ;;  %v706_v38 = vrot.slane %v3731_v47, 1 }
  0x53   : > { %vm371_vm14 = vcmp.gt.f32.partialorder %v339_v51, 0.0  ;;  %vm372_vm15 = vcmp.gt.f32.partialorder %v340_v1, 0.0  ;;  %v403_v2 = vmul.f32 0.01, %v339_v51  ;;  %v404_v14 = vmul.f32 0.01, %v340_v1 }
  0x54   : > { %4973 = vst [vmem:[#allocation28_spill] sm:$0xff] %v3733_v33  ;;  %2755 = vrot.lane.b32.xlu1 %v3733_v33, %s3353_s28  ;;  %v705_v7 = vsel %vm642_vm1, %v703_v15, %v704_v35  ;;  %v707_v27 = vsel %vm642_vm1, %v704_v35, %v706_v38  ;;  %vm373_vm3 = vcmp.gt.f32.partialorder %v341_v18, 0.0  ;;  %vm374_vm4 = vcmp.gt.f32.partialorder %v342_v55, 0.0 }
  0x55   : > { %v3744_v29 = vpack.i.bf16 %v707_v27, %v705_v7  ;;  %v435_v31 = vsel %vm371_vm14, %v339_v51, %v403_v2  ;;  %v436_v39 = vsel %vm372_vm15, %v340_v1, %v404_v14  ;;  %v405_v50 = vmul.f32 0.01, %v341_v18 }
  0x56   : > { %v515_v9 = vrot.slane %v435_v31, 7  ;;  %v516_v43 = vrot.slane %v436_v39, 7  ;;  %v406_v11 = vmul.f32 0.01, %v342_v55  ;;  %v304_v41 = vmul.f32 %v3413_v5, %v265_v42 }
  0x57   : > { %4974 = vst [vmem:[#allocation29_spill] sm:$0xff] %v3744_v29  ;;  %2760 = vrot.lane.b32.xlu0 %v3744_v29, %s3353_s28  ;;  %v437_v33 = vsel %vm373_vm3, %v341_v18, %v405_v50  ;;  %v305_v15 = vmul.f32 %v3413_v5, %v266_v28  ;;  %v3752_v35 = vpack.i.bf16 %v3455_v32, %v3435_v17  ;;  %v833_v17 = vrot.slane %v3470_v54, 2 }
  0x58   : > { %v3755_v38 = vsel %vm476_vm0, %v515_v9, %v516_v43  ;;  %v3758_v51 = vsel %vm476_vm0, 0.0, %v515_v9  ;;  %v3761_v39 = vsel %vm476_vm0, %v516_v43, 0.0  ;;  %v438_v1 = vsel %vm374_vm4, %v342_v55, %v406_v11 }
  0x59   : > { %4975 = vst [vmem:[#allocation30_spill] sm:$0xff] %v3752_v35  ;;  %4976 = vst [vmem:[#allocation31_spill] sm:$0xff] %v3755_v38  ;;  %v708_v42 = vrot.slane %v3758_v51, 1  ;;  %v709_v50 = vrot.slane %v3755_v38, 1  ;;  %v711_v5 = vrot.slane %v3761_v39, 1  ;;  %v518_v18 = vrot.slane %v437_v33, 7 }
  0x5a   : > { %4977 = vst [vmem:[#allocation32_spill] sm:$0xff] %v3758_v51  ;;  %v519_v32 = vrot.slane %v438_v1, 7  ;;  %v343_v2 = vadd.f32 %v3421_v10, %v304_v41  ;;  %v344_v9 = vadd.f32 %v3421_v10, %v305_v15  ;;  %v825_v55 = vrot.slane %v3480_v61, 2 }
  0x5b   : > { %v710_v14 = vsel %vm642_vm1, %v708_v42, %v709_v50  ;;  %v712_v43 = vsel %vm642_vm1, %v709_v50, %v711_v5  ;;  %v3773_v11 = vsel %vm476_vm0, 0.0, %v518_v18  ;;  %v826_v15 = vrot.slane %v3477_v60, 2 }
  0x5c   : > { %4978 = vst [vmem:[#allocation33_spill] sm:$0xff] %v3773_v11  ;;  %v3776_v7 = vpack.i.bf16 %v712_v43, %v710_v14  ;;  %v3779_v33 = vsel %vm476_vm0, %v518_v18, %v519_v32  ;;  %v3782_v54 = vsel %vm476_vm0, %v519_v32, 0.0  ;;  %v713_v41 = vrot.slane %v3773_v11, 1 }
  0x5d   : > { %4980 = vst [vmem:[#allocation35_spill] sm:$0xff] %v3779_v33  ;;  %v714_v10 = vrot.slane %v3779_v33, 1  ;;  %v716_v27 = vrot.slane %v3782_v54, 1  ;;  %vm375_vm5 = vcmp.gt.f32.partialorder %v343_v2, 0.0  ;;  %vm376_vm6 = vcmp.gt.f32.partialorder %v344_v9, 0.0 }
  0x5e   : > { %4979 = vst [vmem:[#allocation34_spill] sm:$0xff] %v3776_v7  ;;  %2765 = vrot.lane.b32.xlu1 %v3776_v7, %s3353_s28  ;;  %v407_v28 = vmul.f32 0.01, %v343_v2  ;;  %v408_v31 = vmul.f32 0.01, %v344_v9  ;;  %v828_v1 = vrot.slane %v3483_v62, 2  ;;  %v827_v24 = vsel %vm819_vm2, %v825_v55, %v826_v15 }
  0x5f   : > { %v715_v42 = vsel %vm642_vm1, %v713_v41, %v714_v10  ;;  %v717_v50 = vsel %vm642_vm1, %v714_v10, %v716_v27  ;;  %v830_v5 = vrot.slane %v3467_v53, 2  ;;  %v831_v18 = vrot.slane %v3464_v52, 2 }
  0x60   : > { %v3795_v32 = vpack.i.bf16 %v717_v50, %v715_v42  ;;  %v439_v14 = vsel %vm375_vm5, %v343_v2, %v407_v28  ;;  %v440_v43 = vsel %vm376_vm6, %v344_v9, %v408_v31  ;;  %v829_v62 = vsel %vm819_vm2, %v826_v15, %v828_v1 }
  0x61   : > { %v521_v29 = vrot.slane %v439_v14, 7  ;;  %v522_v7 = vrot.slane %v440_v43, 7  ;;  %v832_v41 = vsel %vm819_vm2, %v830_v5, %v831_v18  ;;  %v834_v10 = vsel %vm819_vm2, %v831_v18, %v833_v17 }
  0x62   : > { %4981 = vst [vmem:[#allocation36_spill] sm:$0xff] %v3795_v32  ;;  %2770 = vrot.lane.b32.xlu0 %v3795_v32, %s3353_s28  ;;  %v835_v9 = vrot.slane %v3501_v19, 2  ;;  %v836_v15 = vrot.slane %v3509_v25, 2  ;;  %v838_v17 = vrot.slane %v3512_v26, 2  ;;  %v840_v1 = vrot.slane %v3530_v44, 2 }
  0x63   : > { %v3804_v27 = vsel %vm476_vm0, %v521_v29, %v522_v7  ;;  %v3807_v42 = vsel %vm476_vm0, 0.0, %v521_v29  ;;  %v3810_v2 = vsel %vm476_vm0, %v522_v7, 0.0  ;;  %v841_v29 = vrot.slane %v3537_v48, 2 }
  0x64   : > { %4982 = vst [vmem:[#allocation37_spill] sm:$0xff] %v3804_v27  ;;  %4983 = vst [vmem:[#allocation38_spill] sm:$0xff] %v3807_v42  ;;  %v718_v28 = vrot.slane %v3807_v42, 1  ;;  %v719_v55 = vrot.slane %v3804_v27, 1  ;;  %v721_v31 = vrot.slane %v3810_v2, 1  ;;  %v843_v50 = vrot.slane %v3540_v49, 2 }
  0x65   : > { %v3825_v18 = vpack.i.bf16 %v834_v10, %v832_v41  ;;  %v3829_v43 = vpack.i.bf16 %v829_v62, %v827_v24  ;;  %v842_v26 = vsel %vm819_vm2, %v840_v1, %v841_v29  ;;  %v845_v49 = vrot.slane %v3554_v13, 2 }
  0x66   : > { %v720_v7 = vsel %vm642_vm1, %v718_v28, %v719_v55  ;;  %v722_v5 = vsel %vm642_vm1, %v719_v55, %v721_v31  ;;  %2780 = vrot.lane.b32.xlu0 %v3752_v35, %s3354_s29  ;;  %v844_v32 = vsel %vm819_vm2, %v841_v29, %v843_v50  ;;  %v846_v28 = vrot.slane %v3561_v21, 2 }
  0x67   : > { %v3827_v14 = vpack.i.bf16 %v722_v5, %v720_v7  ;;  %v850_v55 = vrot.slane %v3571_v34, 2  ;;  %v851_v31 = vrot.slane %v3582_v45, 2  ;;  %v837_v41 = vsel %vm819_vm2, %v835_v9, %v836_v15 }
  0x68   : > { %v839_v24 = vsel %vm819_vm2, %v836_v15, %v838_v17  ;;  %v848_v62 = vrot.slane %v3564_v22, 2  ;;  %v853_v10 = vrot.slane %v3585_v46, 2  ;;  %v3845_v1 = vpack.i.bf16 %v844_v32, %v842_v26 }
  0x69   : > { %2775 = vrot.lane.b32.xlu1 %v3827_v14, %s3353_s28  ;;  %v860_v29 = vrot.slane %v3630_v59, 2  ;;  %v852_v50 = vsel %vm819_vm2, %v850_v55, %v851_v31  ;;  %v861_v5 = vrot.slane %v3636_v4, 2  ;;  %v3851_v9 = vpack.i.bf16 %v839_v24, %v837_v41 }
  0x6a   : > { %2790 = vrot.lane.b32.xlu0 %v3825_v18, %s3354_s29  ;;  %v854_v7 = vsel %vm819_vm2, %v851_v31, %v853_v10  ;;  %v847_v15 = vsel %vm819_vm2, %v845_v49, %v846_v28  ;;  %v863_v22 = vrot.slane %v3639_v6, 2  ;;  %v849_v46 = vsel %vm819_vm2, %v846_v28, %v848_v62 }
  0x6b   : > { %v855_v32 = vrot.slane %v3601_v12, 2  ;;  %v856_v17 = vrot.slane %v3607_v20, 2  ;;  %v858_v26 = vrot.slane %v3610_v23, 2  ;;  %v3863_v55 = vpack.i.bf16 %v854_v7, %v852_v50 }
  0x6c   : > { %v862_v49 = vsel %vm819_vm2, %v860_v29, %v861_v5  ;;  %v864_v6 = vsel %vm819_vm2, %v861_v5, %v863_v22  ;;  %v870_v31 = vrot.slane %v3679_v30, 2  ;;  %v871_v41 = vrot.slane %v3676_v0, 2 }
  0x6d   : > { %2785 = vrot.lane.b32.xlu1 %v3829_v43, %s3354_s29  ;;  %v873_v28 = vrot.slane %v3682_v3, 2  ;;  %v3870_v24 = vpack.i.bf16 %v849_v46, %v847_v15  ;;  %v857_v23 = vsel %vm819_vm2, %v855_v32, %v856_v17  ;;  %v859_v62 = vsel %vm819_vm2, %v856_v17, %v858_v26 }
  0x6e   : > { %2800 = vrot.lane.b32.xlu0 %v3845_v1, %s3354_s29  ;;  %v865_v10 = vrot.slane %v3647_v37, 2  ;;  %v866_v29 = vrot.slane %v3653_v40, 2  ;;  %v3880_v50 = vpack.i.bf16 %v864_v6, %v862_v49  ;;  %v868_v3 = vrot.slane %v3656_v36, 2 }
  0x6f   : > { %v880_v7 = vrot.slane %v3720_v63, 2  ;;  %v881_v5 = vrot.slane %v3728_v16, 2  ;;  %v872_v15 = vsel %vm819_vm2, %v870_v31, %v871_v41  ;;  %v874_v22 = vsel %vm819_vm2, %v871_v41, %v873_v28 }
  0x70   : > { %v883_v46 = vrot.slane %v3731_v47, 2  ;;  %v3890_v32 = vpack.i.bf16 %v859_v62, %v857_v23  ;;  %v875_v17 = vrot.slane %v3706_v56, 2  ;;  %v876_v26 = vrot.slane %v3710_v57, 2 }
  0x71   : > { %2795 = vrot.lane.b32.xlu1 %v3851_v9, %s3354_s29  ;;  %v878_v36 = vrot.slane %v3713_v58, 2  ;;  %v867_v49 = vsel %vm819_vm2, %v865_v10, %v866_v29  ;;  %v869_v6 = vsel %vm819_vm2, %v866_v29, %v868_v3  ;;  %v3899_v31 = vpack.i.bf16 %v874_v22, %v872_v15 }
  0x72   : > { %2810 = vrot.lane.b32.xlu0 %v3863_v55, %s3354_s29  ;;  %v882_v47 = vsel %vm819_vm2, %v880_v7, %v881_v5  ;;  %v884_v41 = vsel %vm819_vm2, %v881_v5, %v883_v46  ;;  %v890_v28 = vrot.slane %v3773_v11, 2  ;;  %v891_v23 = vrot.slane %v3779_v33, 2 }
  0x73   : > { %v893_v62 = vrot.slane %v3782_v54, 2  ;;  %v885_v58 = vrot.slane %v3758_v51, 2  ;;  %v886_v35 = vrot.slane %v3755_v38, 2  ;;  %v3910_v10 = vpack.i.bf16 %v869_v6, %v867_v49 }
  0x74   : > { %v877_v29 = vsel %vm819_vm2, %v875_v17, %v876_v26  ;;  %v879_v3 = vsel %vm819_vm2, %v876_v26, %v878_v36  ;;  %v3916_v7 = vpack.i.bf16 %v884_v41, %v882_v47  ;;  %v888_v54 = vrot.slane %v3761_v39, 2 }
  0x75   : > { %2805 = vrot.lane.b32.xlu1 %v3870_v24, %s3354_s29  ;;  %v892_v5 = vsel %vm819_vm2, %v890_v28, %v891_v23  ;;  %v894_v15 = vsel %vm819_vm2, %v891_v23, %v893_v62  ;;  %v3921_v22 = vpack.i.bf16 %v879_v3, %v877_v29  ;;  %v887_v46 = vsel %vm819_vm2, %v885_v58, %v886_v35 }
  0x76   : > { %2820 = vrot.lane.b32.xlu0 %v3880_v50, %s3354_s29  ;;  %v895_v17 = vrot.slane %v3807_v42, 2  ;;  %v896_v26 = vrot.slane %v3804_v27, 2  ;;  %v898_v36 = vrot.slane %v3810_v2, 2  ;;  %v889_v39 = vsel %vm819_vm2, %v886_v35, %v888_v54 }
  0x77   : > { %v3932_v49 = vpack.i.bf16 %v894_v15, %v892_v5  ;;  %v3936_v6 = vpack.i.bf16 %v889_v39, %v887_v46  ;;  %v2859_v2 = vpack.i.bf16 %v3477_v60, %v3480_v61  ;;  %v2869_v35 = vpack.i.bf16 %v3509_v25, %v3501_v19  ;;  %v4984_v39 = vld [vmem:[#allocation5_spill] sm:$0xff] }
  0x78   : > { %v897_v47 = vsel %vm819_vm2, %v895_v17, %v896_v26  ;;  %v899_v41 = vsel %vm819_vm2, %v896_v26, %v898_v36  ;;  %v2864_v23 = vpack.i.bf16 %v3464_v52, %v3467_v53  ;;  %v2879_v62 = vpack.i.bf16 %v3561_v21, %v3554_v13  ;;  %v3339_v17 = vld [vmem:[%s4872_s3 + $0x10] ss:$0 sps:$4 sm:$0x33]   ;;  %v3340_v36 = vld [vmem:[%s4872_s3 + $0x8] sm:$0xff]  }
  0x79   : > { %2815 = vrot.lane.b32.xlu1 %v3890_v32, %s3354_s29  ;;  %v3944_v28 = vpack.i.bf16 %v899_v41, %v897_v47  ;;  %v2874_v58 = vpack.i.bf16 %v3537_v48, %v3530_v44  ;;  %v3964_v29 = vpack.i.bf16 %v3607_v20, %v3601_v12  ;;  %v3969_v3 = vpack.i.bf16 %v3582_v45, %v3571_v34  ;;  %v3341_v47 = vld [vmem:[%s4872_s3] sm:$0xff]  }
  0x7a   : > { %2830 = vrot.lane.b32.xlu0 %v3899_v31, %s3354_s29  ;;  %v3975_v54 = vpack.i.bf16 %v3653_v40, %v3647_v37  ;;  %v3981_v5 = vpack.i.bf16 %v3636_v4, %v3630_v59  ;;  %v3987_v15 = vpack.i.bf16 %v3710_v57, %v3706_v56  ;;  %v3993_v46 = vpack.i.bf16 %v3676_v0, %v3679_v30  ;;  %v4985_v41 = vld [vmem:[#allocation6_spill] sm:$0xff]  ;;  %v5012_v59 = vld [vmem:[#allocation29_spill] sm:$0xff] }
  0x7b   : > { %vm1933_vm7 = vcmask 1041408   ;;  %vm1584_vm10 = vcmask 31744   ;;  %vm1617_vm11 = vcmask 64512   ;;  %vm1650_vm12 = vcmask 97280  }
  0x7c   : > { %2680 = vmatprep.subr.msk.bf16.mxu0 %vm1933_vm7, %v3339_v17  ;;  %v1935_v26 = vsel %vm1933_vm7, %v3339_v17, 0  ;;  %2681 = vmatprep.subr.msk.bf16.mxu1 %vm1933_vm7, %v3339_v17  ;;  %vm1683_vm13 = vcmask 130048   ;;  %vm1716_vm14 = vcmask 162816   ;;  %vm1749_vm15 = vcmask 195584  }
  0x7d   : > { %2825 = vrot.lane.b32.xlu1 %v3910_v10, %s3354_s29  ;;  %2637 = vmatpush3.bf16.msra.mxu0 %v1935_v26  ;;  %vm1782_vm3 = vcmask 228352   ;;  %vm1815_vm4 = vcmask 261120   ;;  %vm1884_vm5 = vcmask 293888  }
  0x7e   : > { %2840 = vrot.lane.b32.xlu0 %v3916_v7, %s3354_s29  ;;  %2677 = vmatpush3.bf16.msra.mxu1 %v1935_v26 }
  0x7f   : > { %2638 = vmatprep.subr.bf16.mxu0 %v3340_v36  ;;  %2675 = vmatprep.subr.bf16.mxu1 %v3340_v36 }
  0x81   : > { %2835 = vrot.lane.b32.xlu1 %v3921_v22, %s3354_s29  ;;  %2639 = vmatpush3.bf16.msra.mxu0 %v3340_v36 }
  0x82   : > { %2850 = vrot.lane.b32.xlu0 %v3932_v49, %s3354_s29  ;;  %2678 = vmatpush3.bf16.msra.mxu1 %v3340_v36  ;;  %v4987_v36 = vld [vmem:[#allocation9_spill] sm:$0xff] }
  0x83   : > { %2640 = vmatprep.subr.bf16.mxu0 %v3341_v47  ;;  %2676 = vmatprep.subr.bf16.mxu1 %v3341_v47 }
  0x85   : > { %2845 = vrot.lane.b32.xlu1 %v3936_v6, %s3354_s29  ;;  %2641 = vmatpush3.bf16.msra.mxu0 %v3341_v47 }
  0x86   : > { %2860 = vrot.lane.b32.xlu0 %v2859_v2, %s3355_s30  ;;  %v4020_v2 = vpop.permute.xlu0 %2700  ;;  %2679 = vmatpush3.bf16.msra.mxu1 %v3341_v47 }
  0x89   : > { %2855 = vrot.lane.b32.xlu1 %v3944_v28, %s3354_s29 }
  0x8a   : > { %2870 = vrot.lane.b32.xlu0 %v2869_v35, %s3355_s30 }
  0x8d   : > { %2865 = vrot.lane.b32.xlu1 %v2864_v23, %s3355_s30 }
  0x8e   : > { %2880 = vrot.lane.b32.xlu0 %v2879_v62, %s3355_s30 }
  0x91   : > { %2875 = vrot.lane.b32.xlu1 %v2874_v58, %s3355_s30 }
  0x92   : > { %2890 = vrot.lane.b32.xlu0 %v3964_v29, %s3355_s30 }
  0x95   : > { %2885 = vrot.lane.b32.xlu1 %v3969_v3, %s3355_s30 }
  0x96   : > { %2900 = vrot.lane.b32.xlu0 %v3975_v54, %s3355_s30 }
  0x99   : > { %2895 = vrot.lane.b32.xlu1 %v3981_v5, %s3355_s30 }
  0x9a   : > { %2910 = vrot.lane.b32.xlu0 %v3987_v15, %s3355_s30 }
  0x9d   : > { %2905 = vrot.lane.b32.xlu1 %v3993_v46, %s3355_s30 }
  0x9e   : > { %2920 = vrot.lane.b32.xlu0 %v3491_v8, %s3356_s8 }
  0xa1   : > { %2915 = vrot.lane.b32.xlu1 %v4984_v39, %s3356_s8 }
  0xa2   : > { %2930 = vrot.lane.b32.xlu0 %v3825_v18, %s3357_s11 }
  0xa5   : > { %2925 = vrot.lane.b32.xlu1 %v3829_v43, %s3357_s11  ;;  %v4026_v43 = vpop.permute.xlu0 %2705 }
  0xa6   : > { %2940 = vrot.lane.b32.xlu0 %v2869_v35, %s3358_s14  ;;  %v4030_v35 = vpop.permute.xlu1 %2710 }
  0xa9   : > { %2935 = vrot.lane.b32.xlu1 %v2864_v23, %s3358_s14  ;;  %v4986_v23 = vld [vmem:[#allocation7_spill] sm:$0xff] }
  0xaa   : > { %2950 = vrot.lane.b32.xlu0 %v4985_v41, %s3359_s15  ;;  %v4040_v17 = vpop.permute.xlu1 %2715 }
  0xad   : > { %2945 = vrot.lane.b32.xlu1 %v3491_v8, %s3359_s15  ;;  %v4038_v8 = vpop.permute.xlu0 %2720 }
  0xae   : > { %2960 = vrot.lane.b32.xlu0 %v3851_v9, %s3360_s16  ;;  %v4048_v26 = vpop.permute.xlu1 %2725 }
  0xb1   : > { %2955 = vrot.lane.b32.xlu1 %v3825_v18, %s3360_s16  ;;  %v4045_v18 = vpop.permute.xlu0 %2730 }
  0xb2   : > { %2970 = vrot.lane.b32.xlu0 %v4986_v23, %s3356_s8 }
  0xb5   : > { %2965 = vrot.lane.b32.xlu1 %v4985_v41, %s3356_s8 }
  0xb6   : > { %2980 = vrot.lane.b32.xlu0 %v3845_v1, %s3357_s11  ;;  %v4056_v39 = vpop.permute.xlu0 %2740 }
  0xb7   : > { %4988 = vst [vmem:[#allocation5_spill] sm:$0xff] %v4056_v39 }
  0xb9   : > { %2975 = vrot.lane.b32.xlu1 %v3851_v9, %s3357_s11  ;;  %v4058_v9 = vpop.permute.xlu1 %2735 }
  0xba   : > { %2990 = vrot.lane.b32.xlu0 %v2879_v62, %s3358_s14  ;;  %v4989_v62 = vld [vmem:[#allocation11_spill] sm:$0xff] }
  0xbd   : > { %2985 = vrot.lane.b32.xlu1 %v2874_v58, %s3358_s14  ;;  %v4068_v47 = vpop.permute.xlu1 %2745 }
  0xbe   : > { %3000 = vrot.lane.b32.xlu0 %v4987_v36, %s3359_s15  ;;  %v4064_v58 = vpop.permute.xlu0 %2750  ;;  %4991 = vst [vmem:[#allocation7_spill] sm:$0xff] %v4068_v47  ;;  %v5017_v47 = vld [vmem:[#allocation3_spill] sm:$0xff] }
  0xbf   : > { %4990 = vst [vmem:[#allocation6_spill] sm:$0xff] %v4064_v58  ;;  %v3342_v58 = vld [vmem:[%s4870_s1] ss:$0 sm:$0xff] }
  0xc1   : > { %2995 = vrot.lane.b32.xlu1 %v4986_v23, %s3359_s15  ;;  %v4994_v23 = vld [vmem:[#allocation14_spill] sm:$0xff] }
  0xc2   : > { %3010 = vrot.lane.b32.xlu0 %v3870_v24, %s3360_s16 }
  0xc5   : > { %3005 = vrot.lane.b32.xlu1 %v3845_v1, %s3360_s16 }
  0xc6   : > { %3020 = vrot.lane.b32.xlu0 %v4989_v62, %s3356_s8  ;;  %v4078_v41 = vpop.permute.xlu1 %2755 }
  0xc7   : > { %4993 = vst [vmem:[#allocation11_spill] sm:$0xff] %v4078_v41 }
  0xc9   : > { %3015 = vrot.lane.b32.xlu1 %v4987_v36, %s3356_s8  ;;  %v4076_v1 = vpop.permute.xlu0 %2760 }
  0xca   : > { %3030 = vrot.lane.b32.xlu0 %v3863_v55, %s3357_s11  ;;  %4992 = vst [vmem:[#allocation9_spill] sm:$0xff] %v4076_v1 }
  0xcd   : > { %3025 = vrot.lane.b32.xlu1 %v3870_v24, %s3357_s11 }
  0xce   : > { %3040 = vrot.lane.b32.xlu0 %v3964_v29, %s3358_s14  ;;  %v4997_v29 = vld [vmem:[#allocation18_spill] sm:$0xff] }
  0xd0   : > { %v4088_v56 = vpop.permute.xlu1 %2765 }
  0xd1   : > { %3035 = vrot.lane.b32.xlu1 %v3969_v3, %s3358_s14  ;;  %4996 = vst [vmem:[#allocation39_spill] sm:$0xff] %v4088_v56 }
  0xd2   : > { %3050 = vrot.lane.b32.xlu0 %v4994_v23, %s3359_s15 }
  0xd4   : > { %v4084_v36 = vpop.permute.xlu0 %2770 }
  0xd5   : > { %4995 = vst [vmem:[#allocation14_spill] sm:$0xff] %v4084_v36  ;;  %3045 = vrot.lane.b32.xlu1 %v4989_v62, %s3359_s15 }
  0xd6   : > { %3060 = vrot.lane.b32.xlu0 %v3890_v32, %s3360_s16 }
  0xd8   : > { %v4092_v24 = vpop.permute.xlu0 %2780 }
  0xd9   : > { %3055 = vrot.lane.b32.xlu1 %v3863_v55, %s3360_s16 }
  0xda   : > { %3070 = vrot.lane.b32.xlu0 %v4997_v29, %s3356_s8 }
  0xdb   : > { %v4098_v3 = vpop.permute.xlu1 %2775 }
  0xdc   : > { %4998 = vst [vmem:[#allocation18_spill] sm:$0xff] %v4098_v3  ;;  %v4100_v1 = vpop.permute.xlu0 %2790 }
  0xdd   : > { %3065 = vrot.lane.b32.xlu1 %v4994_v23, %s3356_s8  ;;  %v4999_v23 = vld [vmem:[#allocation20_spill] sm:$0xff] }
  0xde   : > { %3080 = vrot.lane.b32.xlu0 %v3880_v50, %s3357_s11 }
  0xdf   : > { %v4106_v62 = vpop.permute.xlu1 %2785 }
  0xe0   : > { %v4108_v36 = vpop.permute.xlu0 %2800 }
  0xe1   : > { %3075 = vrot.lane.b32.xlu1 %v3890_v32, %s3357_s11 }
  0xe2   : > { %3090 = vrot.lane.b32.xlu0 %v3975_v54, %s3358_s14 }
  0xe3   : > { %v4114_v55 = vpop.permute.xlu1 %2795 }
  0xe4   : > { %v4116_v3 = vpop.permute.xlu0 %2810 }
  0xe5   : > { %3085 = vrot.lane.b32.xlu1 %v3981_v5, %s3358_s14  ;;  %v5002_v5 = vld [vmem:[#allocation23_spill] sm:$0xff] }
  0xe6   : > { %3100 = vrot.lane.b32.xlu0 %v4999_v23, %s3359_s15 }
  0xe7   : > { %v4122_v56 = vpop.permute.xlu1 %2805 }
  0xe8   : > { %v4124_v57 = vpop.permute.xlu0 %2820 }
  0xe9   : > { %5000 = vst [vmem:[#allocation20_spill] sm:$0xff] %v4124_v57  ;;  %3095 = vrot.lane.b32.xlu1 %v4997_v29, %s3359_s15  ;;  %v5016_v57 = vld [vmem:[#allocation2_spill] sm:$0xff] }
  0xea   : > { %3110 = vrot.lane.b32.xlu0 %v3910_v10, %s3360_s16 }
  0xeb   : > { %v4130_v32 = vpop.permute.xlu1 %2815 }
  0xec   : > { %v4132_v54 = vpop.permute.xlu0 %2830 }
  0xed   : > { %5001 = vst [vmem:[#allocation40_spill] sm:$0xff] %v4132_v54  ;;  %3105 = vrot.lane.b32.xlu1 %v3880_v50, %s3360_s16 }
  0xee   : > { %3120 = vrot.lane.b32.xlu0 %v5002_v5, %s3356_s8 }
  0xef   : > { %v4138_v30 = vpop.permute.xlu1 %2825 }
  0xf0   : > { %5003 = vst [vmem:[#allocation23_spill] sm:$0xff] %v4138_v30  ;;  %v4140_v0 = vpop.permute.xlu0 %2840  ;;  %v2702_v30 = vunpack.i.l.bf16 %v4020_v2 }
  0xf1   : > { %5004 = vst [vmem:[#allocation41_spill] sm:$0xff] %v4140_v0  ;;  %3115 = vrot.lane.b32.xlu1 %v4999_v23, %s3356_s8  ;;  %v5008_v23 = vld [vmem:[#allocation28_spill] sm:$0xff] }
  0xf2   : > { %3130 = vrot.lane.b32.xlu0 %v3899_v31, %s3357_s11 }
  0xf3   : > { %v4146_v29 = vpop.permute.xlu1 %2835 }
  0xf4   : > { %5005 = vst [vmem:[#allocation42_spill] sm:$0xff] %v4146_v29  ;;  %v4148_v54 = vpop.permute.xlu0 %2850 }
  0xf5   : > { %5006 = vst [vmem:[#allocation43_spill] sm:$0xff] %v4148_v54  ;;  %3125 = vrot.lane.b32.xlu1 %v3910_v10, %s3357_s11 }
  0xf6   : > { %3140 = vrot.lane.b32.xlu0 %v3987_v15, %s3358_s14 }
  0xf7   : > { %v4154_v50 = vpop.permute.xlu1 %2845 }
  0xf8   : > { %5007 = vst [vmem:[#allocation44_spill] sm:$0xff] %v4154_v50  ;;  %v4156_v0 = vpop.permute.xlu0 %2860  ;;  %v267_v50 = vld [vmem:[%s3427_s27 + $0xf0] sm:$0xff] }
  0xf9   : > { %3135 = vrot.lane.b32.xlu1 %v3993_v46, %s3358_s14  ;;  %v3164_v46 = vpack.i.bf16 %v3728_v16, %v3720_v63  ;;  %v306_v37 = vmul.f32 %v3342_v58, %v267_v50 }
  0xfa   : > { %3150 = vrot.lane.b32.xlu0 %v5008_v23, %s3359_s15 }
  0xfb   : > { %v4162_v29 = vpop.permute.xlu1 %2855 }
  0xfc   : > { %5009 = vst [vmem:[#allocation28_spill] sm:$0xff] %v4162_v29  ;;  %v4164_v54 = vpop.permute.xlu0 %2870  ;;  %v268_v29 = vld [vmem:[%s3427_s27 + $0xf8] sm:$0xff]  ;;  %s2527_s27 = sshll.u32 %s5069_s19, 1 }
  0xfd   : > { %3145 = vrot.lane.b32.xlu1 %v5002_v5, %s3359_s15 }
  0xfe   : > { %3160 = vrot.lane.b32.xlu0 %v3921_v22, %s3360_s16 }
  0xff   : > { %v4170_v10 = vpop.permute.xlu1 %2865 }
 0x100   : > { %v4172_v15 = vpop.permute.xlu0 %2880 }
 0x101   : > { %3155 = vrot.lane.b32.xlu1 %v3899_v31, %s3360_s16  ;;  %v307_v31 = vmul.f32 %v3342_v58, %v268_v29  ;;  %v3194_v29 = vpack.i.bf16 %v3755_v38, %v3758_v51 }
 0x102   : > { %3170 = vrot.lane.b32.xlu0 %v5008_v23, %s3356_s8  ;;  %v3343_v23 = vld [vmem:[%s4871_s2] ss:$0 sm:$0xff] }
 0x103   : > { %v4182_v41 = vpop.permute.xlu1 %2875  ;;  %v345_v40 = vadd.f32 %v3343_v23, %v306_v37  ;;  %v346_v4 = vadd.f32 %v3343_v23, %v307_v31  ;;  %v2703_v37 = vunpack.i.h.bf16 %v4020_v2  ;;  %v2708_v31 = vunpack.i.h.bf16 %v4026_v43 }
 0x104   : > { %v4184_v5 = vpop.permute.xlu0 %2890  ;;  %v2707_v23 = vunpack.i.l.bf16 %v4026_v43  ;;  %v2868_v43 = vunpack.i.h.bf16 %v4170_v10 }
 0x105   : > { %5010 = vst [vmem:[#allocation45_spill] sm:$0xff] %v4184_v5  ;;  %3165 = vrot.lane.b32.xlu1 %v3164_v46, %s3355_s30  ;;  %vm377_vm8 = vcmp.gt.f32.partialorder %v345_v40, 0.0  ;;  %vm378_vm9 = vcmp.gt.f32.partialorder %v346_v4, 0.0  ;;  %v1586_v2 = vsel %vm1584_vm10, %v5016_v57, %v2703_v37 }
 0x106   : > { %3180 = vrot.lane.b32.xlu0 %v3921_v22, %s3357_s11  ;;  %v409_v22 = vmul.f32 0.01, %v345_v40 }
 0x107   : > { %v4192_v63 = vpop.permute.xlu1 %2885 }
 0x108   : > { %v4194_v16 = vpop.permute.xlu0 %2900  ;;  %v441_v51 = vsel %vm377_vm8, %v345_v40, %v409_v22 }
 0x109   : > { %5011 = vst [vmem:[#allocation46_spill] sm:$0xff] %v4194_v16  ;;  %3175 = vrot.lane.b32.xlu1 %v5012_v59, %s3356_s8  ;;  %v410_v16 = vmul.f32 0.01, %v346_v4  ;;  %v524_v22 = vrot.slane %v441_v51, 7  ;;  %v4241_v51 = vpack.i.bf16 %v3779_v33, %v3773_v11  ;;  %v2867_v11 = vunpack.i.l.bf16 %v4170_v10 }
 0x10a   : > { %3190 = vrot.lane.b32.xlu0 %v3164_v46, %s3358_s14  ;;  %v2862_v33 = vunpack.i.l.bf16 %v4156_v0 }
 0x10b   : > { %v4202_v50 = vpop.permute.xlu1 %2895  ;;  %v442_v38 = vsel %vm378_vm9, %v346_v4, %v410_v16  ;;  %v1588_v4 = vsel %vm1584_vm10, %v3477_v60, %v2708_v31  ;;  %v1587_v16 = vsel %vm1584_vm10, %v3480_v61, %v2707_v23  ;;  %v2783_v60 = vunpack.i.h.bf16 %v4092_v24 }
 0x10c   : > { %5013 = vst [vmem:[#allocation29_spill] sm:$0xff] %v4202_v50  ;;  %v4204_v58 = vpop.permute.xlu0 %2910  ;;  %v525_v37 = vrot.slane %v442_v38, 7  ;;  %v2782_v31 = vunpack.i.l.bf16 %v4092_v24  ;;  %v2788_v61 = vunpack.i.h.bf16 %v4106_v62  ;;  %v2787_v38 = vunpack.i.l.bf16 %v4106_v62 }
 0x10d   : > { %5014 = vst [vmem:[#allocation47_spill] sm:$0xff] %v4204_v58  ;;  %3185 = vrot.lane.b32.xlu1 %v3916_v7, %s3357_s11  ;;  %v4253_v39 = vsel %vm476_vm0, 0.0, %v524_v22  ;;  %v2863_v62 = vunpack.i.h.bf16 %v4156_v0 }
 0x10e   : > { %3200 = vrot.lane.b32.xlu0 %v5012_v59, %s3359_s15  ;;  %v1585_v59 = vsel %vm1584_vm10, %v5017_v47, %v2702_v30  ;;  %v1620_v0 = vsel %vm1617_vm11, %v1587_v16, %v2787_v38  ;;  %v1621_v5 = vsel %vm1617_vm11, %v1588_v4, %v2788_v61 }
 0x10f   : > { %v4214_v46 = vpop.permute.xlu1 %2905  ;;  %v1618_v10 = vsel %vm1617_vm11, %v1585_v59, %v2782_v31  ;;  %v1653_v45 = vsel %vm1650_vm12, %v1620_v0, %v2867_v11  ;;  %v5019_v0 = vld [vmem:[#allocation36_spill] sm:$0xff] }
 0x110   : > { %5015 = vst [vmem:[#allocation48_spill] sm:$0xff] %v4214_v46  ;;  %v4218_v58 = vpop.permute.xlu0 %2920  ;;  %v5018_v46 = vld [vmem:[#allocation34_spill] sm:$0xff] }
 0x111   : > { %3195 = vrot.lane.b32.xlu1 %v3194_v29, %s3358_s14  ;;  %v2923_v12 = vunpack.i.h.bf16 %v4218_v58 }
 0x112   : > { %3210 = vrot.lane.b32.xlu0 %v3916_v7, %s3360_s16  ;;  %v4250_v7 = vpack.i.bf16 %v3804_v27, %v3807_v42  ;;  %v2922_v42 = vunpack.i.l.bf16 %v4218_v58  ;;  %v1619_v27 = vsel %vm1617_vm11, %v1586_v2, %v2783_v60  ;;  %v1654_v2 = vsel %vm1650_vm12, %v1621_v5, %v2868_v43 }
 0x113   : > { %v4229_v40 = vpop.permute.xlu1 %2915  ;;  %v1687_v16 = vsel %vm1683_vm13, %v1654_v2, %v2923_v12 }
 0x114   : > { %v2931_v30 = vpop.permute.xlu0 %2930  ;;  %v1686_v20 = vsel %vm1683_vm13, %v1653_v45, %v2922_v42  ;;  %v2918_v4 = vunpack.i.h.bf16 %v4229_v40  ;;  %v2917_v11 = vunpack.i.l.bf16 %v4229_v40 }
 0x115   : > { %3205 = vrot.lane.b32.xlu1 %v5018_v46, %s3359_s15  ;;  %v2933_v58 = vunpack.i.h.bf16 %v2931_v30  ;;  %v2932_v50 = vunpack.i.l.bf16 %v2931_v30 }
 0x116   : > { %3220 = vrot.lane.b32.xlu0 %v3194_v29, %s3355_s30  ;;  %v4258_v29 = vsel %vm476_vm0, %v524_v22, %v525_v37  ;;  %v4271_v22 = vsel %vm476_vm0, %v525_v37, 0.0  ;;  %v1652_v37 = vsel %vm1650_vm12, %v1619_v27, %v2863_v62 }
 0x117   : > { %v2926_v23 = vpop.permute.xlu1 %2925  ;;  %v1719_v27 = vsel %vm1716_vm14, %v1686_v20, %v2932_v50  ;;  %v1720_v45 = vsel %vm1716_vm14, %v1687_v16, %v2933_v58  ;;  %v1685_v20 = vsel %vm1683_vm13, %v1652_v37, %v2918_v4 }
 0x118   : > { %v2941_v24 = vpop.permute.xlu0 %2940  ;;  %v2928_v43 = vunpack.i.h.bf16 %v2926_v23 }
 0x119   : > { %3215 = vrot.lane.b32.xlu1 %v3936_v6, %s3360_s16  ;;  %v2943_v59 = vunpack.i.h.bf16 %v2941_v24  ;;  %v2942_v60 = vunpack.i.l.bf16 %v2941_v24 }
 0x11a   : > { %3230 = vrot.lane.b32.xlu0 %v5018_v46, %s3356_s8  ;;  %v1651_v46 = vsel %vm1650_vm12, %v1618_v10, %v2862_v33  ;;  %v2927_v33 = vunpack.i.l.bf16 %v2926_v23 }
 0x11b   : > { %v2936_v34 = vpop.permute.xlu1 %2935  ;;  %v1752_v38 = vsel %vm1749_vm15, %v1719_v27, %v2942_v60  ;;  %v1753_v24 = vsel %vm1749_vm15, %v1720_v45, %v2943_v59  ;;  %v1684_v23 = vsel %vm1683_vm13, %v1651_v46, %v2917_v11  ;;  %v1718_v59 = vsel %vm1716_vm14, %v1685_v20, %v2928_v43 }
 0x11c   : > { %v2951_v31 = vpop.permute.xlu0 %2950  ;;  %v2938_v12 = vunpack.i.h.bf16 %v2936_v34  ;;  %v2937_v61 = vunpack.i.l.bf16 %v2936_v34  ;;  %v1717_v58 = vsel %vm1716_vm14, %v1684_v23, %v2927_v33  ;;  %v1095_v43 = vrot.slane %v4258_v29, 1 }
 0x11d   : > { %3225 = vrot.lane.b32.xlu1 %v4241_v51, %s3355_s30  ;;  %v2953_v30 = vunpack.i.h.bf16 %v2951_v31  ;;  %v2952_v5 = vunpack.i.l.bf16 %v2951_v31  ;;  %v1097_v33 = vrot.slane %v4271_v22, 1 }
 0x11e   : > { %3240 = vrot.lane.b32.xlu0 %v3936_v6, %s3357_s11  ;;  %v1750_v46 = vsel %vm1749_vm15, %v1717_v58, %v2937_v61  ;;  %v1751_v37 = vsel %vm1749_vm15, %v1718_v59, %v2938_v12  ;;  %v5020_v12 = vunpack.i.h.bf16 %v4030_v35  ;;  %v2797_v58 = vunpack.i.l.bf16 %v4114_v55 }
 0x11f   : > { %v2946_v42 = vpop.permute.xlu1 %2945  ;;  %v1785_v50 = vsel %vm1782_vm3, %v1752_v38, %v2952_v5  ;;  %v1786_v34 = vsel %vm1782_vm3, %v1753_v24, %v2953_v30  ;;  %v5021_v38 = vunpack.i.l.bf16 %v4030_v35  ;;  %v1196_v35 = vrot.slane %v4258_v29, 2 }
 0x120   : > { %v2961_v62 = vpop.permute.xlu0 %2960  ;;  %v2948_v40 = vunpack.i.h.bf16 %v2946_v42  ;;  %v2947_v10 = vunpack.i.l.bf16 %v2946_v42  ;;  %v1590_v61 = vsel %vm1584_vm10, %v3464_v52, %v5020_v12  ;;  %v1195_v52 = vrot.slane %v4253_v39, 2 }
 0x121   : > { %3235 = vrot.lane.b32.xlu1 %v5019_v0, %s3356_s8  ;;  %v2963_v6 = vunpack.i.h.bf16 %v2961_v62  ;;  %v2962_v2 = vunpack.i.l.bf16 %v2961_v62  ;;  %v1589_v24 = vsel %vm1584_vm10, %v3467_v53, %v5021_v38  ;;  %v5024_v53 = vrot.slane %v4253_v39, 1 }
 0x122   : > { %3250 = vrot.lane.b32.xlu0 %v4241_v51, %s3358_s14  ;;  %v1783_v51 = vsel %vm1782_vm3, %v1750_v46, %v2947_v10  ;;  %v1784_v30 = vsel %vm1782_vm3, %v1751_v37, %v2948_v40  ;;  %v5022_v10 = vunpack.i.h.bf16 %v4040_v17  ;;  %v2872_v37 = vunpack.i.l.bf16 %v4164_v54 }
 0x123   : > { %v2956_v60 = vpop.permute.xlu1 %2955  ;;  %v1818_v31 = vsel %vm1815_vm4, %v1785_v50, %v2962_v2  ;;  %v1819_v16 = vsel %vm1815_vm4, %v1786_v34, %v2963_v6  ;;  %v5023_v6 = vunpack.i.l.bf16 %v4040_v17  ;;  %v1096_v20 = vsel %vm642_vm1, %v5024_v53, %v1095_v43 }
 0x124   : > { %v2958_v4 = vunpack.i.h.bf16 %v2956_v60  ;;  %v2957_v11 = vunpack.i.l.bf16 %v2956_v60  ;;  %v2971_v5 = vpop.permute.xlu0 %2970  ;;  %v1849_v27 = vpack.c.bf16 %v1819_v16, %v1818_v31  ;;  %v2793_v17 = vunpack.i.h.bf16 %v4100_v1 }
 0x125   : > { %3245 = vrot.lane.b32.xlu1 %v3932_v49, %s3357_s11  ;;  %v1591_v2 = vsel %vm1584_vm10, %v3501_v19, %v5023_v6  ;;  %v2792_v19 = vunpack.i.l.bf16 %v4100_v1  ;;  %v1198_v50 = vrot.slane %v4271_v22, 2  ;;  %v2798_v34 = vunpack.i.h.bf16 %v4114_v55 }
 0x126   : > { %3260 = vrot.lane.b32.xlu0 %v5019_v0, %s3359_s15  ;;  %v1816_v45 = vsel %vm1815_vm4, %v1783_v51, %v2957_v11  ;;  %v1817_v42 = vsel %vm1815_vm4, %v1784_v30, %v2958_v4  ;;  %v1592_v0 = vsel %vm1584_vm10, %v3509_v25, %v5022_v10  ;;  %v1098_v25 = vsel %vm642_vm1, %v1095_v43, %v1097_v33 }
 0x127   : > { %v4324_v62 = vpop.permute.xlu1 %2965  ;;  %v1848_v40 = vpack.c.bf16 %v1817_v42, %v1816_v45  ;;  %v4353_v60 = vpack.i.bf16 %v4258_v29, %v4253_v39  ;;  %v2878_v31 = vunpack.i.h.bf16 %v4182_v41  ;;  %v2877_v1 = vunpack.i.l.bf16 %v4182_v41 }
 0x128   : > { %v2981_v23 = vpop.permute.xlu0 %2980  ;;  %v4357_v46 = vpack.i.bf16 %v1098_v25, %v1096_v20  ;;  %v2873_v22 = vunpack.i.h.bf16 %v4164_v54  ;;  %v2973_v55 = vunpack.i.h.bf16 %v2971_v5  ;;  %v2972_v4 = vunpack.i.l.bf16 %v2971_v5 }
 0x129   : > { %3255 = vrot.lane.b32.xlu1 %v4250_v7, %s3358_s14  ;;  %2642 = vmatprep.mubr.msk.bf16.mxu0 %vm1884_vm5, %v1848_v40  ;;  %v1623_v39 = vsel %vm1617_vm11, %v1590_v61, %v2793_v17  ;;  %v1622_v29 = vsel %vm1617_vm11, %v1589_v24, %v2792_v19  ;;  %v1199_v41 = vsel %vm819_vm2, %v1196_v35, %v1198_v50  ;;  %v2983_v30 = vunpack.i.h.bf16 %v2981_v23 }
 0x12a   : > { %2643 = vmatmul.mubr.msk.bf16.vlgmr.msra.gmra.mxu0 %vm1884_vm5, %v1849_v27  ;;  %3270 = vrot.lane.b32.xlu0 %v3932_v49, %s3360_s16  ;;  %v4360_v49 = vsel %vm819_vm2, %v1195_v52, %v1196_v35  ;;  %v1625_v11 = vsel %vm1617_vm11, %v1592_v0, %v2798_v34  ;;  %v1624_v51 = vsel %vm1617_vm11, %v1591_v2, %v2797_v58  ;;  %v2982_v54 = vunpack.i.l.bf16 %v2981_v23 }
 0x12b   : > { %v2976_v59 = vpop.permute.xlu1 %2975  ;;  %v1657_v5 = vsel %vm1650_vm12, %v1624_v51, %v2877_v1  ;;  %v1658_v33 = vsel %vm1650_vm12, %v1625_v11, %v2878_v31  ;;  %v1655_v12 = vsel %vm1650_vm12, %v1622_v29, %v2872_v37  ;;  %v2968_v24 = vunpack.i.h.bf16 %v4324_v62 }
 0x12c   : > { %v2991_v16 = vpop.permute.xlu0 %2990  ;;  %v1691_v61 = vsel %vm1683_vm13, %v1658_v33, %v2973_v55  ;;  %v1690_v38 = vsel %vm1683_vm13, %v1657_v5, %v2972_v4  ;;  %v2967_v40 = vunpack.i.l.bf16 %v4324_v62  ;;  %v2978_v6 = vunpack.i.h.bf16 %v2976_v59 }
 0x12d   : > { %3265 = vrot.lane.b32.xlu1 %v3827_v14, %s3359_s15  ;;  %v2993_v27 = vunpack.i.h.bf16 %v2991_v16  ;;  %v2992_v45 = vunpack.i.l.bf16 %v2991_v16  ;;  %v2977_v2 = vunpack.i.l.bf16 %v2976_v59  ;;  %v1723_v23 = vsel %vm1716_vm14, %v1690_v38, %v2982_v54 }
 0x12e   : > { %3280 = vrot.lane.b32.xlu0 %v4250_v7, %s3355_s30  ;;  %v1656_v7 = vsel %vm1650_vm12, %v1623_v39, %v2873_v22  ;;  %v1724_v52 = vsel %vm1716_vm14, %v1691_v61, %v2983_v30  ;;  %v1688_v58 = vsel %vm1683_vm13, %v1655_v12, %v2967_v40  ;;  %v2723_v12 = vunpack.i.h.bf16 %v4038_v8 }
 0x12f   : > { %v2986_v43 = vpop.permute.xlu1 %2985  ;;  %v1756_v25 = vsel %vm1749_vm15, %v1723_v23, %v2992_v45  ;;  %v1757_v17 = vsel %vm1749_vm15, %v1724_v52, %v2993_v27  ;;  %v1689_v59 = vsel %vm1683_vm13, %v1656_v7, %v2968_v24  ;;  %v1721_v16 = vsel %vm1716_vm14, %v1688_v58, %v2977_v2  ;;  %v5025_v58 = vld [vmem:[#allocation4_spill] sm:$0xff] }
 0x130   : > { %v3001_v42 = vpop.permute.xlu0 %3000  ;;  %v2988_v53 = vunpack.i.h.bf16 %v2986_v43  ;;  %v2987_v20 = vunpack.i.l.bf16 %v2986_v43  ;;  %v1722_v22 = vsel %vm1716_vm14, %v1689_v59, %v2978_v6  ;;  %v3304_v43 = vpack.i.bf16 %v1199_v41, %v4360_v49 }
 0x131   : > { %3275 = vrot.lane.b32.xlu1 %v3944_v28, %s3360_s16  ;;  %v3003_v10 = vunpack.i.h.bf16 %v3001_v42  ;;  %v3002_v0 = vunpack.i.l.bf16 %v3001_v42  ;;  %v2722_v7 = vunpack.i.l.bf16 %v4038_v8  ;;  %v2728_v38 = vunpack.i.h.bf16 %v4048_v26 }
 0x132   : > { %3290 = vrot.lane.b32.xlu0 %v3827_v14, %s3356_s8  ;;  %v1754_v39 = vsel %vm1749_vm15, %v1721_v16, %v2987_v20  ;;  %v1755_v29 = vsel %vm1749_vm15, %v1722_v22, %v2988_v53  ;;  %v3314_v49 = vpack.i.bf16 %v5016_v57, %v5017_v47  ;;  %v2727_v41 = vunpack.i.l.bf16 %v4048_v26 }
 0x133   : > { %v2996_v35 = vpop.permute.xlu1 %2995  ;;  %v1789_v31 = vsel %vm1782_vm3, %v1756_v25, %v3002_v0  ;;  %v1790_v1 = vsel %vm1782_vm3, %v1757_v17, %v3003_v10  ;;  %v2802_v24 = vunpack.i.l.bf16 %v4108_v36  ;;  %v2808_v8 = vunpack.i.h.bf16 %v4122_v56 }
 0x134   : > { %v3011_v19 = vpop.permute.xlu0 %3010  ;;  %v2998_v62 = vunpack.i.h.bf16 %v2996_v35  ;;  %v2997_v50 = vunpack.i.l.bf16 %v2996_v35  ;;  %v2807_v40 = vunpack.i.l.bf16 %v4122_v56  ;;  %v1594_v0 = vsel %vm1584_vm10, %v3537_v48, %v2723_v12 }
 0x135   : > { %3285 = vrot.lane.b32.xlu1 %v4353_v60, %s3355_s30  ;;  %v3013_v14 = vunpack.i.h.bf16 %v3011_v19  ;;  %v3012_v34 = vunpack.i.l.bf16 %v3011_v19  ;;  %v1593_v57 = vsel %vm1584_vm10, %v3530_v44, %v2722_v7  ;;  %v2888_v26 = vunpack.i.h.bf16 %v4192_v63  ;;  %s235_s30 = scalar_lea.vmem %s4874_s5, %s2527_s27 }
 0x136   : > { %3300 = vrot.lane.b32.xlu0 %v3944_v28, %s3357_s11  ;;  %v1787_v54 = vsel %vm1782_vm3, %v1754_v39, %v2997_v50  ;;  %v1788_v28 = vsel %vm1782_vm3, %v1755_v29, %v2998_v62  ;;  %v2887_v47 = vunpack.i.l.bf16 %v4192_v63  ;;  %v2883_v6 = vunpack.i.h.bf16 %v4172_v15 }
 0x137   : > { %v3006_v37 = vpop.permute.xlu1 %3005  ;;  %v1822_v55 = vsel %vm1815_vm4, %v1789_v31, %v3012_v34  ;;  %v1823_v4 = vsel %vm1815_vm4, %v1790_v1, %v3013_v14  ;;  %v1596_v56 = vsel %vm1584_vm10, %v3561_v21, %v2728_v38  ;;  %v1595_v48 = vsel %vm1584_vm10, %v3554_v13, %v2727_v41 }
 0x138   : > { %v3008_v11 = vunpack.i.h.bf16 %v3006_v37  ;;  %v3007_v51 = vunpack.i.l.bf16 %v3006_v37  ;;  %v3021_v30 = vpop.permute.xlu0 %3020  ;;  %v1851_v27 = vpack.c.bf16 %v1823_v4, %v1822_v55  ;;  %v1626_v44 = vsel %vm1617_vm11, %v1593_v57, %v2802_v24 }
 0x139   : > { %3295 = vrot.lane.b32.xlu1 %v4357_v46, %s3356_s8  ;;  %v3023_v2 = vunpack.i.h.bf16 %v3021_v30  ;;  %v3022_v23 = vunpack.i.l.bf16 %v3021_v30  ;;  %v1629_v63 = vsel %vm1617_vm11, %v1596_v56, %v2808_v8  ;;  %v2732_v56 = vunpack.i.l.bf16 %v4045_v18 }
 0x13a   : > { %v1820_v5 = vsel %vm1815_vm4, %v1787_v54, %v3007_v51  ;;  %v1821_v33 = vsel %vm1815_vm4, %v1788_v28, %v3008_v11  ;;  %3310 = vrot.lane.b32.xlu0 %v4353_v60, %s3358_s14  ;;  %v2803_v60 = vunpack.i.h.bf16 %v4108_v36  ;;  %v1662_v21 = vsel %vm1650_vm12, %v1629_v63, %v2888_v26 }
 0x13b   : > { %v1850_v45 = vpack.c.bf16 %v1821_v33, %v1820_v5  ;;  %v4412_v42 = vpop.permute.xlu1 %3015  ;;  %v1695_v14 = vsel %vm1683_vm13, %v1662_v21, %v3023_v2  ;;  %v5026_v5 = vld [vmem:[#allocation30_spill] sm:$0xff]  ;;  %v2813_v63 = vunpack.i.h.bf16 %v4116_v3  ;;  %v5028_v21 = vld [vmem:[#allocation8_spill] sm:$0xff]  ;;  %vm2226_vm1 = vcmask 60416  }
 0x13c   : > { %v3031_v61 = vpop.permute.xlu0 %3030  ;;  %v1627_v52 = vsel %vm1617_vm11, %v1594_v0, %v2803_v60  ;;  %v3018_v59 = vunpack.i.h.bf16 %v4412_v42  ;;  %v3017_v31 = vunpack.i.l.bf16 %v4412_v42  ;;  %vm2430_vm2 = vcmask 58368  }
 0x13d   : > { %3305 = vrot.lane.b32.xlu1 %v3304_v43, %s3357_s11  ;;  %2646 = vmatprep.mubr.msk.bf16.mxu0 %vm1884_vm5, %v1850_v45  ;;  %v3033_v35 = vunpack.i.h.bf16 %v3031_v61  ;;  %v3032_v53 = vunpack.i.l.bf16 %v3031_v61  ;;  %v1660_v50 = vsel %vm1650_vm12, %v1627_v52, %v2883_v6  ;;  %v2737_v52 = vunpack.i.l.bf16 %v4058_v9 }
 0x13e   : > { %2647 = vmatmul.mubr.msk.bf16.gmra.mxu0 %vm1884_vm5, %v1851_v27  ;;  %3320 = vrot.lane.b32.xlu0 %v4357_v46, %s3359_s15  ;;  %v2882_v46 = vunpack.i.l.bf16 %v4172_v15  ;;  %v1628_v15 = vsel %vm1617_vm11, %v1595_v48, %v2807_v40  ;;  %v1693_v42 = vsel %vm1683_vm13, %v1660_v50, %v3018_v59  ;;  %v5030_v50 = vld [vmem:[#allocation45_spill] sm:$0xff] }
 0x13f   : > { %v3026_v10 = vpop.permute.xlu1 %3025  ;;  %v1661_v25 = vsel %vm1650_vm12, %v1628_v15, %v2887_v47  ;;  %v1728_v4 = vsel %vm1716_vm14, %v1695_v14, %v3033_v35  ;;  %v2812_v15 = vunpack.i.l.bf16 %v4116_v3  ;;  %v2818_v35 = vunpack.i.h.bf16 %v4130_v32  ;;  %v5031_v59 = vld [vmem:[#allocation13_spill] sm:$0xff] }
 0x140   : > { %v3041_v36 = vpop.permute.xlu0 %3040  ;;  %v1659_v62 = vsel %vm1650_vm12, %v1626_v44, %v2882_v46  ;;  %v1694_v34 = vsel %vm1683_vm13, %v1661_v25, %v3022_v23  ;;  %v3028_v22 = vunpack.i.h.bf16 %v3026_v10  ;;  %v3027_v37 = vunpack.i.l.bf16 %v3026_v10  ;;  %v5027_v25 = vld [vmem:[#allocation10_spill] sm:$0xff] }
 0x141   : > { %3315 = vrot.lane.b32.xlu1 %v3314_v49, %s3358_s14  ;;  %v3043_v17 = vunpack.i.h.bf16 %v3041_v36  ;;  %v3042_v19 = vunpack.i.l.bf16 %v3041_v36  ;;  %v1727_v55 = vsel %vm1716_vm14, %v1694_v34, %v3032_v53  ;;  %v1692_v45 = vsel %vm1683_vm13, %v1659_v62, %v3017_v31  ;;  %v5032_v31 = vld [vmem:[#allocation12_spill] sm:$0xff] }
 0x142   : > { %3330 = vrot.lane.b32.xlu0 %v3304_v43, %s3360_s16  ;;  %v1725_v61 = vsel %vm1716_vm14, %v1692_v45, %v3027_v37  ;;  %v1726_v38 = vsel %vm1716_vm14, %v1693_v42, %v3028_v22  ;;  %v2733_v23 = vunpack.i.h.bf16 %v4045_v18  ;;  %v2738_v44 = vunpack.i.h.bf16 %v4058_v9 }
 0x143   : > { %v3036_v20 = vpop.permute.xlu1 %3035  ;;  %v1760_v51 = vsel %vm1749_vm15, %v1727_v55, %v3042_v19  ;;  %v1761_v30 = vsel %vm1749_vm15, %v1728_v4, %v3043_v17  ;;  %v2817_v53 = vunpack.i.l.bf16 %v4130_v32  ;;  %v1597_v17 = vsel %vm1584_vm10, %v5028_v21, %v2732_v56  ;;  %v5029_v19 = vld [vmem:[#allocation29_spill] sm:$0xff] }
 0x144   : > { %v3051_v13 = vpop.permute.xlu0 %3050  ;;  %v3038_v29 = vunpack.i.h.bf16 %v3036_v20  ;;  %v3037_v11 = vunpack.i.l.bf16 %v3036_v20  ;;  %v1598_v18 = vsel %vm1584_vm10, %v5027_v25, %v2733_v23  ;;  %v2897_v9 = vunpack.i.l.bf16 %v5029_v19 }
 0x145   : > { %3325 = vrot.lane.b32.xlu1 %v5025_v58, %s3359_s15  ;;  %v3053_v1 = vunpack.i.h.bf16 %v3051_v13  ;;  %v3052_v16 = vunpack.i.l.bf16 %v3051_v13  ;;  %v2898_v13 = vunpack.i.h.bf16 %v5029_v19  ;;  %v2893_v3 = vunpack.i.h.bf16 %v5030_v50 }
 0x146   : > { %v1758_v24 = vsel %vm1749_vm15, %v1725_v61, %v3037_v11  ;;  %v1759_v8 = vsel %vm1749_vm15, %v1726_v38, %v3038_v29  ;;  %v2892_v14 = vunpack.i.l.bf16 %v5030_v50  ;;  %v1600_v32 = vsel %vm1584_vm10, %v5031_v59, %v2738_v44  ;;  %v5033_v50 = vld [vmem:[#allocation5_spill] sm:$0xff] }
 0x147   : > { %v3046_v39 = vpop.permute.xlu1 %3045  ;;  %v1793_v12 = vsel %vm1782_vm3, %v1760_v51, %v3052_v16  ;;  %v1794_v7 = vsel %vm1782_vm3, %v1761_v30, %v3053_v1  ;;  %v1599_v1 = vsel %vm1584_vm10, %v5032_v31, %v2737_v52  ;;  %v1630_v16 = vsel %vm1617_vm11, %v1597_v17, %v2812_v15  ;;  %v5035_v31 = vld [vmem:[#allocation20_spill] sm:$0xff] }
 0x148   : > { %v3061_v54 = vpop.permute.xlu0 %3060  ;;  %v3048_v28 = vunpack.i.h.bf16 %v3046_v39  ;;  %v3047_v43 = vunpack.i.l.bf16 %v3046_v39  ;;  %v1631_v22 = vsel %vm1617_vm11, %v1598_v18, %v2813_v63  ;;  %v1633_v37 = vsel %vm1617_vm11, %v1600_v32, %v2818_v35 }
 0x149   : > { %3335 = vrot.lane.b32.xlu1 %v5026_v5, %s3360_s16  ;;  %v3063_v33 = vunpack.i.h.bf16 %v3061_v54  ;;  %v3062_v27 = vunpack.i.l.bf16 %v3061_v54  ;;  %v1632_v55 = vsel %vm1617_vm11, %v1599_v1, %v2817_v53  ;;  %v1666_v51 = vsel %vm1650_vm12, %v1633_v37, %v2898_v13 }
 0x14a   : > { %v1791_v57 = vsel %vm1782_vm3, %v1758_v24, %v3047_v43  ;;  %v1792_v26 = vsel %vm1782_vm3, %v1759_v8, %v3048_v28  ;;  %v1665_v11 = vsel %vm1650_vm12, %v1632_v55, %v2897_v9  ;;  %v1663_v43 = vsel %vm1650_vm12, %v1630_v16, %v2892_v14 }
 0x14b   : > { %v3056_v49 = vpop.permute.xlu1 %3055  ;;  %v1826_v41 = vsel %vm1815_vm4, %v1793_v12, %v3062_v27  ;;  %v1827_v60 = vsel %vm1815_vm4, %v1794_v7, %v3063_v33  ;;  %v1664_v5 = vsel %vm1650_vm12, %v1631_v22, %v2893_v3  ;;  %v2743_v3 = vunpack.i.h.bf16 %v5033_v50  ;;  %v5036_v22 = vld [vmem:[#allocation23_spill] sm:$0xff] }
 0x14c   : > { %v3058_v40 = vunpack.i.h.bf16 %v3056_v49  ;;  %v3057_v10 = vunpack.i.l.bf16 %v3056_v49  ;;  %v3071_v0 = vpop.permute.xlu0 %3070  ;;  %v1853_v6 = vpack.c.bf16 %v1827_v60, %v1826_v41  ;;  %v2742_v14 = vunpack.i.l.bf16 %v5033_v50 }
 0x14d   : > { %v3073_v34 = vunpack.i.h.bf16 %v3071_v0  ;;  %v3072_v58 = vunpack.i.l.bf16 %v3071_v0  ;;  %v2823_v1 = vunpack.i.h.bf16 %v5035_v31  ;;  %v2822_v16 = vunpack.i.l.bf16 %v5035_v31 }
 0x14e   : > { %v1824_v47 = vsel %vm1815_vm4, %v1791_v57, %v3057_v10  ;;  %v1825_v36 = vsel %vm1815_vm4, %v1792_v26, %v3058_v40  ;;  %v2828_v37 = vunpack.i.h.bf16 %v5036_v22  ;;  %v2827_v55 = vunpack.i.l.bf16 %v5036_v22 }
 0x14f   : > { %v1852_v46 = vpack.c.bf16 %v1825_v36, %v1824_v47  ;;  %v3066_v2 = vpop.permute.xlu1 %3065  ;;  %v1699_v33 = vsel %vm1683_vm13, %v1666_v51, %v3073_v34  ;;  %v1698_v27 = vsel %vm1683_vm13, %v1665_v11, %v3072_v58  ;;  %v5034_v58 = vld [vmem:[#allocation7_spill] sm:$0xff] }
 0x150   : > { %v3081_v48 = vpop.permute.xlu0 %3080  ;;  %v3068_v45 = vunpack.i.h.bf16 %v3066_v2  ;;  %v3067_v42 = vunpack.i.l.bf16 %v3066_v2  ;;  %v2748_v59 = vunpack.i.h.bf16 %v5034_v58  ;;  %v2747_v32 = vunpack.i.l.bf16 %v5034_v58  ;;  %v5038_v11 = vld [vmem:[#allocation15_spill] sm:$0xff] }
 0x151   : > { %2650 = vmatprep.mubr.msk.bf16.mxu0 %vm1884_vm5, %v1852_v46  ;;  %v3083_v4 = vunpack.i.h.bf16 %v3081_v48  ;;  %v3082_v39 = vunpack.i.l.bf16 %v3081_v48  ;;  %v1601_v51 = vsel %vm1584_vm10, %v5038_v11, %v2742_v14 }
 0x152   : > { %2651 = vmatmul.mubr.msk.bf16.gmra.mxu0 %vm1884_vm5, %v1853_v6  ;;  %v1696_v6 = vsel %vm1683_vm13, %v1663_v43, %v3067_v42  ;;  %v1697_v46 = vsel %vm1683_vm13, %v1664_v5, %v3068_v45  ;;  %v5040_v5 = vld [vmem:[#allocation46_spill] sm:$0xff] }
 0x153   : > { %v3076_v20 = vpop.permute.xlu1 %3075  ;;  %v1731_v49 = vsel %vm1716_vm14, %v1698_v27, %v3082_v39  ;;  %v1732_v41 = vsel %vm1716_vm14, %v1699_v33, %v3083_v4  ;;  %v5037_v39 = vld [vmem:[#allocation16_spill] sm:$0xff]  ;;  %v2903_v33 = vunpack.i.h.bf16 %v5040_v5  ;;  %v2902_v27 = vunpack.i.l.bf16 %v5040_v5 }
 0x154   : > { %v3091_v62 = vpop.permute.xlu0 %3090  ;;  %v3078_v61 = vunpack.i.h.bf16 %v3076_v20  ;;  %v3077_v38 = vunpack.i.l.bf16 %v3076_v20 }
 0x155   : > { %v3093_v30 = vunpack.i.h.bf16 %v3091_v62  ;;  %v3092_v54 = vunpack.i.l.bf16 %v3091_v62 }
 0x156   : > { %v1729_v56 = vsel %vm1716_vm14, %v1696_v6, %v3077_v38  ;;  %v1730_v48 = vsel %vm1716_vm14, %v1697_v46, %v3078_v61  ;;  %v5042_v61 = vld [vmem:[#allocation17_spill] sm:$0xff] }
 0x157   : > { %v3086_v29 = vpop.permute.xlu1 %3085  ;;  %v1764_v40 = vsel %vm1749_vm15, %v1731_v49, %v3092_v54  ;;  %v1765_v10 = vsel %vm1749_vm15, %v1732_v41, %v3093_v30  ;;  %v5039_v30 = vld [vmem:[#allocation48_spill] sm:$0xff]  ;;  %v1603_v38 = vsel %vm1584_vm10, %v5042_v61, %v2747_v32  ;;  %v1634_v49 = vsel %vm1617_vm11, %v1601_v51, %v2822_v16 }
 0x158   : > { %v3101_v28 = vpop.permute.xlu0 %3100  ;;  %v3088_v24 = vunpack.i.h.bf16 %v3086_v29  ;;  %v3087_v8 = vunpack.i.l.bf16 %v3086_v29  ;;  %v1602_v29 = vsel %vm1584_vm10, %v5037_v39, %v2743_v3  ;;  %v2908_v54 = vunpack.i.h.bf16 %v5039_v30 }
 0x159   : > { %v3103_v12 = vunpack.i.h.bf16 %v3101_v28  ;;  %v3102_v7 = vunpack.i.l.bf16 %v3101_v28  ;;  %v2907_v28 = vunpack.i.l.bf16 %v5039_v30  ;;  %v1635_v41 = vsel %vm1617_vm11, %v1602_v29, %v2823_v1 }
 0x15a   : > { %v1762_v15 = vsel %vm1749_vm15, %v1729_v56, %v3087_v8  ;;  %v1763_v35 = vsel %vm1749_vm15, %v1730_v48, %v3088_v24  ;;  %v1636_v24 = vsel %vm1617_vm11, %v1603_v38, %v2827_v55  ;;  %v1667_v6 = vsel %vm1650_vm12, %v1634_v49, %v2902_v27  ;;  %v5045_v49 = vld [vmem:[#allocation40_spill] sm:$0xff] }
 0x15b   : > { %v3096_v60 = vpop.permute.xlu1 %3095  ;;  %v1797_v2 = vsel %vm1782_vm3, %v1764_v40, %v3102_v7  ;;  %v1798_v23 = vsel %vm1782_vm3, %v1765_v10, %v3103_v12  ;;  %v5041_v12 = vld [vmem:[#allocation19_spill] sm:$0xff]  ;;  %v1668_v46 = vsel %vm1650_vm12, %v1635_v41, %v2903_v33  ;;  %v5043_v33 = vld [vmem:[#allocation6_spill] sm:$0xff]  ;;  %v2833_v41 = vunpack.i.h.bf16 %v5045_v49 }
 0x15c   : > { %v3111_v0 = vpop.permute.xlu0 %3110  ;;  %v3098_v57 = vunpack.i.h.bf16 %v3096_v60  ;;  %v3097_v26 = vunpack.i.l.bf16 %v3096_v60  ;;  %v1604_v7 = vsel %vm1584_vm10, %v5041_v12, %v2748_v59  ;;  %v2753_v27 = vunpack.i.h.bf16 %v5043_v33  ;;  %v5044_v12 = vld [vmem:[#allocation11_spill] sm:$0xff] }
 0x15d   : > { %v3113_v47 = vunpack.i.h.bf16 %v3111_v0  ;;  %v3112_v36 = vunpack.i.l.bf16 %v3111_v0  ;;  %v1637_v60 = vsel %vm1617_vm11, %v1604_v7, %v2828_v37  ;;  %v1669_v0 = vsel %vm1650_vm12, %v1636_v24, %v2907_v28  ;;  %v5046_v24 = vld [vmem:[#allocation21_spill] sm:$0xff] }
 0x15e   : > { %v1795_v18 = vsel %vm1782_vm3, %v1762_v15, %v3097_v26  ;;  %v1796_v21 = vsel %vm1782_vm3, %v1763_v35, %v3098_v57  ;;  %v1670_v57 = vsel %vm1650_vm12, %v1637_v60, %v2908_v54  ;;  %v2758_v7 = vunpack.i.h.bf16 %v5044_v12 }
 0x15f   : > { %v3106_v44 = vpop.permute.xlu1 %3105  ;;  %v1830_v52 = vsel %vm1815_vm4, %v1797_v2, %v3112_v36  ;;  %v1831_v63 = vsel %vm1815_vm4, %v1798_v23, %v3113_v47  ;;  %v2757_v61 = vunpack.i.l.bf16 %v5044_v12  ;;  %v2832_v60 = vunpack.i.l.bf16 %v5045_v49 }
 0x160   : > { %v3108_v53 = vunpack.i.h.bf16 %v3106_v44  ;;  %v3107_v20 = vunpack.i.l.bf16 %v3106_v44  ;;  %v3121_v25 = vpop.permute.xlu0 %3120  ;;  %v1855_v13 = vpack.c.bf16 %v1831_v63, %v1830_v52 }
 0x161   : > { %v3123_v45 = vunpack.i.h.bf16 %v3121_v25  ;;  %v3122_v42 = vunpack.i.l.bf16 %v3121_v25 }
 0x162   : > { %v1828_v17 = vsel %vm1815_vm4, %v1795_v18, %v3107_v20  ;;  %v1829_v19 = vsel %vm1815_vm4, %v1796_v21, %v3108_v53 }
 0x163   : > { %v1854_v9 = vpack.c.bf16 %v1829_v19, %v1828_v17  ;;  %v3116_v62 = vpop.permute.xlu1 %3115  ;;  %v1703_v2 = vsel %vm1683_vm13, %v1670_v57, %v3123_v45  ;;  %v1702_v23 = vsel %vm1683_vm13, %v1669_v0, %v3122_v42  ;;  %v2752_v45 = vunpack.i.l.bf16 %v5043_v33  ;;  %v5048_v57 = vld [vmem:[#allocation22_spill] sm:$0xff] }
 0x164   : > { %v3131_v34 = vpop.permute.xlu0 %3130  ;;  %v3118_v56 = vunpack.i.h.bf16 %v3116_v62  ;;  %v3117_v48 = vunpack.i.l.bf16 %v3116_v62 }
 0x165   : > { %2654 = vmatprep.mubr.msk.bf16.mxu0 %vm1884_vm5, %v1854_v9  ;;  %v3133_v8 = vunpack.i.h.bf16 %v3131_v34  ;;  %v3132_v40 = vunpack.i.l.bf16 %v3131_v34 }
 0x166   : > { %2655 = vmatmul.mubr.msk.bf16.gmra.mxu0 %vm1884_vm5, %v1855_v13  ;;  %v1700_v3 = vsel %vm1683_vm13, %v1667_v6, %v3117_v48  ;;  %v1701_v14 = vsel %vm1683_vm13, %v1668_v46, %v3118_v56  ;;  %v5051_v48 = vld [vmem:[#allocation24_spill] sm:$0xff] }
 0x167   : > { %v3126_v4 = vpop.permute.xlu1 %3125  ;;  %v1735_v35 = vsel %vm1716_vm14, %v1702_v23, %v3132_v40  ;;  %v1736_v53 = vsel %vm1716_vm14, %v1703_v2, %v3133_v8  ;;  %v1606_v8 = vsel %vm1584_vm10, %v5046_v24, %v2753_v27  ;;  %v5047_v40 = vld [vmem:[#allocation47_spill] sm:$0xff]  ;;  %v5050_v23 = vld [vmem:[#allocation25_spill] sm:$0xff] }
 0x168   : > { %v3141_v43 = vpop.permute.xlu0 %3140  ;;  %v3128_v63 = vunpack.i.h.bf16 %v3126_v4  ;;  %v3127_v15 = vunpack.i.l.bf16 %v3126_v4  ;;  %v2912_v0 = vunpack.i.l.bf16 %v5047_v40  ;;  %v1608_v56 = vsel %vm1584_vm10, %v5050_v23, %v2758_v7  ;;  %v5052_v23 = vld [vmem:[#allocation9_spill] sm:$0xff] }
 0x169   : > { %v3143_v26 = vunpack.i.h.bf16 %v3141_v43  ;;  %v3142_v47 = vunpack.i.l.bf16 %v3141_v43 }
 0x16a   : > { %v1733_v59 = vsel %vm1716_vm14, %v1700_v3, %v3127_v15  ;;  %v1734_v32 = vsel %vm1716_vm14, %v1701_v14, %v3128_v63 }
 0x16b   : > { %v3136_v10 = vpop.permute.xlu1 %3135  ;;  %v1768_v21 = vsel %vm1749_vm15, %v1735_v35, %v3142_v47  ;;  %v1769_v17 = vsel %vm1749_vm15, %v1736_v53, %v3143_v26  ;;  %v1605_v26 = vsel %vm1584_vm10, %v5048_v57, %v2752_v45  ;;  %v5049_v47 = vld [vmem:[#allocation42_spill] sm:$0xff]  ;;  %v1639_v53 = vsel %vm1617_vm11, %v1606_v8, %v2833_v41 }
 0x16c   : > { %v3151_v36 = vpop.permute.xlu0 %3150  ;;  %v3138_v25 = vunpack.i.h.bf16 %v3136_v10  ;;  %v3137_v18 = vunpack.i.l.bf16 %v3136_v10  ;;  %v2913_v10 = vunpack.i.h.bf16 %v5047_v40  ;;  %v1638_v35 = vsel %vm1617_vm11, %v1605_v26, %v2832_v60 }
 0x16d   : > { %v3153_v44 = vunpack.i.h.bf16 %v3151_v36  ;;  %v3152_v52 = vunpack.i.l.bf16 %v3151_v36  ;;  %v2838_v36 = vunpack.i.h.bf16 %v5049_v47 }
 0x16e   : > { %v1766_v22 = vsel %vm1749_vm15, %v1733_v59, %v3137_v18  ;;  %v1767_v37 = vsel %vm1749_vm15, %v1734_v32, %v3138_v25  ;;  %v1671_v18 = vsel %vm1650_vm12, %v1638_v35, %v2912_v0 }
 0x16f   : > { %v3146_v20 = vpop.permute.xlu1 %3145  ;;  %v1801_v34 = vsel %vm1782_vm3, %v1768_v21, %v3152_v52  ;;  %v1802_v58 = vsel %vm1782_vm3, %v1769_v17, %v3153_v44  ;;  %v1607_v44 = vsel %vm1584_vm10, %v5051_v48, %v2757_v61  ;;  %v1672_v21 = vsel %vm1650_vm12, %v1639_v53, %v2913_v10  ;;  %v5054_v53 = vld [vmem:[#allocation41_spill] sm:$0xff] }
 0x170   : > { %v3161_v19 = vpop.permute.xlu0 %3160  ;;  %v3148_v13 = vunpack.i.h.bf16 %v3146_v20  ;;  %v3147_v9 = vunpack.i.l.bf16 %v3146_v20  ;;  %v2762_v48 = vunpack.i.l.bf16 %v5052_v23 }
 0x171   : > { %v3163_v50 = vunpack.i.h.bf16 %v3161_v19  ;;  %v3162_v62 = vunpack.i.l.bf16 %v3161_v19 }
 0x172   : > { %v1799_v29 = vsel %vm1782_vm3, %v1766_v22, %v3147_v9  ;;  %v1800_v11 = vsel %vm1782_vm3, %v1767_v37, %v3148_v13  ;;  %v1641_v13 = vsel %vm1617_vm11, %v1608_v56, %v2838_v36  ;;  %v2837_v9 = vunpack.i.l.bf16 %v5049_v47 }
 0x173   : > { %v3156_v31 = vpop.permute.xlu1 %3155  ;;  %v1834_v1 = vsel %vm1815_vm4, %v1801_v34, %v3162_v62  ;;  %v1835_v16 = vsel %vm1815_vm4, %v1802_v58, %v3163_v50  ;;  %v2763_v56 = vunpack.i.h.bf16 %v5052_v23 }
 0x174   : > { %v3158_v55 = vunpack.i.h.bf16 %v3156_v31  ;;  %v3157_v4 = vunpack.i.l.bf16 %v3156_v31  ;;  %v3171_v39 = vpop.permute.xlu0 %3170  ;;  %v1857_v51 = vpack.c.bf16 %v1835_v16, %v1834_v1 }
 0x175   : > { %v3173_v6 = vunpack.i.h.bf16 %v3171_v39  ;;  %v3172_v46 = vunpack.i.l.bf16 %v3171_v39 }
 0x176   : > { %v1832_v30 = vsel %vm1815_vm4, %v1799_v29, %v3157_v4  ;;  %v1833_v54 = vsel %vm1815_vm4, %v1800_v11, %v3158_v55 }
 0x177   : > { %v4577_v28 = vpop.permute.xlu1 %3165  ;;  %v1856_v43 = vpack.c.bf16 %v1833_v54, %v1832_v30  ;;  %v1704_v50 = vsel %vm1683_vm13, %v1671_v18, %v3172_v46  ;;  %v1705_v62 = vsel %vm1683_vm13, %v1672_v21, %v3173_v6  ;;  %v5055_v18 = vld [vmem:[#allocation27_spill] sm:$0xff] }
 0x178   : > { %v3181_v5 = vpop.permute.xlu0 %3180  ;;  %v3168_v14 = vunpack.i.h.bf16 %v4577_v28  ;;  %v3167_v34 = vunpack.i.l.bf16 %v4577_v28  ;;  %v1640_v28 = vsel %vm1617_vm11, %v1607_v44, %v2837_v9  ;;  %v1610_v21 = vsel %vm1584_vm10, %v5055_v18, %v2763_v56 }
 0x179   : > { %2658 = vmatprep.mubr.msk.bf16.mxu1 %vm1884_vm5, %v1856_v43  ;;  %v3183_v52 = vunpack.i.h.bf16 %v3181_v5  ;;  %v3182_v63 = vunpack.i.l.bf16 %v3181_v5 }
 0x17a   : > { %2659 = vmatmul.mubr.msk.bf16.vlgmr.msra.gmra.mxu1 %vm1884_vm5, %v1857_v51  ;;  %v1674_v45 = vsel %vm1650_vm12, %v1641_v13, %v3168_v14  ;;  %v5056_v13 = vld [vmem:[#allocation26_spill] sm:$0xff] }
 0x17b   : > { %v3176_v42 = vpop.permute.xlu1 %3175  ;;  %v1737_v58 = vsel %vm1716_vm14, %v1704_v50, %v3182_v63  ;;  %v1738_v59 = vsel %vm1716_vm14, %v1705_v62, %v3183_v52  ;;  %v5053_v52 = vld [vmem:[#allocation39_spill] sm:$0xff]  ;;  %v1609_v9 = vsel %vm1584_vm10, %v5056_v13, %v2762_v48  ;;  %v5057_v50 = vld [vmem:[#allocation44_spill] sm:$0xff] }
 0x17c   : > { %v3191_v38 = vpop.permute.xlu0 %3190  ;;  %v3178_v37 = vunpack.i.h.bf16 %v3176_v42  ;;  %v3177_v55 = vunpack.i.l.bf16 %v3176_v42  ;;  %v1673_v42 = vsel %vm1650_vm12, %v1640_v28, %v3167_v34  ;;  %v2768_v63 = vunpack.i.h.bf16 %v5053_v52 }
 0x17d   : > { %v3193_v20 = vunpack.i.h.bf16 %v3191_v38  ;;  %v3192_v25 = vunpack.i.l.bf16 %v3191_v38  ;;  %v2848_v62 = vunpack.i.h.bf16 %v5057_v50  ;;  %v2847_v28 = vunpack.i.l.bf16 %v5057_v50 }
 0x17e   : > { %v1706_v61 = vsel %vm1683_vm13, %v1673_v42, %v3177_v55  ;;  %v1707_v38 = vsel %vm1683_vm13, %v1674_v45, %v3178_v37 }
 0x17f   : > { %v3186_v2 = vpop.permute.xlu1 %3185  ;;  %v1770_v31 = vsel %vm1749_vm15, %v1737_v58, %v3192_v25  ;;  %v1771_v1 = vsel %vm1749_vm15, %v1738_v59, %v3193_v20  ;;  %v2843_v20 = vunpack.i.h.bf16 %v5054_v53  ;;  %v2842_v25 = vunpack.i.l.bf16 %v5054_v53  ;;  %v5058_v58 = vld [vmem:[#allocation31_spill] sm:$0xff] }
 0x180   : > { %v3201_v15 = vpop.permute.xlu0 %3200  ;;  %v3188_v29 = vunpack.i.h.bf16 %v3186_v2  ;;  %v3187_v11 = vunpack.i.l.bf16 %v3186_v2  ;;  %v1612_v59 = vsel %vm1584_vm10, %v5058_v58, %v2768_v63  ;;  %v5060_v58 = vld [vmem:[#allocation14_spill] sm:$0xff] }
 0x181   : > { %v3203_v17 = vunpack.i.h.bf16 %v3201_v15  ;;  %v3202_v19 = vunpack.i.l.bf16 %v3201_v15  ;;  %v2767_v15 = vunpack.i.l.bf16 %v5053_v52  ;;  %v1642_v37 = vsel %vm1617_vm11, %v1609_v9, %v2842_v25 }
 0x182   : > { %v1739_v49 = vsel %vm1716_vm14, %v1706_v61, %v3187_v11  ;;  %v1740_v41 = vsel %vm1716_vm14, %v1707_v38, %v3188_v29  ;;  %v1643_v55 = vsel %vm1617_vm11, %v1610_v21, %v2843_v20 }
 0x183   : > { %v3196_v3 = vpop.permute.xlu1 %3195  ;;  %v1803_v4 = vsel %vm1782_vm3, %v1770_v31, %v3202_v19  ;;  %v1804_v39 = vsel %vm1782_vm3, %v1771_v1, %v3203_v17 }
 0x184   : > { %v3211_v32 = vpop.permute.xlu0 %3210  ;;  %v3198_v43 = vunpack.i.h.bf16 %v3196_v3  ;;  %v3197_v5 = vunpack.i.l.bf16 %v3196_v3 }
 0x185   : > { %v3213_v16 = vunpack.i.h.bf16 %v3211_v32  ;;  %v3212_v22 = vunpack.i.l.bf16 %v3211_v32  ;;  %v5059_v32 = vld [vmem:[#allocation32_spill] sm:$0xff] }
 0x186   : > { %v1772_v24 = vsel %vm1749_vm15, %v1739_v49, %v3197_v5  ;;  %v1773_v8 = vsel %vm1749_vm15, %v1740_v41, %v3198_v43  ;;  %v1611_v31 = vsel %vm1584_vm10, %v5059_v32, %v2767_v15  ;;  %v2772_v32 = vunpack.i.l.bf16 %v5060_v58 }
 0x187   : > { %v3206_v51 = vpop.permute.xlu1 %3205  ;;  %v1836_v30 = vsel %vm1815_vm4, %v1803_v4, %v3212_v22  ;;  %v1837_v54 = vsel %vm1815_vm4, %v1804_v39, %v3213_v16 }
 0x188   : > { %v1858_v33 = vpack.c.bf16 %v1837_v54, %v1836_v30  ;;  %v3221_v27 = vpop.permute.xlu0 %3220  ;;  %v3208_v12 = vunpack.i.h.bf16 %v3206_v51  ;;  %v3207_v7 = vunpack.i.l.bf16 %v3206_v51  ;;  %v1645_v54 = vsel %vm1617_vm11, %v1612_v59, %v2848_v62 }
 0x189   : > { %v3223_v17 = vunpack.i.h.bf16 %v3221_v27  ;;  %v3222_v19 = vunpack.i.l.bf16 %v3221_v27  ;;  %v2773_v59 = vunpack.i.h.bf16 %v5060_v58 }
 0x18a   : > { %2662 = vmatprep.mubr.msk.bf16.mxu1 %vm1884_vm5, %v1858_v33  ;;  %v1805_v57 = vsel %vm1782_vm3, %v1772_v24, %v3207_v7  ;;  %v1806_v26 = vsel %vm1782_vm3, %v1773_v8, %v3208_v12 }
 0x18b   : > { %v3216_v60 = vpop.permute.xlu1 %3215  ;;  %v1675_v29 = vsel %vm1650_vm12, %v1642_v37, %v3222_v19  ;;  %v1676_v11 = vsel %vm1650_vm12, %v1643_v55, %v3223_v17  ;;  %v5062_v55 = vld [vmem:[#allocation43_spill] sm:$0xff] }
 0x18c   : > { %v3218_v40 = vunpack.i.h.bf16 %v3216_v60  ;;  %v3217_v10 = vunpack.i.l.bf16 %v3216_v60  ;;  %v3231_v0 = vpop.permute.xlu0 %3230 }
 0x18d   : > { %v3233_v3 = vunpack.i.h.bf16 %v3231_v0  ;;  %v3232_v14 = vunpack.i.l.bf16 %v3231_v0 }
 0x18e   : > { %v1838_v47 = vsel %vm1815_vm4, %v1805_v57, %v3217_v10  ;;  %v1839_v36 = vsel %vm1815_vm4, %v1806_v26, %v3218_v40 }
 0x18f   : > { %v1859_v6 = vpack.c.bf16 %v1839_v36, %v1838_v47  ;;  %v4630_v46 = vpop.permute.xlu1 %3225  ;;  %v1708_v43 = vsel %vm1683_vm13, %v1675_v29, %v3232_v14  ;;  %v1709_v5 = vsel %vm1683_vm13, %v1676_v11, %v3233_v3  ;;  %v1644_v36 = vsel %vm1617_vm11, %v1611_v31, %v2847_v28  ;;  %v5063_v29 = vld [vmem:[#allocation35_spill] sm:$0xff] }
 0x190   : > { %v3241_v2 = vpop.permute.xlu0 %3240  ;;  %v3228_v27 = vunpack.i.h.bf16 %v4630_v46  ;;  %v3227_v45 = vunpack.i.l.bf16 %v4630_v46  ;;  %v1614_v11 = vsel %vm1584_vm10, %v5063_v29, %v2773_v59 }
 0x191   : > { %2663 = vmatmul.mubr.msk.bf16.gmra.mxu1 %vm1884_vm5, %v1859_v6  ;;  %v3243_v1 = vunpack.i.h.bf16 %v3241_v2  ;;  %v3242_v16 = vunpack.i.l.bf16 %v3241_v2 }
 0x192   : > { %v1678_v56 = vsel %vm1650_vm12, %v1645_v54, %v3228_v27  ;;  %v1677_v48 = vsel %vm1650_vm12, %v1644_v36, %v3227_v45  ;;  %v5064_v54 = vld [vmem:[#allocation33_spill] sm:$0xff] }
 0x193   : > { %v3236_v44 = vpop.permute.xlu1 %3235  ;;  %v1741_v42 = vsel %vm1716_vm14, %v1708_v43, %v3242_v16  ;;  %v1742_v12 = vsel %vm1716_vm14, %v1709_v5, %v3243_v1  ;;  %v5061_v1 = vld [vmem:[#allocation18_spill] sm:$0xff]  ;;  %v1613_v28 = vsel %vm1584_vm10, %v5064_v54, %v2772_v32  ;;  %v5065_v43 = vld [vmem:[#allocation28_spill] sm:$0xff] }
 0x194   : > { %v3251_v35 = vpop.permute.xlu0 %3250  ;;  %v3238_v60 = vunpack.i.h.bf16 %v3236_v44  ;;  %v3237_v24 = vunpack.i.l.bf16 %v3236_v44  ;;  %v2778_v16 = vunpack.i.h.bf16 %v5061_v1  ;;  %v2858_v5 = vunpack.i.h.bf16 %v5065_v43 }
 0x195   : > { %v3253_v4 = vunpack.i.h.bf16 %v3251_v35  ;;  %v3252_v39 = vunpack.i.l.bf16 %v3251_v35  ;;  %v2857_v36 = vunpack.i.l.bf16 %v5065_v43 }
 0x196   : > { %v1710_v63 = vsel %vm1683_vm13, %v1677_v48, %v3237_v24  ;;  %v1711_v15 = vsel %vm1683_vm13, %v1678_v56, %v3238_v60 }
 0x197   : > { %v3246_v34 = vpop.permute.xlu1 %3245  ;;  %v1774_v61 = vsel %vm1749_vm15, %v1741_v42, %v3252_v39  ;;  %v1775_v38 = vsel %vm1749_vm15, %v1742_v12, %v3253_v4  ;;  %v2853_v4 = vunpack.i.h.bf16 %v5062_v55  ;;  %v2852_v39 = vunpack.i.l.bf16 %v5062_v55  ;;  %v5066_v42 = vld [vmem:[#allocation37_spill] sm:$0xff] }
 0x198   : > { %v3261_v22 = vpop.permute.xlu0 %3260  ;;  %v3248_v10 = vunpack.i.h.bf16 %v3246_v34  ;;  %v3247_v0 = vunpack.i.l.bf16 %v3246_v34  ;;  %v1616_v12 = vsel %vm1584_vm10, %v5066_v42, %v2778_v16 }
 0x199   : > { %v3263_v51 = vunpack.i.h.bf16 %v3261_v22  ;;  %v3262_v30 = vunpack.i.l.bf16 %v3261_v22  ;;  %v2777_v22 = vunpack.i.l.bf16 %v5061_v1  ;;  %v1646_v60 = vsel %vm1617_vm11, %v1613_v28, %v2852_v39 }
 0x19a   : > { %v1743_v35 = vsel %vm1716_vm14, %v1710_v63, %v3247_v0  ;;  %v1744_v53 = vsel %vm1716_vm14, %v1711_v15, %v3248_v10  ;;  %v1647_v24 = vsel %vm1617_vm11, %v1614_v11, %v2853_v4 }
 0x19b   : > { %v3256_v33 = vpop.permute.xlu1 %3255  ;;  %v1807_v8 = vsel %vm1782_vm3, %v1774_v61, %v3262_v30  ;;  %v1808_v40 = vsel %vm1782_vm3, %v1775_v38, %v3263_v51 }
 0x19c   : > { %v3271_v7 = vpop.permute.xlu0 %3270  ;;  %v3258_v6 = vunpack.i.h.bf16 %v3256_v33  ;;  %v3257_v46 = vunpack.i.l.bf16 %v3256_v33 }
 0x19d   : > { %v3273_v49 = vunpack.i.h.bf16 %v3271_v7  ;;  %v3272_v41 = vunpack.i.l.bf16 %v3271_v7  ;;  %v5067_v7 = vld [vmem:[#allocation38_spill] sm:$0xff] }
 0x19e   : > { %v1776_v25 = vsel %vm1749_vm15, %v1743_v35, %v3257_v46  ;;  %v1777_v18 = vsel %vm1749_vm15, %v1744_v53, %v3258_v6  ;;  %v1615_v61 = vsel %vm1584_vm10, %v5067_v7, %v2777_v22 }
 0x19f   : > { %v3266_v57 = vpop.permute.xlu1 %3265  ;;  %v1840_v26 = vsel %vm1815_vm4, %v1807_v8, %v3272_v41  ;;  %v1841_v47 = vsel %vm1815_vm4, %v1808_v40, %v3273_v49 }
 0x1a0   : > { %v1860_v2 = vpack.c.bf16 %v1841_v47, %v1840_v26  ;;  %v3281_v23 = vpop.permute.xlu0 %3280  ;;  %v3268_v44 = vunpack.i.h.bf16 %v3266_v57  ;;  %v3267_v52 = vunpack.i.l.bf16 %v3266_v57  ;;  %v1649_v47 = vsel %vm1617_vm11, %v1616_v12, %v2858_v5 }
 0x1a1   : > { %v3283_v51 = vunpack.i.h.bf16 %v3281_v23  ;;  %v3282_v30 = vunpack.i.l.bf16 %v3281_v23 }
 0x1a2   : > { %2666 = vmatprep.mubr.msk.bf16.mxu1 %vm1884_vm5, %v1860_v2  ;;  %v1809_v13 = vsel %vm1782_vm3, %v1776_v25, %v3267_v52  ;;  %v1810_v9 = vsel %vm1782_vm3, %v1777_v18, %v3268_v44 }
 0x1a3   : > { %v3276_v20 = vpop.permute.xlu1 %3275  ;;  %v1679_v10 = vsel %vm1650_vm12, %v1646_v60, %v3282_v30  ;;  %v1680_v0 = vsel %vm1650_vm12, %v1647_v24, %v3283_v51 }
 0x1a4   : > { %v3278_v21 = vunpack.i.h.bf16 %v3276_v20  ;;  %v3277_v17 = vunpack.i.l.bf16 %v3276_v20  ;;  %v3291_v19 = vpop.permute.xlu0 %3290 }
 0x1a5   : > { %v3293_v33 = vunpack.i.h.bf16 %v3291_v19  ;;  %v3292_v27 = vunpack.i.l.bf16 %v3291_v19 }
 0x1a6   : > { %v1842_v50 = vsel %vm1815_vm4, %v1809_v13, %v3277_v17  ;;  %v1843_v62 = vsel %vm1815_vm4, %v1810_v9, %v3278_v21 }
 0x1a7   : > { %v1861_v3 = vpack.c.bf16 %v1843_v62, %v1842_v50  ;;  %v3286_v14 = vpop.permute.xlu1 %3285  ;;  %v1712_v6 = vsel %vm1683_vm13, %v1679_v10, %v3292_v27  ;;  %v1713_v46 = vsel %vm1683_vm13, %v1680_v0, %v3293_v33  ;;  %v1648_v62 = vsel %vm1617_vm11, %v1615_v61, %v2857_v36 }
 0x1a8   : > { %v3301_v34 = vpop.permute.xlu0 %3300  ;;  %v3288_v23 = vunpack.i.h.bf16 %v3286_v14  ;;  %v3287_v56 = vunpack.i.l.bf16 %v3286_v14 }
 0x1a9   : > { %2667 = vmatmul.mubr.msk.bf16.gmra.mxu1 %vm1884_vm5, %v1861_v3  ;;  %v3303_v38 = vunpack.i.h.bf16 %v3301_v34  ;;  %v3302_v49 = vunpack.i.l.bf16 %v3301_v34 }
 0x1aa   : > { %v1682_v58 = vsel %vm1650_vm12, %v1649_v47, %v3288_v23  ;;  %v1681_v59 = vsel %vm1650_vm12, %v1648_v62, %v3287_v56 }
 0x1ab   : > { %v3296_v31 = vpop.permute.xlu1 %3295  ;;  %v1745_v48 = vsel %vm1716_vm14, %v1712_v6, %v3302_v49  ;;  %v1746_v44 = vsel %vm1716_vm14, %v1713_v46, %v3303_v38 }
 0x1ac   : > { %v3311_v37 = vpop.permute.xlu0 %3310  ;;  %v3298_v20 = vunpack.i.h.bf16 %v3296_v31  ;;  %v3297_v25 = vunpack.i.l.bf16 %v3296_v31 }
 0x1ad   : > { %v3313_v8 = vunpack.i.h.bf16 %v3311_v37  ;;  %v3312_v40 = vunpack.i.l.bf16 %v3311_v37 }
 0x1ae   : > { %v1714_v1 = vsel %vm1683_vm13, %v1681_v59, %v3297_v25  ;;  %v1715_v16 = vsel %vm1683_vm13, %v1682_v58, %v3298_v20 }
 0x1af   : > { %v3306_v45 = vpop.permute.xlu1 %3305  ;;  %v1778_v63 = vsel %vm1749_vm15, %v1745_v48, %v3312_v40  ;;  %v1779_v15 = vsel %vm1749_vm15, %v1746_v44, %v3313_v8 }
 0x1b0   : > { %v3321_v41 = vpop.permute.xlu0 %3320  ;;  %v3308_v17 = vunpack.i.h.bf16 %v3306_v45  ;;  %v3307_v19 = vunpack.i.l.bf16 %v3306_v45 }
 0x1b1   : > { %v3323_v57 = vunpack.i.h.bf16 %v3321_v41  ;;  %v3322_v26 = vunpack.i.l.bf16 %v3321_v41 }
 0x1b2   : > { %v1747_v22 = vsel %vm1716_vm14, %v1714_v1, %v3307_v19  ;;  %v1748_v37 = vsel %vm1716_vm14, %v1715_v16, %v3308_v17 }
 0x1b3   : > { %v3316_v2 = vpop.permute.xlu1 %3315  ;;  %v1811_v18 = vsel %vm1782_vm3, %v1778_v63, %v3322_v26  ;;  %v1812_v21 = vsel %vm1782_vm3, %v1779_v15, %v3323_v57 }
 0x1b4   : > { %v3331_v52 = vpop.permute.xlu0 %3330  ;;  %v3318_v3 = vunpack.i.h.bf16 %v3316_v2  ;;  %v3317_v14 = vunpack.i.l.bf16 %v3316_v2 }
 0x1b5   : > { %v3333_v35 = vunpack.i.h.bf16 %v3331_v52  ;;  %v3332_v53 = vunpack.i.l.bf16 %v3331_v52 }
 0x1b6   : > { %v1780_v4 = vsel %vm1749_vm15, %v1747_v22, %v3317_v14  ;;  %v1781_v39 = vsel %vm1749_vm15, %v1748_v37, %v3318_v3 }
 0x1b7   : > { %v3326_v13 = vpop.permute.xlu1 %3325  ;;  %v1844_v9 = vsel %vm1815_vm4, %v1811_v18, %v3332_v53  ;;  %v1845_v50 = vsel %vm1815_vm4, %v1812_v21, %v3333_v35 }
 0x1b8   : > { %v1862_v34 = vpack.c.bf16 %v1845_v50, %v1844_v9  ;;  %v3328_v32 = vunpack.i.h.bf16 %v3326_v13  ;;  %v3327_v31 = vunpack.i.l.bf16 %v3326_v13 }
 0x1ba   : > { %2670 = vmatprep.mubr.msk.bf16.mxu1 %vm1884_vm5, %v1862_v34  ;;  %v1813_v51 = vsel %vm1782_vm3, %v1780_v4, %v3327_v31  ;;  %v1814_v30 = vsel %vm1782_vm3, %v1781_v39, %v3328_v32 }
 0x1bb   : > { %v3336_v55 = vpop.permute.xlu1 %3335 }
 0x1bc   : > { %v3338_v29 = vunpack.i.h.bf16 %v3336_v55  ;;  %v3337_v11 = vunpack.i.l.bf16 %v3336_v55 }
 0x1be   : > { %v1846_v54 = vsel %vm1815_vm4, %v1813_v51, %v3337_v11  ;;  %v1847_v28 = vsel %vm1815_vm4, %v1814_v30, %v3338_v29 }
 0x1bf   : > { %v1863_v43 = vpack.c.bf16 %v1847_v28, %v1846_v54 }
 0x1c1   : > { %2671 = vmatmul.mubr.msk.bf16.gmra.mxu1 %vm1884_vm5, %v1863_v43 }
 0x1ea   : > { %v2644_v5 = vpop.f32.mrf.mxu0 }
 0x1eb   : > { %v2587_v33 = vpack.c.bf16 %v2644_v5, %v2644_v5  ;;  %v2330_v61 = vmul.f32 %v2644_v5, %v2644_v5  ;;  %v2262_v40 = vsel %vm1617_vm11, %v2644_v5, 0.0 }
 0x1ec   : > { %v1971_v27 = vpop.f32.mrf.mxu0 }
 0x1ed   : > { %2229 = vst.msk [vmem:[%s4731_s26 + $0x8] sm:$0xf] %vm2226_vm1, %v2587_v33  ;;  %v2585_v45 = vpack.c.bf16 %v1971_v27, %v1971_v27  ;;  %v2328_v12 = vmul.f32 %v1971_v27, %v1971_v27  ;;  %v2259_v49 = vsel %vm1617_vm11, %v1971_v27, 0.0  ;;  %v2363_v36 = vsel %vm1617_vm11, %v2330_v61, 0.0 }
 0x1ee   : > { %v2645_v42 = vpop.f32.mrf.mxu0 }
 0x1ef   : > { %2227 = vst.msk [vmem:[%s4731_s26] sm:$0xf] %vm2226_vm1, %v2585_v45  ;;  %v2588_v7 = vpack.c.bf16 %v2645_v42, %v2645_v42  ;;  %v2360_v10 = vsel %vm1617_vm11, %v2328_v12, 0.0  ;;  %v2331_v0 = vmul.f32 %v2645_v42, %v2645_v42  ;;  %v2264_v6 = vsel %vm1617_vm11, %v2645_v42, 0.0 }
 0x1f0   : > { %v1974_v38 = vpop.f32.mrf.mxu0 }
 0x1f1   : > { %2230 = vst.msk [vmem:[%s4731_s26 + $0xc] sm:$0xf] %vm2226_vm1, %v2588_v7  ;;  %v2586_v41 = vpack.c.bf16 %v1974_v38, %v1974_v38  ;;  %v2260_v60 = vsel %vm1617_vm11, %v1974_v38, 0.0  ;;  %v2329_v24 = vmul.f32 %v1974_v38, %v1974_v38  ;;  %v2365_v23 = vsel %vm1617_vm11, %v2331_v0, 0.0 }
 0x1f2   : > { %v2261_v8 = vadd.f32 %v2260_v60, %v2259_v49 }
 0x1f3   : > { %2228 = vst.msk [vmem:[%s4731_s26 + $0x4] sm:$0xf] %vm2226_vm1, %v2586_v41  ;;  %v2361_v57 = vsel %vm1617_vm11, %v2329_v24, 0.0 }
 0x1f4   : > { %v2263_v26 = vadd.f32 %v2262_v40, %v2261_v8  ;;  %v2362_v47 = vadd.f32 %v2361_v57, %v2360_v10 }
 0x1f6   : > { %v2364_v46 = vadd.f32 %v2363_v36, %v2362_v47  ;;  %v2265_v2 = vadd.f32 %v2264_v6, %v2263_v26 }
 0x1f8   : > { %v2366_v56 = vadd.f32 %v2365_v23, %v2364_v46 }
 0x1fe   : > { %v2648_v48 = vpop.f32.mrf.mxu0 }
 0x1ff   : > { %v2591_v44 = vpack.c.bf16 %v2648_v48, %v2648_v48  ;;  %v2334_v19 = vmul.f32 %v2648_v48, %v2648_v48  ;;  %v2270_v3 = vsel %vm1617_vm11, %v2648_v48, 0.0 }
 0x200   : > { %v1987_v52 = vpop.f32.mrf.mxu0 }
 0x201   : > { %2233 = vst.msk [vmem:[%s4731_s26 + $0x18] sm:$0xf] %vm2226_vm1, %v2591_v44  ;;  %v2589_v63 = vpack.c.bf16 %v1987_v52, %v1987_v52  ;;  %v2266_v15 = vsel %vm1617_vm11, %v1987_v52, 0.0  ;;  %v2332_v35 = vmul.f32 %v1987_v52, %v1987_v52  ;;  %v2371_v32 = vsel %vm1617_vm11, %v2334_v19, 0.0 }
 0x202   : > { %v2267_v53 = vadd.f32 %v2266_v15, %v2265_v2  ;;  %v2649_v20 = vpop.f32.mrf.mxu0 }
 0x203   : > { %2231 = vst.msk [vmem:[%s4731_s26 + $0x10] sm:$0xf] %vm2226_vm1, %v2589_v63  ;;  %v2367_v25 = vsel %vm1617_vm11, %v2332_v35, 0.0  ;;  %v2592_v18 = vpack.c.bf16 %v2649_v20, %v2649_v20  ;;  %v2335_v14 = vmul.f32 %v2649_v20, %v2649_v20  ;;  %v2272_v31 = vsel %vm1617_vm11, %v2649_v20, 0.0 }
 0x204   : > { %v2368_v21 = vadd.f32 %v2367_v25, %v2366_v56  ;;  %v1990_v17 = vpop.f32.mrf.mxu0 }
 0x205   : > { %2234 = vst.msk [vmem:[%s4731_s26 + $0x1c] sm:$0xf] %vm2226_vm1, %v2592_v18  ;;  %v2590_v13 = vpack.c.bf16 %v1990_v17, %v1990_v17  ;;  %v2268_v9 = vsel %vm1617_vm11, %v1990_v17, 0.0  ;;  %v2333_v50 = vmul.f32 %v1990_v17, %v1990_v17  ;;  %v2373_v22 = vsel %vm1617_vm11, %v2335_v14, 0.0 }
 0x206   : > { %v2269_v62 = vadd.f32 %v2268_v9, %v2267_v53 }
 0x207   : > { %2232 = vst.msk [vmem:[%s4731_s26 + $0x14] sm:$0xf] %vm2226_vm1, %v2590_v13  ;;  %v2369_v34 = vsel %vm1617_vm11, %v2333_v50, 0.0 }
 0x208   : > { %v2271_v58 = vadd.f32 %v2270_v3, %v2269_v62  ;;  %v2370_v59 = vadd.f32 %v2369_v34, %v2368_v21 }
 0x20a   : > { %v2372_v1 = vadd.f32 %v2371_v32, %v2370_v59  ;;  %v2273_v16 = vadd.f32 %v2272_v31, %v2271_v58 }
 0x20c   : > { %v2374_v37 = vadd.f32 %v2373_v22, %v2372_v1 }
 0x212   : > { %v2652_v55 = vpop.f32.mrf.mxu0 }
 0x213   : > { %v2595_v4 = vpack.c.bf16 %v2652_v55, %v2652_v55  ;;  %v2338_v27 = vmul.f32 %v2652_v55, %v2652_v55  ;;  %v2278_v61 = vsel %vm1617_vm11, %v2652_v55, 0.0 }
 0x214   : > { %v2003_v39 = vpop.f32.mrf.mxu0 }
 0x215   : > { %2237 = vst.msk [vmem:[%s4731_s26 + $0x28] sm:$0xf] %vm2226_vm1, %v2595_v4  ;;  %v2593_v29 = vpack.c.bf16 %v2003_v39, %v2003_v39  ;;  %v2274_v11 = vsel %vm1617_vm11, %v2003_v39, 0.0  ;;  %v2336_v51 = vmul.f32 %v2003_v39, %v2003_v39  ;;  %v2379_v24 = vsel %vm1617_vm11, %v2338_v27, 0.0 }
 0x216   : > { %v2275_v30 = vadd.f32 %v2274_v11, %v2273_v16  ;;  %v2653_v54 = vpop.f32.mrf.mxu0 }
 0x217   : > { %2235 = vst.msk [vmem:[%s4731_s26 + $0x20] sm:$0xf] %vm2226_vm1, %v2593_v29  ;;  %v2375_v28 = vsel %vm1617_vm11, %v2336_v51, 0.0  ;;  %v2596_v43 = vpack.c.bf16 %v2653_v54, %v2653_v54  ;;  %v2339_v38 = vmul.f32 %v2653_v54, %v2653_v54  ;;  %v2280_v8 = vsel %vm1617_vm11, %v2653_v54, 0.0 }
 0x218   : > { %v2376_v5 = vadd.f32 %v2375_v28, %v2374_v37  ;;  %v2006_v33 = vpop.f32.mrf.mxu0 }
 0x219   : > { %2238 = vst.msk [vmem:[%s4731_s26 + $0x2c] sm:$0xf] %vm2226_vm1, %v2596_v43  ;;  %v2594_v45 = vpack.c.bf16 %v2006_v33, %v2006_v33  ;;  %v2276_v42 = vsel %vm1617_vm11, %v2006_v33, 0.0  ;;  %v2337_v12 = vmul.f32 %v2006_v33, %v2006_v33  ;;  %v2381_v0 = vsel %vm1617_vm11, %v2339_v38, 0.0 }
 0x21a   : > { %v2277_v7 = vadd.f32 %v2276_v42, %v2275_v30 }
 0x21b   : > { %2236 = vst.msk [vmem:[%s4731_s26 + $0x24] sm:$0xf] %vm2226_vm1, %v2594_v45  ;;  %v2377_v49 = vsel %vm1617_vm11, %v2337_v12, 0.0 }
 0x21c   : > { %v2279_v41 = vadd.f32 %v2278_v61, %v2277_v7  ;;  %v2378_v60 = vadd.f32 %v2377_v49, %v2376_v5 }
 0x21e   : > { %v2380_v40 = vadd.f32 %v2379_v24, %v2378_v60  ;;  %v2281_v10 = vadd.f32 %v2280_v8, %v2279_v41 }
 0x220   : > { %v2382_v57 = vadd.f32 %v2381_v0, %v2380_v40 }
 0x226   : > { %v2656_v26 = vpop.f32.mrf.mxu0 }
 0x227   : > { %v2599_v47 = vpack.c.bf16 %v2656_v26, %v2656_v26  ;;  %v2342_v63 = vmul.f32 %v2656_v26, %v2656_v26  ;;  %v2286_v18 = vsel %vm1617_vm11, %v2656_v26, 0.0 }
 0x228   : > { %v2019_v36 = vpop.f32.mrf.mxu0 }
 0x229   : > { %2241 = vst.msk [vmem:[%s4731_s26 + $0x38] sm:$0xf] %vm2226_vm1, %v2599_v47  ;;  %v2597_v6 = vpack.c.bf16 %v2019_v36, %v2019_v36  ;;  %v2282_v46 = vsel %vm1617_vm11, %v2019_v36, 0.0  ;;  %v2340_v2 = vmul.f32 %v2019_v36, %v2019_v36  ;;  %v2387_v9 = vsel %vm1617_vm11, %v2342_v63, 0.0 }
 0x22a   : > { %v2657_v23 = vpop.f32.mrf.mxu0  ;;  %v2283_v44 = vadd.f32 %v2282_v46, %v2281_v10 }
 0x22b   : > { %2239 = vst.msk [vmem:[%s4731_s26 + $0x30] sm:$0xf] %vm2226_vm1, %v2597_v6  ;;  %v2383_v56 = vsel %vm1617_vm11, %v2340_v2, 0.0  ;;  %v2600_v48 = vpack.c.bf16 %v2657_v23, %v2657_v23  ;;  %v2343_v21 = vmul.f32 %v2657_v23, %v2657_v23  ;;  %v2288_v50 = vsel %vm1617_vm11, %v2657_v23, 0.0 }
 0x22c   : > { %v2022_v52 = vpop.f32.mrf.mxu0  ;;  %v2384_v20 = vadd.f32 %v2383_v56, %v2382_v57 }
 0x22d   : > { %2242 = vst.msk [vmem:[%s4731_s26 + $0x3c] sm:$0xf] %vm2226_vm1, %v2600_v48  ;;  %v2598_v15 = vpack.c.bf16 %v2022_v52, %v2022_v52  ;;  %v2284_v35 = vsel %vm1617_vm11, %v2022_v52, 0.0  ;;  %v2341_v53 = vmul.f32 %v2022_v52, %v2022_v52  ;;  %v2389_v14 = vsel %vm1617_vm11, %v2343_v21, 0.0 }
 0x22e   : > { %v2285_v25 = vadd.f32 %v2284_v35, %v2283_v44 }
 0x22f   : > { %2240 = vst.msk [vmem:[%s4731_s26 + $0x34] sm:$0xf] %vm2226_vm1, %v2598_v15  ;;  %v2385_v17 = vsel %vm1617_vm11, %v2341_v53, 0.0 }
 0x230   : > { %v2287_v19 = vadd.f32 %v2286_v18, %v2285_v25  ;;  %v2386_v13 = vadd.f32 %v2385_v17, %v2384_v20 }
 0x232   : > { %v2388_v62 = vadd.f32 %v2387_v9, %v2386_v13  ;;  %v2289_v3 = vadd.f32 %v2288_v50, %v2287_v19 }
 0x234   : > { %v2390_v34 = vadd.f32 %v2389_v14, %v2388_v62 }
 0x23a   : > { %v2660_v58 = vpop.f32.mrf.mxu1 }
 0x23b   : > { %v2603_v59 = vpack.c.bf16 %v2660_v58, %v2660_v58  ;;  %v2346_v61 = vmul.f32 %v2660_v58, %v2660_v58  ;;  %v2294_v49 = vsel %vm1617_vm11, %v2660_v58, 0.0 }
 0x23c   : > { %v2035_v32 = vpop.f32.mrf.mxu1 }
 0x23d   : > { %2245 = vst.msk [vmem:[%s4731_s26 + $0x48] sm:$0xf] %vm2226_vm1, %v2603_v59  ;;  %v2601_v31 = vpack.c.bf16 %v2035_v32, %v2035_v32  ;;  %v2344_v28 = vmul.f32 %v2035_v32, %v2035_v32  ;;  %v2290_v43 = vsel %vm1617_vm11, %v2035_v32, 0.0  ;;  %v2395_v24 = vsel %vm1617_vm11, %v2346_v61, 0.0 }
 0x23e   : > { %v2661_v1 = vpop.f32.mrf.mxu1  ;;  %v2291_v45 = vadd.f32 %v2290_v43, %v2289_v3 }
 0x23f   : > { %2243 = vst.msk [vmem:[%s4731_s26 + $0x40] sm:$0xf] %vm2226_vm1, %v2601_v31  ;;  %v2604_v16 = vpack.c.bf16 %v2661_v1, %v2661_v1  ;;  %v2391_v33 = vsel %vm1617_vm11, %v2344_v28, 0.0  ;;  %v2347_v8 = vmul.f32 %v2661_v1, %v2661_v1  ;;  %v2296_v26 = vsel %vm1617_vm11, %v2661_v1, 0.0 }
 0x240   : > { %v2038_v22 = vpop.f32.mrf.mxu1  ;;  %v2392_v12 = vadd.f32 %v2391_v33, %v2390_v34 }
 0x241   : > { %2246 = vst.msk [vmem:[%s4731_s26 + $0x4c] sm:$0xf] %vm2226_vm1, %v2604_v16  ;;  %v2602_v37 = vpack.c.bf16 %v2038_v22, %v2038_v22  ;;  %v2345_v5 = vmul.f32 %v2038_v22, %v2038_v22  ;;  %v2292_v27 = vsel %vm1617_vm11, %v2038_v22, 0.0  ;;  %v2397_v23 = vsel %vm1617_vm11, %v2347_v8, 0.0 }
 0x242   : > { %v2293_v7 = vadd.f32 %v2292_v27, %v2291_v45 }
 0x243   : > { %2244 = vst.msk [vmem:[%s4731_s26 + $0x44] sm:$0xf] %vm2226_vm1, %v2602_v37  ;;  %v2393_v42 = vsel %vm1617_vm11, %v2345_v5, 0.0 }
 0x244   : > { %v2394_v38 = vadd.f32 %v2393_v42, %v2392_v12  ;;  %v2295_v41 = vadd.f32 %v2294_v49, %v2293_v7 }
 0x246   : > { %v2396_v0 = vadd.f32 %v2395_v24, %v2394_v38  ;;  %v2297_v46 = vadd.f32 %v2296_v26, %v2295_v41 }
 0x248   : > { %v2398_v63 = vadd.f32 %v2397_v23, %v2396_v0 }
 0x251   : > { %v2664_v55 = vpop.f32.mrf.mxu1 }
 0x252   : > { %v2607_v4 = vpack.c.bf16 %v2664_v55, %v2664_v55  ;;  %v2350_v18 = vmul.f32 %v2664_v55, %v2664_v55  ;;  %v2302_v17 = vsel %vm1617_vm11, %v2664_v55, 0.0 }
 0x253   : > { %v2051_v39 = vpop.f32.mrf.mxu1 }
 0x254   : > { %2249 = vst.msk [vmem:[%s4731_s26 + $0x58] sm:$0xf] %vm2226_vm1, %v2607_v4  ;;  %v2605_v29 = vpack.c.bf16 %v2051_v39, %v2051_v39  ;;  %v2348_v40 = vmul.f32 %v2051_v39, %v2051_v39  ;;  %v2298_v47 = vsel %vm1617_vm11, %v2051_v39, 0.0  ;;  %v2403_v13 = vsel %vm1617_vm11, %v2350_v18, 0.0 }
 0x255   : > { %v2665_v11 = vpop.f32.mrf.mxu1  ;;  %v2299_v52 = vadd.f32 %v2298_v47, %v2297_v46 }
 0x256   : > { %2247 = vst.msk [vmem:[%s4731_s26 + $0x50] sm:$0xf] %vm2226_vm1, %v2605_v29  ;;  %v2608_v51 = vpack.c.bf16 %v2665_v11, %v2665_v11  ;;  %v2399_v56 = vsel %vm1617_vm11, %v2348_v40, 0.0  ;;  %v2351_v9 = vmul.f32 %v2665_v11, %v2665_v11  ;;  %v2304_v3 = vsel %vm1617_vm11, %v2665_v11, 0.0 }
 0x257   : > { %v2054_v30 = vpop.f32.mrf.mxu1  ;;  %v2400_v20 = vadd.f32 %v2399_v56, %v2398_v63 }
 0x258   : > { %2250 = vst.msk [vmem:[%s4731_s26 + $0x5c] sm:$0xf] %vm2226_vm1, %v2608_v51  ;;  %v2606_v54 = vpack.c.bf16 %v2054_v30, %v2054_v30  ;;  %v2349_v36 = vmul.f32 %v2054_v30, %v2054_v30  ;;  %v2300_v48 = vsel %vm1617_vm11, %v2054_v30, 0.0  ;;  %v2405_v59 = vsel %vm1617_vm11, %v2351_v9, 0.0 }
 0x259   : > { %v2301_v25 = vadd.f32 %v2300_v48, %v2299_v52 }
 0x25a   : > { %2248 = vst.msk [vmem:[%s4731_s26 + $0x54] sm:$0xf] %vm2226_vm1, %v2606_v54  ;;  %v2401_v35 = vsel %vm1617_vm11, %v2349_v36, 0.0 }
 0x25b   : > { %v2402_v21 = vadd.f32 %v2401_v35, %v2400_v20  ;;  %v2303_v19 = vadd.f32 %v2302_v17, %v2301_v25 }
 0x25d   : > { %v2404_v62 = vadd.f32 %v2403_v13, %v2402_v21  ;;  %v2305_v58 = vadd.f32 %v2304_v3, %v2303_v19 }
 0x25f   : > { %v2406_v16 = vadd.f32 %v2405_v59, %v2404_v62 }
 0x269   : > { %v2668_v60 = vpop.f32.mrf.mxu1 }
 0x26a   : > { %v2611_v10 = vpack.c.bf16 %v2668_v60, %v2668_v60  ;;  %v2354_v4 = vmul.f32 %v2668_v60, %v2668_v60  ;;  %v2310_v29 = vsel %vm1617_vm11, %v2668_v60, 0.0 }
 0x26b   : > { %v2067_v57 = vpop.f32.mrf.mxu1 }
 0x26c   : > { %2253 = vst.msk [vmem:[%s4731_s26 + $0x68] sm:$0xf] %vm2226_vm1, %v2611_v10  ;;  %v2609_v6 = vpack.c.bf16 %v2067_v57, %v2067_v57  ;;  %v2352_v50 = vmul.f32 %v2067_v57, %v2067_v57  ;;  %v2306_v14 = vsel %vm1617_vm11, %v2067_v57, 0.0  ;;  %v2411_v30 = vsel %vm1617_vm11, %v2354_v4, 0.0 }
 0x26d   : > { %v2669_v2 = vpop.f32.mrf.mxu1  ;;  %v2307_v1 = vadd.f32 %v2306_v14, %v2305_v58 }
 0x26e   : > { %2251 = vst.msk [vmem:[%s4731_s26 + $0x60] sm:$0xf] %vm2226_vm1, %v2609_v6  ;;  %v2612_v44 = vpack.c.bf16 %v2669_v2, %v2669_v2  ;;  %v2407_v32 = vsel %vm1617_vm11, %v2352_v50, 0.0  ;;  %v2355_v54 = vmul.f32 %v2669_v2, %v2669_v2  ;;  %v2312_v33 = vsel %vm1617_vm11, %v2669_v2, 0.0 }
 0x26f   : > { %v2070_v15 = vpop.f32.mrf.mxu1  ;;  %v2408_v37 = vadd.f32 %v2407_v32, %v2406_v16 }
 0x270   : > { %2254 = vst.msk [vmem:[%s4731_s26 + $0x6c] sm:$0xf] %vm2226_vm1, %v2612_v44  ;;  %v2610_v53 = vpack.c.bf16 %v2070_v15, %v2070_v15  ;;  %v2353_v34 = vmul.f32 %v2070_v15, %v2070_v15  ;;  %v2308_v31 = vsel %vm1617_vm11, %v2070_v15, 0.0  ;;  %v2413_v61 = vsel %vm1617_vm11, %v2355_v54, 0.0 }
 0x271   : > { %v2309_v55 = vadd.f32 %v2308_v31, %v2307_v1 }
 0x272   : > { %2252 = vst.msk [vmem:[%s4731_s26 + $0x64] sm:$0xf] %vm2226_vm1, %v2610_v53  ;;  %v2409_v22 = vsel %vm1617_vm11, %v2353_v34, 0.0 }
 0x273   : > { %v2410_v39 = vadd.f32 %v2409_v22, %v2408_v37  ;;  %v2311_v11 = vadd.f32 %v2310_v29, %v2309_v55 }
 0x275   : > { %v2412_v43 = vadd.f32 %v2411_v30, %v2410_v39  ;;  %v2313_v12 = vadd.f32 %v2312_v33, %v2311_v11 }
 0x277   : > { %v2414_v60 = vadd.f32 %v2413_v61, %v2412_v43 }
 0x281   : > { %v2672_v51 = vpop.f32.mrf.mxu1 }
 0x282   : > { %v2615_v28 = vpack.c.bf16 %v2672_v51, %v2672_v51  ;;  %v2358_v8 = vmul.f32 %v2672_v51, %v2672_v51  ;;  %v2318_v47 = vsel %vm1617_vm11, %v2672_v51, 0.0 }
 0x283   : > { %v2083_v5 = vpop.f32.mrf.mxu1 }
 0x284   : > { %2257 = vst.msk [vmem:[%s4731_s26 + $0x78] sm:$0xf] %vm2226_vm1, %v2615_v28  ;;  %v2613_v27 = vpack.c.bf16 %v2083_v5, %v2083_v5  ;;  %v2314_v45 = vsel %vm1617_vm11, %v2083_v5, 0.0  ;;  %v2356_v42 = vmul.f32 %v2083_v5, %v2083_v5  ;;  %v2419_v23 = vsel %vm1617_vm11, %v2358_v8, 0.0 }
 0x285   : > { %v2673_v7 = vpop.f32.mrf.mxu1  ;;  %v2315_v41 = vadd.f32 %v2314_v45, %v2313_v12 }
 0x286   : > { %2255 = vst.msk [vmem:[%s4731_s26 + $0x70] sm:$0xf] %vm2226_vm1, %v2613_v27  ;;  %v2415_v38 = vsel %vm1617_vm11, %v2356_v42, 0.0  ;;  %v2616_v49 = vpack.c.bf16 %v2673_v7, %v2673_v7  ;;  %v2359_v36 = vmul.f32 %v2673_v7, %v2673_v7  ;;  %v2320_v56 = vsel %vm1617_vm11, %v2673_v7, 0.0 }
 0x287   : > { %v2086_v24 = vpop.f32.mrf.mxu1  ;;  %v2416_v57 = vadd.f32 %v2415_v38, %v2414_v60 }
 0x288   : > { %2258 = vst.msk [vmem:[%s4731_s26 + $0x7c] sm:$0xf] %vm2226_vm1, %v2616_v49  ;;  %v2614_v40 = vpack.c.bf16 %v2086_v24, %v2086_v24  ;;  %v2316_v10 = vsel %vm1617_vm11, %v2086_v24, 0.0  ;;  %v2357_v0 = vmul.f32 %v2086_v24, %v2086_v24  ;;  %v2421_v52 = vsel %vm1617_vm11, %v2359_v36, 0.0 }
 0x289   : > { %v2317_v26 = vadd.f32 %v2316_v10, %v2315_v41 }
 0x28a   : > { %2256 = vst.msk [vmem:[%s4731_s26 + $0x74] sm:$0xf] %vm2226_vm1, %v2614_v40  ;;  %v2417_v6 = vsel %vm1617_vm11, %v2357_v0, 0.0 }
 0x28b   : > { %v2319_v46 = vadd.f32 %v2318_v47, %v2317_v26  ;;  %v2418_v2 = vadd.f32 %v2417_v6, %v2416_v57 }
 0x28d   : > { %v2321_v48 = vadd.f32 %v2320_v56, %v2319_v46  ;;  %v2420_v44 = vadd.f32 %v2419_v23, %v2418_v2 }
 0x28f   : > { %v2322_v63 = vrot.slane %v2321_v48, 4  ;;  %v2422_v15 = vadd.f32 %v2421_v52, %v2420_v44 }
 0x291   : > { %v2323_v35 = vadd.f32 %v2322_v63, %v2321_v48  ;;  %v2423_v53 = vrot.slane %v2422_v15, 4 }
 0x293   : > { %v2324_v20 = vrot.slane %v2323_v35, 2  ;;  %v2424_v25 = vadd.f32 %v2423_v53, %v2422_v15 }
 0x295   : > { %v2325_v18 = vadd.f32 %v2324_v20, %v2323_v35  ;;  %v2425_v21 = vrot.slane %v2424_v25, 2 }
 0x297   : > { %v2326_v17 = vrot.slane %v2325_v18, 1  ;;  %v2426_v19 = vadd.f32 %v2425_v21, %v2424_v25 }
 0x299   : > { %v2427_v13 = vrot.slane %v2426_v19, 1  ;;  %v2327_v9 = vadd.f32 %v2326_v17, %v2325_v18 }
 0x29b   : > { %v2428_v50 = vadd.f32 %v2427_v13, %v2426_v19 }
 0x29d   : > { %v2429_v62 = vsel %vm476_vm0, %v2327_v9, %v2428_v50 }
 0x29e   : > { %2431 = vst.msk [vmem:[%s235_s30] sm:$0x3] %vm2430_vm2, %v2429_v62 }
 0x29f PF: > { %s16_s18 = sadd.s32 1, %s3350_s18  }
 0x2a0   : > { %p13_p4 = scmp.ge.s32.totalorder %s16_s18, 4  }
 0x2a2   :  { %15 = sbr.rel (!%p13_p4) target bundleno = 1 (0x1), region = 78 }

// kernel: _resblock_pallas.3
= control target key start
LH: loop header
LB: loop body
LE: loop exit
PB: predicated region body
PF: predicated region fallthrough
CT: control target
= control target key end

     0   :  { %s3473_s21 = smov 0   ;;  %s5365_s0 = inlined_call_operand.vmem [shape: bf16[2,16,16,8], index: 0, kind: input, shape index: {}]   ;;  %s5366_s1 = inlined_call_operand.vmem [shape: f32[2,16,16,4], index: 1, kind: input, shape index: {}]   ;;  %s5367_s2 = inlined_call_operand.vmem [shape: f32[1,8], index: 2, kind: input, shape index: {}]   ;;  %s5368_s3 = inlined_call_operand.vmem [shape: f32[1,8], index: 3, kind: input, shape index: {}]   ;;  %s5369_s4 = inlined_call_operand.vmem [shape: bf16[76,8], index: 4, kind: input, shape index: {}]   ;;  %s5370_s5 = inlined_call_operand.vmem [shape: f32[1,8], index: 5, kind: input, shape index: {}]   ;;  %s5371_s6 = inlined_call_operand.vmem [shape: f32[2,16,16,8], index: 6, kind: output, shape index: {}]  }
   0x1 LB: > { %s2483_s22 = sadd.s32 4294967295, %s3426_s21   ;;  %p2487_p0 = scmp.ge.s32.totalorder %s3426_s21, 1  ;;  %s3426_s21 = sphi %s3473_s21, %s16_s21  }
   0x2   : > { %p222_p1 = scmp.lt.s32.totalorder %s3426_s21, 3 }
   0x4   : > { %p223_p2 = pnand %p2487_p0, %p222_p1 }
   0x6   : > { %226 = sbr.rel (%p223_p2) target bundleno = 689 (0x2b1), region = 44 }
   0xb   : > { %vm576_vm0 = vcmask 1040384   ;;  %p257_p3 = scmp.lt.s32.totalorder %s2483_s22, 1  ;;  %v3428_v0 = vmov 0.0   ;;  %vm742_vm1 = vcmask 1046528   ;;  %vm919_vm2 = vcmask 1045504   ;;  %s3429_s7 = smov 8  }
   0xc   : > { %v3481_v1 = vrot.slane %v3428_v0, 7  ;;  %v3498_v9 = vld [vmem:[%s5367_s2] ss:$0 sm:$0xff]  ;;  %s3430_s8 = smov 16   ;;  %s3431_s9 = smov 24  }
   0xd   : > { %s5642_s22 = smov (!%p257_p3, %s2483_s22), 1  ;;  %v3520_v21 = vld [vmem:[%s5368_s3] ss:$0 sm:$0xff]  ;;  %s3432_s10 = smov 32  }
   0xe   : > { %5464 = vst [vmem:[#allocation2_spill] sm:$0xff] %v3481_v1  ;;  %v3487_v2 = vsel %vm576_vm0, 0.0, %v3481_v1  ;;  %v693_v3 = vsel %vm576_vm0, %v3481_v1, 0.0  ;;  %v744_v4 = vrot.slane %v3481_v1, 1  ;;  %v921_v5 = vrot.slane %v3481_v1, 2  ;;  %s2520_s23 = sshll.u32 %s5642_s22, 7 }
   0xf   : > { %5465 = vst [vmem:[#allocation3_spill] sm:$0xff] %v3487_v2  ;;  %v743_v6 = vrot.slane %v3487_v2, 1  ;;  %v746_v7 = vrot.slane %v693_v3, 1  ;;  %v923_v8 = vrot.slane %v693_v3, 2  ;;  %v920_v10 = vrot.slane %v3487_v2, 2  ;;  %s3504_s28 = scalar_lea.vmem %s5365_s0, %s2520_s23  ;;  %s3433_s11 = smov 40  }
  0x10   : > { %v2587_v13 = vld [vmem:[%s3504_s28 + $0x8] sm:$0xff]   ;;  %v2524_v14 = vld [vmem:[%s3504_s28] sm:$0xff]   ;;  %v2588_v15 = vld [vmem:[%s3504_s28 + $0x10] sm:$0xff]   ;;  %s3434_s12 = smov 48   ;;  %s3435_s17 = smov 56  }
  0x11   : > { %v745_v11 = vsel %vm742_vm1, %v743_v6, %v744_v4  ;;  %v747_v12 = vsel %vm742_vm1, %v744_v4, %v746_v7  ;;  %v3512_v16 = vsel %vm919_vm2, %v920_v10, %v921_v5  ;;  %v2529_v18 = vunpack.c.l.bf16 %v2587_v13  ;;  %v2589_v20 = vld [vmem:[%s3504_s28 + $0x18] sm:$0xff]   ;;  %s2521_s20 = sshll.u32 %s5642_s22, 8 }
  0x12   : > { %v3514_v17 = vpack.i.bf16 %v747_v12, %v745_v11  ;;  %v2530_v19 = vunpack.c.h.bf16 %v2587_v13  ;;  %v2525_v22 = vunpack.c.l.bf16 %v2524_v14  ;;  %v2526_v23 = vunpack.c.h.bf16 %v2524_v14  ;;  %v2590_v11 = vld [vmem:[%s3504_s28 + $0x20] sm:$0xff]   ;;  %s4301_s27 = scalar_lea.vmem %s5366_s1, %s2521_s20 }
  0x13   : > { %v2533_v24 = vunpack.c.l.bf16 %v2588_v15  ;;  %v2534_v25 = vunpack.c.h.bf16 %v2588_v15  ;;  %v346_v26 = vmul.f32 %v2529_v18, %v3498_v9  ;;  %v2537_v28 = vunpack.c.l.bf16 %v2589_v20 }
  0x14   : > { %5466 = vst [vmem:[#allocation4_spill] sm:$0xff] %v3514_v17  ;;  %2696 = vrot.lane.b32.xlu0 %v3514_v17, %s3429_s7  ;;  %v347_v27 = vmul.f32 %v2530_v19, %v3498_v9  ;;  %v3527_v29 = vsel %vm919_vm2, %v921_v5, %v923_v8  ;;  %v344_v30 = vmul.f32 %v2525_v22, %v3498_v9  ;;  %v2538_v36 = vunpack.c.h.bf16 %v2589_v20 }
  0x15   : > { %v345_v31 = vmul.f32 %v2526_v23, %v3498_v9  ;;  %v348_v32 = vmul.f32 %v2533_v24, %v3498_v9  ;;  %v349_v33 = vmul.f32 %v2534_v25, %v3498_v9  ;;  %v385_v34 = vadd.f32 %v3520_v21, %v346_v26  ;;  %v2591_v26 = vld [vmem:[%s3504_s28 + $0x28] sm:$0xff]  }
  0x16   : > { %v386_v35 = vadd.f32 %v3520_v21, %v347_v27  ;;  %v350_v37 = vmul.f32 %v2537_v28, %v3498_v9  ;;  %v383_v38 = vadd.f32 %v3520_v21, %v344_v30  ;;  %v351_v48 = vmul.f32 %v2538_v36, %v3498_v9 }
  0x17   : > { %v384_v39 = vadd.f32 %v3520_v21, %v345_v31  ;;  %v387_v40 = vadd.f32 %v3520_v21, %v348_v32  ;;  %v388_v41 = vadd.f32 %v3520_v21, %v349_v33  ;;  %vm417_vm3 = vcmp.gt.f32.partialorder %v385_v34, 0.0 }
  0x18   : > { %vm418_vm4 = vcmp.gt.f32.partialorder %v386_v35, 0.0  ;;  %v449_v42 = vmul.f32 0.01, %v385_v34  ;;  %v450_v43 = vmul.f32 0.01, %v386_v35  ;;  %vm415_vm5 = vcmp.gt.f32.partialorder %v383_v38, 0.0 }
  0x19   : > { %vm416_vm6 = vcmp.gt.f32.partialorder %v384_v39, 0.0  ;;  %v447_v44 = vmul.f32 0.01, %v383_v38  ;;  %v448_v45 = vmul.f32 0.01, %v384_v39  ;;  %vm419_vm7 = vcmp.gt.f32.partialorder %v387_v40, 0.0 }
  0x1a   : > { %v481_v46 = vsel %vm417_vm3, %v385_v34, %v449_v42  ;;  %v482_v47 = vsel %vm418_vm4, %v386_v35, %v450_v43  ;;  %vm420_vm8 = vcmp.gt.f32.partialorder %v388_v41, 0.0  ;;  %v451_v55 = vmul.f32 0.01, %v387_v40 }
  0x1b   : > { %v582_v49 = vrot.slane %v481_v46, 7  ;;  %v583_v50 = vrot.slane %v482_v47, 7  ;;  %v479_v51 = vsel %vm415_vm5, %v383_v38, %v447_v44  ;;  %v480_v52 = vsel %vm416_vm6, %v384_v39, %v448_v45  ;;  %v2592_v39 = vld [vmem:[%s3504_s28 + $0x30] sm:$0xff]  }
  0x1c   : > { %v579_v53 = vrot.slane %v479_v51, 7  ;;  %v580_v54 = vrot.slane %v480_v52, 7  ;;  %v452_v59 = vmul.f32 0.01, %v388_v41  ;;  %v389_v63 = vadd.f32 %v3520_v21, %v350_v37 }
  0x1d   : > { %v3542_v56 = vsel %vm576_vm0, %v582_v49, %v583_v50  ;;  %v3545_v57 = vsel %vm576_vm0, 0.0, %v582_v49  ;;  %v3548_v58 = vsel %vm576_vm0, %v583_v50, 0.0  ;;  %v483_v5 = vsel %vm419_vm7, %v387_v40, %v451_v55 }
  0x1e   : > { %5467 = vst [vmem:[#allocation5_spill] sm:$0xff] %v3542_v56  ;;  %5468 = vst [vmem:[#allocation6_spill] sm:$0xff] %v3545_v57  ;;  %v753_v60 = vrot.slane %v3545_v57, 1  ;;  %v754_v61 = vrot.slane %v3542_v56, 1  ;;  %v756_v62 = vrot.slane %v3548_v58, 1  ;;  %v3555_v0 = vsel %vm576_vm0, %v579_v53, %v580_v54 }
  0x1f   : > { %5469 = vst [vmem:[#allocation7_spill] sm:$0xff] %v3555_v0  ;;  %v3558_v3 = vsel %vm576_vm0, 0.0, %v579_v53  ;;  %v3561_v4 = vsel %vm576_vm0, %v580_v54, 0.0  ;;  %v749_v10 = vrot.slane %v3555_v0, 1  ;;  %v484_v14 = vsel %vm420_vm8, %v388_v41, %v452_v59 }
  0x20   : > { %5470 = vst [vmem:[#allocation8_spill] sm:$0xff] %v3558_v3  ;;  %v755_v6 = vsel %vm742_vm1, %v753_v60, %v754_v61  ;;  %v757_v7 = vsel %vm742_vm1, %v754_v61, %v756_v62  ;;  %v748_v8 = vrot.slane %v3558_v3, 1  ;;  %v751_v13 = vrot.slane %v3561_v4, 1 }
  0x21   : > { %v3569_v12 = vpack.i.bf16 %v757_v7, %v755_v6  ;;  %v585_v15 = vrot.slane %v483_v5, 7  ;;  %v586_v19 = vrot.slane %v484_v14, 7  ;;  %v390_v20 = vadd.f32 %v3520_v21, %v351_v48 }
  0x22   : > { %v750_v18 = vsel %vm742_vm1, %v748_v8, %v749_v10  ;;  %vm421_vm9 = vcmp.gt.f32.partialorder %v389_v63, 0.0  ;;  %v752_v22 = vsel %vm742_vm1, %v749_v10, %v751_v13  ;;  %v453_v24 = vmul.f32 0.01, %v389_v63 }
  0x23   : > { %5471 = vst [vmem:[#allocation9_spill] sm:$0xff] %v3569_v12  ;;  %2706 = vrot.lane.b32.xlu1 %v3569_v12, %s3429_s7  ;;  %v3579_v23 = vsel %vm576_vm0, 0.0, %v585_v15  ;;  %v2541_v25 = vunpack.c.l.bf16 %v2590_v11  ;;  %v3582_v27 = vpack.i.bf16 %v752_v22, %v750_v18  ;;  %v3585_v28 = vsel %vm576_vm0, %v585_v15, %v586_v19 }
  0x24   : > { %5472 = vst [vmem:[#allocation10_spill] sm:$0xff] %v3579_v23  ;;  %5474 = vst [vmem:[#allocation12_spill] sm:$0xff] %v3585_v28  ;;  %v3588_v30 = vsel %vm576_vm0, %v586_v19, 0.0  ;;  %v758_v31 = vrot.slane %v3579_v23, 1  ;;  %v759_v32 = vrot.slane %v3585_v28, 1  ;;  %vm422_vm10 = vcmp.gt.f32.partialorder %v390_v20, 0.0 }
  0x25   : > { %5473 = vst [vmem:[#allocation11_spill] sm:$0xff] %v3582_v27  ;;  %v761_v33 = vrot.slane %v3588_v30, 1  ;;  %v454_v34 = vmul.f32 0.01, %v390_v20  ;;  %2701 = vrot.lane.b32.xlu0 %v3582_v27, %s3429_s7  ;;  %v485_v35 = vsel %vm421_vm9, %v389_v63, %v453_v24  ;;  %v2542_v36 = vunpack.c.h.bf16 %v2590_v11 }
  0x26   : > { %v352_v37 = vmul.f32 %v2541_v25, %v3498_v9  ;;  %v2545_v38 = vunpack.c.l.bf16 %v2591_v26  ;;  %v760_v40 = vsel %vm742_vm1, %v758_v31, %v759_v32  ;;  %v588_v43 = vrot.slane %v485_v35, 7 }
  0x27   : > { %v762_v41 = vsel %vm742_vm1, %v759_v32, %v761_v33  ;;  %v486_v42 = vsel %vm422_vm10, %v390_v20, %v454_v34  ;;  %v353_v46 = vmul.f32 %v2542_v36, %v3498_v9  ;;  %v2546_v49 = vunpack.c.h.bf16 %v2591_v26  ;;  %v2593_v26 = vld [vmem:[%s3504_s28 + $0x38] sm:$0xff]  }
  0x28   : > { %v3600_v44 = vpack.i.bf16 %v762_v41, %v760_v40  ;;  %v589_v45 = vrot.slane %v486_v42, 7  ;;  %v391_v47 = vadd.f32 %v3520_v21, %v352_v37  ;;  %v3605_v48 = vsel %vm576_vm0, 0.0, %v588_v43 }
  0x29   : > { %v354_v50 = vmul.f32 %v2545_v38, %v3498_v9  ;;  %v2549_v51 = vunpack.c.l.bf16 %v2592_v39  ;;  %v763_v54 = vrot.slane %v3605_v48, 1  ;;  %v392_v55 = vadd.f32 %v3520_v21, %v353_v46 }
  0x2a   : > { %5475 = vst [vmem:[#allocation13_spill] sm:$0xff] %v3600_v44  ;;  %2711 = vrot.lane.b32.xlu1 %v3600_v44, %s3429_s7  ;;  %v3611_v52 = vsel %vm576_vm0, %v588_v43, %v589_v45  ;;  %v3614_v53 = vsel %vm576_vm0, %v589_v45, 0.0  ;;  %vm423_vm11 = vcmp.gt.f32.partialorder %v391_v47, 0.0  ;;  %v455_v61 = vmul.f32 0.01, %v391_v47 }
  0x2b   : > { %v764_v59 = vrot.slane %v3611_v52, 1  ;;  %v766_v60 = vrot.slane %v3614_v53, 1  ;;  %vm424_vm12 = vcmp.gt.f32.partialorder %v392_v55, 0.0  ;;  %v456_v62 = vmul.f32 0.01, %v392_v55 }
  0x2c   : > { %v355_v63 = vmul.f32 %v2546_v49, %v3498_v9  ;;  %v393_v5 = vadd.f32 %v3520_v21, %v354_v50  ;;  %v487_v8 = vsel %vm423_vm11, %v391_v47, %v455_v61  ;;  %v2550_v10 = vunpack.c.h.bf16 %v2592_v39 }
  0x2d   : > { %v765_v6 = vsel %vm742_vm1, %v763_v54, %v764_v59  ;;  %v767_v7 = vsel %vm742_vm1, %v764_v59, %v766_v60  ;;  %v488_v13 = vsel %vm424_vm12, %v392_v55, %v456_v62  ;;  %v591_v14 = vrot.slane %v487_v8, 7  ;;  %v2594_v55 = vld [vmem:[%s3504_s28 + $0x40] sm:$0xff]  }
  0x2e   : > { %v3624_v11 = vpack.i.bf16 %v767_v7, %v765_v6  ;;  %v394_v15 = vadd.f32 %v3520_v21, %v355_v63  ;;  %v592_v18 = vrot.slane %v488_v13, 7  ;;  %vm425_vm13 = vcmp.gt.f32.partialorder %v393_v5, 0.0  ;;  %v2595_v13 = vld [vmem:[%s3504_s28 + $0x48] sm:$0xff]  }
  0x2f   : > { %v457_v19 = vmul.f32 0.01, %v393_v5  ;;  %v356_v20 = vmul.f32 %v2549_v51, %v3498_v9  ;;  %v3631_v22 = vsel %vm576_vm0, 0.0, %v591_v14  ;;  %v357_v25 = vmul.f32 %v2550_v10, %v3498_v9 }
  0x30   : > { %5476 = vst [vmem:[#allocation14_spill] sm:$0xff] %v3624_v11  ;;  %2716 = vrot.lane.b32.xlu0 %v3624_v11, %s3429_s7  ;;  %vm426_vm14 = vcmp.gt.f32.partialorder %v394_v15, 0.0  ;;  %v458_v24 = vmul.f32 0.01, %v394_v15  ;;  %v3636_v31 = vsel %vm576_vm0, %v591_v14, %v592_v18  ;;  %v3639_v32 = vsel %vm576_vm0, %v592_v18, 0.0 }
  0x31   : > { %v768_v33 = vrot.slane %v3631_v22, 1  ;;  %v489_v34 = vsel %vm425_vm13, %v393_v5, %v457_v19  ;;  %v769_v35 = vrot.slane %v3636_v31, 1  ;;  %v771_v36 = vrot.slane %v3639_v32, 1 }
  0x32   : > { %v490_v37 = vsel %vm426_vm14, %v394_v15, %v458_v24  ;;  %v594_v38 = vrot.slane %v489_v34, 7  ;;  %v395_v40 = vadd.f32 %v3520_v21, %v356_v20  ;;  %v396_v41 = vadd.f32 %v3520_v21, %v357_v25 }
  0x33   : > { %v595_v39 = vrot.slane %v490_v37, 7  ;;  %v2553_v42 = vunpack.c.l.bf16 %v2593_v26  ;;  %v770_v43 = vsel %vm742_vm1, %v768_v33, %v769_v35  ;;  %v772_v45 = vsel %vm742_vm1, %v769_v35, %v771_v36 }
  0x34   : > { %v3649_v46 = vsel %vm576_vm0, 0.0, %v594_v38  ;;  %v2554_v47 = vunpack.c.h.bf16 %v2593_v26  ;;  %v3651_v49 = vpack.i.bf16 %v772_v45, %v770_v43  ;;  %vm427_vm15 = vcmp.gt.f32.partialorder %v395_v40, 0.0 }
  0x35   : > { %v3654_v50 = vsel %vm576_vm0, %v594_v38, %v595_v39  ;;  %v3657_v51 = vsel %vm576_vm0, %v595_v39, 0.0  ;;  %v773_v54 = vrot.slane %v3649_v46, 1  ;;  %vm428_vm3 = vcmp.gt.f32.partialorder %v396_v41, 0.0 }
  0x36   : > { %5477 = vst [vmem:[#allocation15_spill] sm:$0xff] %v3651_v49  ;;  %v774_v59 = vrot.slane %v3654_v50, 1  ;;  %v776_v60 = vrot.slane %v3657_v51, 1  ;;  %2721 = vrot.lane.b32.xlu1 %v3651_v49, %s3429_s7  ;;  %v459_v61 = vmul.f32 0.01, %v395_v40  ;;  %v358_v63 = vmul.f32 %v2553_v42, %v3498_v9 }
  0x37   : > { %v460_v62 = vmul.f32 0.01, %v396_v41  ;;  %v359_v5 = vmul.f32 %v2554_v47, %v3498_v9  ;;  %v2557_v8 = vunpack.c.l.bf16 %v2594_v55  ;;  %v2558_v10 = vunpack.c.h.bf16 %v2594_v55 }
  0x38   : > { %v775_v6 = vsel %vm742_vm1, %v773_v54, %v774_v59  ;;  %v777_v7 = vsel %vm742_vm1, %v774_v59, %v776_v60  ;;  %v491_v15 = vsel %vm427_vm15, %v395_v40, %v459_v61  ;;  %v397_v19 = vadd.f32 %v3520_v21, %v358_v63 }
  0x39   : > { %v3670_v14 = vpack.i.bf16 %v777_v7, %v775_v6  ;;  %v492_v18 = vsel %vm428_vm3, %v396_v41, %v460_v62  ;;  %v597_v20 = vrot.slane %v491_v15, 7  ;;  %v398_v25 = vadd.f32 %v3520_v21, %v359_v5 }
  0x3a   : > { %v598_v24 = vrot.slane %v492_v18, 7  ;;  %v360_v26 = vmul.f32 %v2557_v8, %v3498_v9  ;;  %vm429_vm4 = vcmp.gt.f32.partialorder %v397_v19, 0.0  ;;  %v461_v33 = vmul.f32 0.01, %v397_v19 }
  0x3b   : > { %5478 = vst [vmem:[#allocation16_spill] sm:$0xff] %v3670_v14  ;;  %2726 = vrot.lane.b32.xlu0 %v3670_v14, %s3429_s7  ;;  %v361_v34 = vmul.f32 %v2558_v10, %v3498_v9  ;;  %v2561_v35 = vunpack.c.l.bf16 %v2595_v13  ;;  %v3682_v37 = vsel %vm576_vm0, 0.0, %v597_v20  ;;  %vm430_vm5 = vcmp.gt.f32.partialorder %v398_v25, 0.0 }
  0x3c   : > { %v3679_v36 = vsel %vm576_vm0, %v597_v20, %v598_v24  ;;  %v3685_v38 = vsel %vm576_vm0, %v598_v24, 0.0  ;;  %v778_v39 = vrot.slane %v3682_v37, 1  ;;  %v462_v42 = vmul.f32 0.01, %v398_v25 }
  0x3d   : > { %v779_v40 = vrot.slane %v3679_v36, 1  ;;  %v781_v41 = vrot.slane %v3685_v38, 1  ;;  %v493_v43 = vsel %vm429_vm4, %v397_v19, %v461_v33  ;;  %v399_v45 = vadd.f32 %v3520_v21, %v360_v26  ;;  %v2596_v19 = vld [vmem:[%s3504_s28 + $0x50] sm:$0xff]  }
  0x3e   : > { %v400_v47 = vadd.f32 %v3520_v21, %v361_v34  ;;  %v2562_v54 = vunpack.c.h.bf16 %v2595_v13  ;;  %v494_v60 = vsel %vm430_vm5, %v398_v25, %v462_v42  ;;  %v600_v61 = vrot.slane %v493_v43, 7 }
  0x3f   : > { %v780_v55 = vsel %vm742_vm1, %v778_v39, %v779_v40  ;;  %v782_v59 = vsel %vm742_vm1, %v779_v40, %v781_v41  ;;  %v601_v63 = vrot.slane %v494_v60, 7  ;;  %vm431_vm6 = vcmp.gt.f32.partialorder %v399_v45, 0.0 }
  0x40   : > { %v3694_v62 = vpack.i.bf16 %v782_v59, %v780_v55  ;;  %vm432_vm7 = vcmp.gt.f32.partialorder %v400_v47, 0.0  ;;  %v3697_v5 = vsel %vm576_vm0, 0.0, %v600_v61  ;;  %v463_v6 = vmul.f32 0.01, %v399_v45  ;;  %v2597_v59 = vld [vmem:[%s3504_s28 + $0x58] sm:$0xff]  }
  0x41   : > { %5480 = vst [vmem:[#allocation18_spill] sm:$0xff] %v3697_v5  ;;  %v464_v7 = vmul.f32 0.01, %v400_v47  ;;  %v362_v8 = vmul.f32 %v2561_v35, %v3498_v9  ;;  %v3703_v10 = vsel %vm576_vm0, %v600_v61, %v601_v63  ;;  %v3706_v13 = vsel %vm576_vm0, %v601_v63, 0.0 }
  0x42   : > { %5479 = vst [vmem:[#allocation17_spill] sm:$0xff] %v3694_v62  ;;  %2731 = vrot.lane.b32.xlu1 %v3694_v62, %s3429_s7  ;;  %5481 = vst [vmem:[#allocation19_spill] sm:$0xff] %v3703_v10  ;;  %v783_v15 = vrot.slane %v3697_v5, 1  ;;  %v363_v18 = vmul.f32 %v2562_v54, %v3498_v9  ;;  %v784_v20 = vrot.slane %v3703_v10, 1  ;;  %v786_v24 = vrot.slane %v3706_v13, 1 }
  0x43   : > { %v495_v25 = vsel %vm431_vm6, %v399_v45, %v463_v6  ;;  %v496_v26 = vsel %vm432_vm7, %v400_v47, %v464_v7  ;;  %v401_v35 = vadd.f32 %v3520_v21, %v362_v8  ;;  %v2565_v42 = vunpack.c.l.bf16 %v2596_v19 }
  0x44   : > { %v603_v33 = vrot.slane %v495_v25, 7  ;;  %v604_v34 = vrot.slane %v496_v26, 7  ;;  %v402_v39 = vadd.f32 %v3520_v21, %v363_v18  ;;  %v785_v40 = vsel %vm742_vm1, %v783_v15, %v784_v20 }
  0x45   : > { %v787_v41 = vsel %vm742_vm1, %v784_v20, %v786_v24  ;;  %v2566_v43 = vunpack.c.h.bf16 %v2596_v19  ;;  %vm433_vm8 = vcmp.gt.f32.partialorder %v401_v35, 0.0  ;;  %v465_v6 = vmul.f32 0.01, %v401_v35  ;;  %v2598_v24 = vld [vmem:[%s3504_s28 + $0x60] sm:$0xff]  }
  0x46   : > { %v3717_v54 = vpack.i.bf16 %v787_v41, %v785_v40  ;;  %v3720_v55 = vsel %vm576_vm0, %v603_v33, %v604_v34  ;;  %v3723_v45 = vsel %vm576_vm0, 0.0, %v603_v33  ;;  %v3726_v47 = vsel %vm576_vm0, %v604_v34, 0.0 }
  0x47   : > { %5483 = vst [vmem:[#allocation21_spill] sm:$0xff] %v3720_v55  ;;  %5484 = vst [vmem:[#allocation22_spill] sm:$0xff] %v3723_v45  ;;  %v788_v60 = vrot.slane %v3723_v45, 1  ;;  %v789_v61 = vrot.slane %v3720_v55, 1  ;;  %v791_v63 = vrot.slane %v3726_v47, 1  ;;  %vm434_vm9 = vcmp.gt.f32.partialorder %v402_v39, 0.0 }
  0x48   : > { %5482 = vst [vmem:[#allocation20_spill] sm:$0xff] %v3717_v54  ;;  %2736 = vrot.lane.b32.xlu0 %v3717_v54, %s3429_s7  ;;  %v466_v7 = vmul.f32 0.01, %v402_v39  ;;  %v364_v8 = vmul.f32 %v2565_v42, %v3498_v9  ;;  %v365_v19 = vmul.f32 %v2566_v43, %v3498_v9  ;;  %v2569_v20 = vunpack.c.l.bf16 %v2597_v59 }
  0x49   : > { %v790_v15 = vsel %vm742_vm1, %v788_v60, %v789_v61  ;;  %v792_v18 = vsel %vm742_vm1, %v789_v61, %v791_v63  ;;  %v497_v26 = vsel %vm433_vm8, %v401_v35, %v465_v6  ;;  %v2570_v2 = vunpack.c.h.bf16 %v2597_v59 }
  0x4a   : > { %v3739_v25 = vpack.i.bf16 %v792_v18, %v790_v15  ;;  %v498_v33 = vsel %vm434_vm9, %v402_v39, %v466_v7  ;;  %v403_v34 = vadd.f32 %v3520_v21, %v364_v8  ;;  %v606_v40 = vrot.slane %v497_v26, 7 }
  0x4b   : > { %v607_v41 = vrot.slane %v498_v33, 7  ;;  %v404_v17 = vadd.f32 %v3520_v21, %v365_v19  ;;  %v366_v43 = vmul.f32 %v2569_v20, %v3498_v9  ;;  %v2573_v60 = vunpack.c.l.bf16 %v2598_v24 }
  0x4c   : > { %5485 = vst [vmem:[#allocation23_spill] sm:$0xff] %v3739_v25  ;;  %2741 = vrot.lane.b32.xlu1 %v3739_v25, %s3429_s7  ;;  %vm435_vm10 = vcmp.gt.f32.partialorder %v403_v34, 0.0  ;;  %v467_v42 = vmul.f32 0.01, %v403_v34  ;;  %v3750_v35 = vsel %vm576_vm0, 0.0, %v606_v40  ;;  %v367_v15 = vmul.f32 %v2570_v2, %v3498_v9 }
  0x4d   : > { %v3747_v61 = vsel %vm576_vm0, %v606_v40, %v607_v41  ;;  %5487 = vst [vmem:[#allocation25_spill] sm:$0xff] %v3750_v35  ;;  %v3753_v39 = vsel %vm576_vm0, %v607_v41, 0.0  ;;  %vm436_vm11 = vcmp.gt.f32.partialorder %v404_v17, 0.0  ;;  %v793_v59 = vrot.slane %v3750_v35, 1 }
  0x4e   : > { %5486 = vst [vmem:[#allocation24_spill] sm:$0xff] %v3747_v61  ;;  %v794_v63 = vrot.slane %v3747_v61, 1  ;;  %v796_v6 = vrot.slane %v3753_v39, 1  ;;  %v468_v7 = vmul.f32 0.01, %v404_v17  ;;  %v499_v8 = vsel %vm435_vm10, %v403_v34, %v467_v42 }
  0x4f   : > { %v405_v18 = vadd.f32 %v3520_v21, %v366_v43  ;;  %v2574_v19 = vunpack.c.h.bf16 %v2598_v24  ;;  %v609_v40 = vrot.slane %v499_v8, 7  ;;  %v406_v54 = vadd.f32 %v3520_v21, %v367_v15  ;;  %v2599_v43 = vld [vmem:[%s3504_s28 + $0x68] sm:$0xff]  }
  0x50   : > { %v795_v20 = vsel %vm742_vm1, %v793_v59, %v794_v63  ;;  %v797_v26 = vsel %vm742_vm1, %v794_v63, %v796_v6  ;;  %v500_v33 = vsel %vm436_vm11, %v404_v17, %v468_v7  ;;  %v368_v2 = vmul.f32 %v2573_v60, %v3498_v9 }
  0x51   : > { %v3762_v41 = vpack.i.bf16 %v797_v26, %v795_v20  ;;  %v610_v1 = vrot.slane %v500_v33, 7  ;;  %vm437_vm12 = vcmp.gt.f32.partialorder %v405_v18, 0.0  ;;  %v3766_v34 = vsel %vm576_vm0, 0.0, %v609_v40 }
  0x52   : > { %5489 = vst [vmem:[#allocation27_spill] sm:$0xff] %v3766_v34  ;;  %v469_v42 = vmul.f32 0.01, %v405_v18  ;;  %v369_v24 = vmul.f32 %v2574_v19, %v3498_v9  ;;  %v798_v63 = vrot.slane %v3766_v34, 1  ;;  %vm438_vm13 = vcmp.gt.f32.partialorder %v406_v54, 0.0 }
  0x53   : > { %5488 = vst [vmem:[#allocation26_spill] sm:$0xff] %v3762_v41  ;;  %2746 = vrot.lane.b32.xlu0 %v3762_v41, %s3429_s7  ;;  %v3774_v17 = vsel %vm576_vm0, %v609_v40, %v610_v1  ;;  %v3777_v59 = vsel %vm576_vm0, %v610_v1, 0.0  ;;  %v470_v60 = vmul.f32 0.01, %v406_v54  ;;  %v407_v19 = vadd.f32 %v3520_v21, %v368_v2 }
  0x54   : > { %5490 = vst [vmem:[#allocation28_spill] sm:$0xff] %v3774_v17  ;;  %v799_v6 = vrot.slane %v3774_v17, 1  ;;  %v801_v7 = vrot.slane %v3777_v59, 1  ;;  %v501_v8 = vsel %vm437_vm12, %v405_v18, %v469_v42  ;;  %v408_v20 = vadd.f32 %v3520_v21, %v369_v24 }
  0x55   : > { %v612_v15 = vrot.slane %v501_v8, 7  ;;  %v2577_v26 = vunpack.c.l.bf16 %v2599_v43  ;;  %v502_v40 = vsel %vm438_vm13, %v406_v54, %v470_v60  ;;  %v2578_v41 = vunpack.c.h.bf16 %v2599_v43 }
  0x56   : > { %v800_v33 = vsel %vm742_vm1, %v798_v63, %v799_v6  ;;  %v802_v1 = vsel %vm742_vm1, %v799_v6, %v801_v7  ;;  %v613_v14 = vrot.slane %v502_v40, 7  ;;  %vm439_vm14 = vcmp.gt.f32.partialorder %v407_v19, 0.0  ;;  %v2600_v6 = vld [vmem:[%s3504_s28 + $0x70] sm:$0xff]  }
  0x57   : > { %v3786_v25 = vpack.i.bf16 %v802_v1, %v800_v33  ;;  %v3789_v62 = vsel %vm576_vm0, 0.0, %v612_v15  ;;  %vm440_vm15 = vcmp.gt.f32.partialorder %v408_v20, 0.0  ;;  %v471_v42 = vmul.f32 0.01, %v407_v19 }
  0x58   : > { %v803_v18 = vrot.slane %v3789_v62, 1  ;;  %v472_v2 = vmul.f32 0.01, %v408_v20  ;;  %v3795_v24 = vsel %vm576_vm0, %v612_v15, %v613_v14  ;;  %v3798_v54 = vsel %vm576_vm0, %v613_v14, 0.0 }
  0x59   : > { %5491 = vst [vmem:[#allocation29_spill] sm:$0xff] %v3786_v25  ;;  %2751 = vrot.lane.b32.xlu1 %v3786_v25, %s3429_s7  ;;  %v370_v43 = vmul.f32 %v2577_v26, %v3498_v9  ;;  %v371_v63 = vmul.f32 %v2578_v41, %v3498_v9  ;;  %v804_v7 = vrot.slane %v3795_v24, 1  ;;  %v806_v60 = vrot.slane %v3798_v54, 1 }
  0x5a   : > { %v503_v8 = vsel %vm439_vm14, %v407_v19, %v471_v42  ;;  %v504_v33 = vsel %vm440_vm15, %v408_v20, %v472_v2  ;;  %v2581_v26 = vunpack.c.l.bf16 %v2600_v6  ;;  %v2582_v49 = vunpack.c.h.bf16 %v2600_v6 }
  0x5b   : > { %v615_v1 = vrot.slane %v503_v8, 7  ;;  %v616_v40 = vrot.slane %v504_v33, 7  ;;  %v409_v25 = vadd.f32 %v3520_v21, %v370_v43  ;;  %v410_v15 = vadd.f32 %v3520_v21, %v371_v63 }
  0x5c   : > { %v805_v14 = vsel %vm742_vm1, %v803_v18, %v804_v7  ;;  %v807_v11 = vsel %vm742_vm1, %v804_v7, %v806_v60  ;;  %v372_v63 = vmul.f32 %v2581_v26, %v3498_v9  ;;  %v373_v60 = vmul.f32 %v2582_v49, %v3498_v9 }
  0x5d   : > { %v3809_v41 = vpack.i.bf16 %v807_v11, %v805_v14  ;;  %v3812_v12 = vsel %vm576_vm0, %v615_v1, %v616_v40  ;;  %v3815_v19 = vsel %vm576_vm0, 0.0, %v615_v1  ;;  %v3818_v20 = vsel %vm576_vm0, %v616_v40, 0.0 }
  0x5e   : > { %v808_v42 = vrot.slane %v3815_v19, 1  ;;  %v809_v2 = vrot.slane %v3812_v12, 1  ;;  %v811_v18 = vrot.slane %v3818_v20, 1  ;;  %vm441_vm3 = vcmp.gt.f32.partialorder %v409_v25, 0.0 }
  0x5f   : > { %5492 = vst [vmem:[#allocation30_spill] sm:$0xff] %v3809_v41  ;;  %2756 = vrot.lane.b32.xlu0 %v3809_v41, %s3429_s7  ;;  %vm442_vm4 = vcmp.gt.f32.partialorder %v410_v15, 0.0  ;;  %v473_v11 = vmul.f32 0.01, %v409_v25  ;;  %v474_v43 = vmul.f32 0.01, %v410_v15  ;;  %v3831_v8 = vpack.i.bf16 %v3527_v29, %v3512_v16 }
  0x60   : > { %v810_v6 = vsel %vm742_vm1, %v808_v42, %v809_v2  ;;  %v812_v7 = vsel %vm742_vm1, %v809_v2, %v811_v18  ;;  %v411_v14 = vadd.f32 %v3520_v21, %v372_v63  ;;  %v412_v26 = vadd.f32 %v3520_v21, %v373_v60 }
  0x61   : > { %5493 = vst [vmem:[#allocation31_spill] sm:$0xff] %v3831_v8  ;;  %v3833_v33 = vpack.i.bf16 %v812_v7, %v810_v6  ;;  %v505_v1 = vsel %vm441_vm3, %v409_v25, %v473_v11  ;;  %v506_v40 = vsel %vm442_vm4, %v410_v15, %v474_v43  ;;  %v925_v49 = vrot.slane %v3558_v3, 2 }
  0x62   : > { %v618_v41 = vrot.slane %v505_v1, 7  ;;  %v619_v44 = vrot.slane %v506_v40, 7  ;;  %vm443_vm5 = vcmp.gt.f32.partialorder %v411_v14, 0.0  ;;  %v475_v42 = vmul.f32 0.01, %v411_v14 }
  0x63   : > { %5494 = vst [vmem:[#allocation32_spill] sm:$0xff] %v3833_v33  ;;  %2761 = vrot.lane.b32.xlu1 %v3833_v33, %s3429_s7  ;;  %v926_v16 = vrot.slane %v3555_v0, 2  ;;  %vm444_vm6 = vcmp.gt.f32.partialorder %v412_v26, 0.0  ;;  %v476_v43 = vmul.f32 0.01, %v412_v26  ;;  %v933_v63 = vrot.slane %v3548_v58, 2 }
  0x64   : > { %v3842_v29 = vsel %vm576_vm0, %v618_v41, %v619_v44  ;;  %v3845_v25 = vsel %vm576_vm0, 0.0, %v618_v41  ;;  %v3848_v15 = vsel %vm576_vm0, %v619_v44, 0.0  ;;  %v507_v6 = vsel %vm443_vm5, %v411_v14, %v475_v42 }
  0x65   : > { %v813_v2 = vrot.slane %v3845_v25, 1  ;;  %v814_v18 = vrot.slane %v3842_v29, 1  ;;  %v816_v11 = vrot.slane %v3848_v15, 1  ;;  %v928_v7 = vrot.slane %v3561_v4, 2 }
  0x66   : > { %v930_v60 = vrot.slane %v3545_v57, 2  ;;  %v508_v1 = vsel %vm444_vm6, %v412_v26, %v476_v43  ;;  %v621_v40 = vrot.slane %v507_v6, 7  ;;  %v931_v0 = vrot.slane %v3542_v56, 2 }
  0x67   : > { %v815_v41 = vsel %vm742_vm1, %v813_v2, %v814_v18  ;;  %v817_v44 = vsel %vm742_vm1, %v814_v18, %v816_v11  ;;  %v622_v27 = vrot.slane %v508_v1, 7  ;;  %v927_v58 = vsel %vm919_vm2, %v925_v49, %v926_v16 }
  0x68   : > { %v3858_v33 = vpack.i.bf16 %v817_v44, %v815_v41  ;;  %v3862_v3 = vsel %vm576_vm0, 0.0, %v621_v40  ;;  %v929_v42 = vsel %vm919_vm2, %v926_v16, %v928_v7  ;;  %v932_v11 = vsel %vm919_vm2, %v930_v60, %v931_v0 }
  0x69   : > { %v3868_v4 = vsel %vm576_vm0, %v621_v40, %v622_v27  ;;  %v3871_v14 = vsel %vm576_vm0, %v622_v27, 0.0  ;;  %v818_v26 = vrot.slane %v3862_v3, 1  ;;  %v934_v49 = vsel %vm919_vm2, %v931_v0, %v933_v63 }
  0x6a   : > { %5495 = vst [vmem:[#allocation33_spill] sm:$0xff] %v3858_v33  ;;  %2766 = vrot.lane.b32.xlu0 %v3858_v33, %s3429_s7  ;;  %v819_v2 = vrot.slane %v3868_v4, 1  ;;  %v821_v18 = vrot.slane %v3871_v14, 1  ;;  %v935_v43 = vrot.slane %v3579_v23, 2  ;;  %v936_v6 = vrot.slane %v3585_v28, 2 }
  0x6b   : > { %v940_v41 = vrot.slane %v3605_v48, 2  ;;  %v941_v27 = vrot.slane %v3611_v52, 2  ;;  %v938_v7 = vrot.slane %v3588_v30, 2  ;;  %v943_v1 = vrot.slane %v3614_v53, 2 }
  0x6c   : > { %v820_v44 = vsel %vm742_vm1, %v818_v26, %v819_v2  ;;  %v822_v16 = vsel %vm742_vm1, %v819_v2, %v821_v18  ;;  %v3891_v0 = vpack.i.bf16 %v934_v49, %v932_v11  ;;  %v950_v26 = vrot.slane %v3649_v46, 2 }
  0x6d   : > { %v3887_v40 = vpack.i.bf16 %v822_v16, %v820_v44  ;;  %v942_v63 = vsel %vm919_vm2, %v940_v41, %v941_v27  ;;  %v944_v60 = vsel %vm919_vm2, %v941_v27, %v943_v1  ;;  %v3898_v30 = vpack.i.bf16 %v929_v42, %v927_v58 }
  0x6e   : > { %2776 = vrot.lane.b32.xlu0 %v3831_v8, %s3430_s8  ;;  %v937_v53 = vsel %vm919_vm2, %v935_v43, %v936_v6  ;;  %v951_v2 = vrot.slane %v3654_v50, 2  ;;  %v953_v18 = vrot.slane %v3657_v51, 2  ;;  %v939_v11 = vsel %vm919_vm2, %v936_v6, %v938_v7  ;;  %v2601_v8 = vld [vmem:[%s3504_s28 + $0x78] sm:$0xff]   ;;  %s3436_s28 = smov 64  }
  0x6f   : > { %5496 = vst [vmem:[#allocation34_spill] sm:$0xff] %v3887_v40  ;;  %2771 = vrot.lane.b32.xlu1 %v3887_v40, %s3429_s7  ;;  %v945_v49 = vrot.slane %v3631_v22, 2  ;;  %v946_v41 = vrot.slane %v3636_v31, 2  ;;  %v948_v27 = vrot.slane %v3639_v32, 2  ;;  %v3909_v44 = vpack.i.bf16 %v944_v60, %v942_v63  ;;  %s3437_s7 = smov 72  }
  0x70   : > { %v952_v58 = vsel %vm919_vm2, %v950_v26, %v951_v2  ;;  %v954_v42 = vsel %vm919_vm2, %v951_v2, %v953_v18  ;;  %v960_v43 = vrot.slane %v3697_v5, 2  ;;  %v961_v51 = vrot.slane %v3703_v10, 2 }
  0x71   : > { %v3917_v6 = vpack.i.bf16 %v939_v11, %v937_v53  ;;  %v955_v32 = vrot.slane %v3682_v37, 2  ;;  %v956_v16 = vrot.slane %v3679_v36, 2  ;;  %v963_v7 = vrot.slane %v3706_v13, 2 }
  0x72   : > { %2786 = vrot.lane.b32.xlu0 %v3891_v0, %s3430_s8  ;;  %v947_v1 = vsel %vm919_vm2, %v945_v49, %v946_v41  ;;  %v949_v63 = vsel %vm919_vm2, %v946_v41, %v948_v27  ;;  %v958_v60 = vrot.slane %v3685_v38, 2  ;;  %v3927_v26 = vpack.i.bf16 %v954_v42, %v952_v58 }
  0x73   : > { %2781 = vrot.lane.b32.xlu1 %v3898_v30, %s3430_s8  ;;  %v970_v53 = vrot.slane %v3750_v35, 2  ;;  %v971_v2 = vrot.slane %v3747_v61, 2  ;;  %v3932_v18 = vsel %vm919_vm2, %v960_v43, %v961_v51  ;;  %v3935_v13 = vsel %vm919_vm2, %v961_v51, %v963_v7 }
  0x74   : > { %5497 = vst [vmem:[#allocation35_spill] sm:$0xff] %v3927_v26  ;;  %5498 = vst [vmem:[#allocation36_spill] sm:$0xff] %v3932_v18  ;;  %v973_v11 = vrot.slane %v3753_v39, 2  ;;  %v3940_v38 = vpack.i.bf16 %v949_v63, %v947_v1  ;;  %v957_v49 = vsel %vm919_vm2, %v955_v32, %v956_v16  ;;  %v959_v41 = vsel %vm919_vm2, %v956_v16, %v958_v60 }
  0x75   : > { %5499 = vst [vmem:[#allocation37_spill] sm:$0xff] %v3935_v13  ;;  %v965_v27 = vrot.slane %v3723_v45, 2  ;;  %v966_v58 = vrot.slane %v3720_v55, 2  ;;  %v968_v42 = vrot.slane %v3726_v47, 2  ;;  %v3951_v39 = vpack.i.bf16 %v3935_v13, %v3932_v18 }
  0x76   : > { %2796 = vrot.lane.b32.xlu0 %v3909_v44, %s3430_s8  ;;  %v3954_v43 = vsel %vm919_vm2, %v970_v53, %v971_v2  ;;  %v3957_v51 = vsel %vm919_vm2, %v971_v2, %v973_v11  ;;  %v980_v32 = vrot.slane %v3789_v62, 2  ;;  %v981_v16 = vrot.slane %v3795_v24, 2 }
  0x77   : > { %2791 = vrot.lane.b32.xlu1 %v3917_v6, %s3430_s8  ;;  %5500 = vst [vmem:[#allocation38_spill] sm:$0xff] %v3951_v39  ;;  %v983_v7 = vrot.slane %v3798_v54, 2  ;;  %v3964_v47 = vpack.i.bf16 %v959_v41, %v957_v49  ;;  %v975_v1 = vrot.slane %v3766_v34, 2  ;;  %v976_v63 = vrot.slane %v3774_v17, 2 }
  0x78   : > { %v3969_v60 = vsel %vm919_vm2, %v965_v27, %v966_v58  ;;  %v3972_v53 = vsel %vm919_vm2, %v966_v58, %v968_v42  ;;  %v978_v2 = vrot.slane %v3777_v59, 2  ;;  %v3979_v54 = vpack.i.bf16 %v3957_v51, %v3954_v43 }
  0x79   : > { %5501 = vst [vmem:[#allocation39_spill] sm:$0xff] %v3964_v47  ;;  %5502 = vst [vmem:[#allocation40_spill] sm:$0xff] %v3969_v60  ;;  %v990_v11 = vrot.slane %v3845_v25, 2  ;;  %v991_v49 = vrot.slane %v3842_v29, 2  ;;  %v3984_v41 = vsel %vm919_vm2, %v980_v32, %v981_v16  ;;  %v3987_v27 = vsel %vm919_vm2, %v981_v16, %v983_v7 }
  0x7a   : > { %2806 = vrot.lane.b32.xlu0 %v3927_v26, %s3430_s8  ;;  %5503 = vst [vmem:[#allocation41_spill] sm:$0xff] %v3979_v54  ;;  %v993_v58 = vrot.slane %v3848_v15, 2  ;;  %v3994_v59 = vpack.i.bf16 %v3972_v53, %v3969_v60  ;;  %v3997_v42 = vsel %vm919_vm2, %v975_v1, %v976_v63  ;;  %v985_v32 = vrot.slane %v3815_v19, 2 }
  0x7b   : > { %2801 = vrot.lane.b32.xlu1 %v3940_v38, %s3430_s8  ;;  %v986_v16 = vrot.slane %v3812_v12, 2  ;;  %v988_v15 = vrot.slane %v3818_v20, 2  ;;  %v4010_v7 = vpack.i.bf16 %v3987_v27, %v3984_v41  ;;  %v4013_v1 = vsel %vm919_vm2, %v990_v11, %v991_v49 }
  0x7c   : > { %5504 = vst [vmem:[#allocation42_spill] sm:$0xff] %v3994_v59  ;;  %v995_v13 = vrot.slane %v3862_v3, 2  ;;  %v998_v60 = vrot.slane %v3871_v14, 2  ;;  %v2585_v20 = vunpack.c.l.bf16 %v2601_v8  ;;  %v2586_v18 = vunpack.c.h.bf16 %v2601_v8 }
  0x7d   : > { %v4028_v11 = vsel %vm919_vm2, %v985_v32, %v986_v16  ;;  %v4031_v26 = vsel %vm919_vm2, %v986_v16, %v988_v15  ;;  %vm1878_vm9 = vcmask 195584   ;;  %vm1911_vm10 = vcmask 261120  }
  0x7e   : > { %2816 = vrot.lane.b32.xlu0 %v3951_v39, %s3430_s8  ;;  %v4001_v39 = vsel %vm919_vm2, %v976_v63, %v978_v2  ;;  %v996_v63 = vrot.slane %v3868_v4, 2  ;;  %v4018_v2 = vsel %vm919_vm2, %v991_v49, %v993_v58  ;;  %v374_v49 = vmul.f32 %v2585_v20, %v3498_v9 }
  0x7f   : > { %2811 = vrot.lane.b32.xlu1 %v3964_v47, %s3430_s8  ;;  %5505 = vst [vmem:[#allocation43_spill] sm:$0xff] %v4018_v2  ;;  %v375_v58 = vmul.f32 %v2586_v18, %v3498_v9  ;;  %v4039_v8 = vpack.i.bf16 %v4018_v2, %v4013_v1  ;;  %v4053_v9 = vpack.i.bf16 %v4031_v26, %v4028_v11  ;;  %vm1944_vm11 = vcmask 326656  }
  0x80   : > { %v4042_v14 = vsel %vm919_vm2, %v995_v13, %v996_v63  ;;  %v4045_v32 = vsel %vm919_vm2, %v996_v63, %v998_v60  ;;  %v413_v16 = vadd.f32 %v3520_v21, %v374_v49  ;;  %v5510_v60 = vld [vmem:[#allocation8_spill] sm:$0xff]  ;;  %vm2010_vm12 = vcmask 457728  }
  0x81   : > { %5506 = vst [vmem:[#allocation44_spill] sm:$0xff] %v4039_v8  ;;  %5507 = vst [vmem:[#allocation45_spill] sm:$0xff] %v4042_v14  ;;  %v414_v15 = vadd.f32 %v3520_v21, %v375_v58  ;;  %v4059_v13 = vpack.i.bf16 %v4045_v32, %v4042_v14  ;;  %v5511_v21 = vld [vmem:[#allocation7_spill] sm:$0xff]  ;;  %vm2043_vm13 = vcmask 523264   ;;  %vm2076_vm14 = vcmask 588800  }
  0x82   : > { %2826 = vrot.lane.b32.xlu0 %v3979_v54, %s3430_s8  ;;  %v4025_v54 = vpack.i.bf16 %v4001_v39, %v3997_v42  ;;  %5508 = vst [vmem:[#allocation46_spill] sm:$0xff] %v4045_v32  ;;  %vm445_vm7 = vcmp.gt.f32.partialorder %v413_v16, 0.0  ;;  %v477_v18 = vmul.f32 0.01, %v413_v16  ;;  %v2855_v63 = vpack.i.bf16 %v5511_v21, %v5510_v60 }
  0x83   : > { %2821 = vrot.lane.b32.xlu1 %v3994_v59, %s3430_s8  ;;  %vm446_vm8 = vcmp.gt.f32.partialorder %v414_v15, 0.0  ;;  %v478_v20 = vmul.f32 0.01, %v414_v15  ;;  %5509 = vst [vmem:[#allocation47_spill] sm:$0xff] %v4059_v13  ;;  %v4100_v60 = vpack.i.bf16 %v3611_v52, %v3605_v48  ;;  %vm2171_vm15 = vcmask 621568  }
  0x84   : > { %v509_v49 = vsel %vm445_vm7, %v413_v16, %v477_v18  ;;  %v4084_v18 = vpack.i.bf16 %v3542_v56, %v3545_v57  ;;  %v5530_v57 = vld [vmem:[#allocation17_spill] sm:$0xff]  ;;  %v5532_v56 = vld [vmem:[#allocation23_spill] sm:$0xff] }
  0x85   : > { %v510_v58 = vsel %vm446_vm8, %v414_v15, %v478_v20  ;;  %v624_v59 = vrot.slane %v509_v49, 7  ;;  %v4110_v49 = vpack.i.bf16 %v3679_v36, %v3682_v37 }
  0x86   : > { %2836 = vrot.lane.b32.xlu0 %v4010_v7, %s3430_s8  ;;  %v625_v2 = vrot.slane %v510_v58, 7 }
  0x87   : > { %2831 = vrot.lane.b32.xlu1 %v4025_v54, %s3430_s8  ;;  %v4071_v32 = vsel %vm576_vm0, 0.0, %v624_v59  ;;  %5516 = vst [vmem:[#allocation52_spill] sm:$0xff] %v4110_v49 }
  0x88   : > { %5512 = vst [vmem:[#allocation48_spill] sm:$0xff] %v4071_v32  ;;  %v4074_v14 = vsel %vm576_vm0, %v625_v2, 0.0  ;;  %v4077_v16 = vsel %vm576_vm0, %v624_v59, %v625_v2  ;;  %v1194_v15 = vrot.slane %v4071_v32, 1  ;;  %v4094_v59 = vpack.i.bf16 %v3636_v31, %v3631_v22 }
  0x89   : > { %5513 = vst [vmem:[#allocation49_spill] sm:$0xff] %v4074_v14  ;;  %5514 = vst [vmem:[#allocation50_spill] sm:$0xff] %v4077_v16  ;;  %v1195_v20 = vrot.slane %v4077_v16, 1  ;;  %vm1812_vm0 = vcmask 64512  }
  0x8a   : > { %2846 = vrot.lane.b32.xlu0 %v4039_v8, %s3430_s8  ;;  %v4068_v8 = vpack.i.bf16 %v3585_v28, %v3579_v23  ;;  %v5527_v23 = vld [vmem:[#allocation14_spill] sm:$0xff] }
  0x8b   : > { %2841 = vrot.lane.b32.xlu1 %v4053_v9, %s3430_s8  ;;  %v1196_v2 = vsel %vm742_vm1, %v1194_v15, %v1195_v20  ;;  %v4144_v15 = vpack.i.bf16 %v3747_v61, %v3750_v35  ;;  %v4170_v61 = vpack.i.bf16 %v3842_v29, %v3845_v25  ;;  %v5523_v35 = vld [vmem:[#allocation13_spill] sm:$0xff] }
  0x8d   : > { %5520 = vst [vmem:[#allocation56_spill] sm:$0xff] %v4170_v61 }
  0x8e   : > { %2856 = vrot.lane.b32.xlu0 %v2855_v63, %s3431_s9  ;;  %v1197_v63 = vrot.slane %v4074_v14, 1 }
  0x8f   : > { %2851 = vrot.lane.b32.xlu1 %v4059_v13, %s3430_s8 }
  0x90   : > { %v1198_v58 = vsel %vm742_vm1, %v1195_v20, %v1197_v63  ;;  %v4120_v63 = vpack.i.bf16 %v3654_v50, %v3649_v46  ;;  %v4138_v20 = vpack.i.bf16 %v3774_v17, %v3766_v34  ;;  %v4156_v34 = vpack.i.bf16 %v3795_v24, %v3789_v62 }
  0x91   : > { %v4102_v21 = vpack.i.bf16 %v1198_v58, %v1196_v2  ;;  %v4126_v2 = vpack.i.bf16 %v3720_v55, %v3723_v45  ;;  %v4132_v58 = vpack.i.bf16 %v3703_v10, %v3697_v5  ;;  %v4150_v45 = vpack.i.bf16 %v3812_v12, %v3815_v19  ;;  %v5522_v5 = vld [vmem:[#allocation11_spill] sm:$0xff]  ;;  %v4184_v10 = vpop.permute.xlu0 %2696 }
  0x92   : > { %2866 = vrot.lane.b32.xlu0 %v4068_v8, %s3431_s9  ;;  %v4162_v17 = vpack.i.bf16 %v3868_v4, %v3862_v3  ;;  %v4178_v55 = vpack.i.bf16 %v4077_v16, %v4071_v32  ;;  %5524 = vst [vmem:[#allocation11_spill] sm:$0xff] %v4184_v10  ;;  %v5534_v10 = vld [vmem:[#allocation20_spill] sm:$0xff]  ;;  %v5535_v16 = vld [vmem:[#allocation29_spill] sm:$0xff]  ;;  %v5536_v32 = vld [vmem:[#allocation26_spill] sm:$0xff]  ;;  %vm1845_vm1 = vcmask 130048  }
  0x93   : > { %5515 = vst [vmem:[#allocation51_spill] sm:$0xff] %v4102_v21  ;;  %2861 = vrot.lane.b32.xlu1 %v4084_v18, %s3431_s9  ;;  %5517 = vst [vmem:[#allocation53_spill] sm:$0xff] %v4126_v2 }
  0x94   : > { %5518 = vst [vmem:[#allocation54_spill] sm:$0xff] %v4132_v58  ;;  %5519 = vst [vmem:[#allocation55_spill] sm:$0xff] %v4162_v17 }
  0x95   : > { %5521 = vst [vmem:[#allocation57_spill] sm:$0xff] %v4178_v55  ;;  %v4189_v13 = vpop.permute.xlu1 %2706 }
  0x96   : > { %2876 = vrot.lane.b32.xlu0 %v4094_v59, %s3431_s9  ;;  %5528 = vst [vmem:[#allocation13_spill] sm:$0xff] %v4189_v13 }
  0x97   : > { %2871 = vrot.lane.b32.xlu1 %v4100_v60, %s3431_s9  ;;  %v4191_v28 = vpop.permute.xlu0 %2701 }
  0x9a   : > { %2886 = vrot.lane.b32.xlu0 %v4110_v49, %s3431_s9 }
  0x9b   : > { %2881 = vrot.lane.b32.xlu1 %v4120_v63, %s3431_s9 }
  0x9e   : > { %2896 = vrot.lane.b32.xlu0 %v4126_v2, %s3431_s9  ;;  %v5525_v2 = vld [vmem:[#allocation9_spill] sm:$0xff] }
  0x9f   : > { %2891 = vrot.lane.b32.xlu1 %v4132_v58, %s3431_s9  ;;  %v5526_v58 = vld [vmem:[#allocation15_spill] sm:$0xff]  ;;  %5529 = vst [vmem:[#allocation9_spill] sm:$0xff] %v4191_v28  ;;  %v5537_v28 = vld [vmem:[#allocation32_spill] sm:$0xff] }
  0xa2   : > { %2906 = vrot.lane.b32.xlu0 %v4138_v20, %s3431_s9  ;;  %v4198_v14 = vpop.permute.xlu0 %2716 }
  0xa3   : > { %2901 = vrot.lane.b32.xlu1 %v4144_v15, %s3431_s9 }
  0xa6   : > { %2916 = vrot.lane.b32.xlu0 %v4150_v45, %s3431_s9 }
  0xa7   : > { %2911 = vrot.lane.b32.xlu1 %v4156_v34, %s3431_s9 }
  0xaa   : > { %2926 = vrot.lane.b32.xlu0 %v4162_v17, %s3431_s9 }
  0xab   : > { %2921 = vrot.lane.b32.xlu1 %v4170_v61, %s3431_s9 }
  0xad   : > { %v4205_v13 = vpop.permute.xlu0 %2726 }
  0xae   : > { %2936 = vrot.lane.b32.xlu0 %v5522_v5, %s3432_s10  ;;  %v5531_v5 = vld [vmem:[#allocation16_spill] sm:$0xff] }
  0xaf   : > { %2931 = vrot.lane.b32.xlu1 %v4178_v55, %s3431_s9  ;;  %v4196_v55 = vpop.permute.xlu1 %2711 }
  0xb0   : > { %5533 = vst [vmem:[#allocation15_spill] sm:$0xff] %v4196_v55 }
  0xb2   : > { %2946 = vrot.lane.b32.xlu0 %v5523_v35, %s3432_s10 }
  0xb3   : > { %2941 = vrot.lane.b32.xlu1 %v5525_v2, %s3432_s10  ;;  %v4203_v17 = vpop.permute.xlu1 %2721 }
  0xb6   : > { %2956 = vrot.lane.b32.xlu0 %v5526_v58, %s3432_s10 }
  0xb7   : > { %2951 = vrot.lane.b32.xlu1 %v5527_v23, %s3432_s10 }
  0xba   : > { %2966 = vrot.lane.b32.xlu0 %v5530_v57, %s3432_s10  ;;  %v5538_v57 = vld [vmem:[#allocation30_spill] sm:$0xff]  ;;  %v4212_v55 = vpop.permute.xlu0 %2736 }
  0xbb   : > { %2961 = vrot.lane.b32.xlu1 %v5531_v5, %s3432_s10  ;;  %5539 = vst [vmem:[#allocation14_spill] sm:$0xff] %v4212_v55 }
  0xbe   : > { %2976 = vrot.lane.b32.xlu0 %v5532_v56, %s3432_s10  ;;  %v4210_v56 = vpop.permute.xlu1 %2731 }
  0xbf   : > { %2971 = vrot.lane.b32.xlu1 %v5534_v10, %s3432_s10 }
  0xc2   : > { %2986 = vrot.lane.b32.xlu0 %v5535_v16, %s3432_s10  ;;  %v4218_v10 = vpop.permute.xlu1 %2741 }
  0xc3   : > { %2981 = vrot.lane.b32.xlu1 %v5536_v32, %s3432_s10  ;;  %5540 = vst [vmem:[#allocation29_spill] sm:$0xff] %v4218_v10 }
  0xc5   : > { %v4220_v5 = vpop.permute.xlu0 %2746 }
  0xc6   : > { %2996 = vrot.lane.b32.xlu0 %v5537_v28, %s3432_s10  ;;  %5541 = vst [vmem:[#allocation26_spill] sm:$0xff] %v4220_v5  ;;  %v5543_v5 = vld [vmem:[#allocation35_spill] sm:$0xff] }
  0xc7   : > { %2991 = vrot.lane.b32.xlu1 %v5538_v57, %s3432_s10 }
  0xca   : > { %3006 = vrot.lane.b32.xlu0 %v3887_v40, %s3432_s10 }
  0xcb   : > { %3001 = vrot.lane.b32.xlu1 %v3858_v33, %s3432_s10  ;;  %v4228_v55 = vpop.permute.xlu1 %2751  ;;  %v5544_v33 = vld [vmem:[#allocation36_spill] sm:$0xff] }
  0xcc   : > { %5542 = vst [vmem:[#allocation32_spill] sm:$0xff] %v4228_v55  ;;  %v5545_v55 = vld [vmem:[#allocation40_spill] sm:$0xff] }
  0xcd   : > { %v3050_v61 = vpack.i.bf16 %v5545_v55, %v5544_v33  ;;  %v5547_v55 = vpack.i.bf16 %v3997_v42, %v3957_v51  ;;  %v3416_v51 = vld [vmem:[%s5369_s4 + $0x18] sm:$0xff]  }
  0xce   : > { %3016 = vrot.lane.b32.xlu0 %v3898_v30, %s3433_s11  ;;  %v3055_v30 = vpack.i.bf16 %v3954_v43, %v3972_v53  ;;  %v3415_v43 = vld [vmem:[%s5369_s4 + $0x20] sm:$0x3f]  }
  0xcf   : > { %3011 = vrot.lane.b32.xlu1 %v4102_v21, %s3432_s10  ;;  %2675 = vmatprep.subr.msk.bf16.mxu0 %vm919_vm2, %v3415_v43 }
  0xd0   : > { %2676 = vmatprep.subr.msk.bf16.mxu1 %vm919_vm2, %v3415_v43 }
  0xd1   : > { %v4230_v40 = vpop.permute.xlu0 %2756 }
  0xd2   : > { %3026 = vrot.lane.b32.xlu0 %v3917_v6, %s3433_s11 }
  0xd3   : > { %3021 = vrot.lane.b32.xlu1 %v3891_v0, %s3433_s11 }
  0xd5   : > { %v4240_v21 = vpop.permute.xlu1 %2761 }
  0xd6   : > { %3036 = vrot.lane.b32.xlu0 %v3940_v38, %s3433_s11 }
  0xd7   : > { %3031 = vrot.lane.b32.xlu1 %v3909_v44, %s3433_s11 }
  0xda   : > { %3046 = vrot.lane.b32.xlu0 %v3964_v47, %s3433_s11 }
  0xdb   : > { %3041 = vrot.lane.b32.xlu1 %v5543_v5, %s3433_s11 }
  0xdc   : > { %v4242_v10 = vpop.permute.xlu0 %2766 }
  0xde   : > { %3056 = vrot.lane.b32.xlu0 %v3055_v30, %s3433_s11 }
  0xdf   : > { %3051 = vrot.lane.b32.xlu1 %v3050_v61, %s3433_s11  ;;  %v2221_v61 = vsel %vm919_vm2, %v3415_v43, 0  ;;  %v3419_v43 = vld [vmem:[%s5369_s4] sm:$0xff]  }
  0xe0   : > { %v4248_v49 = vpop.permute.xlu0 %2776  ;;  %2624 = vmatpush3.bf16.msra.mxu0 %v2221_v61  ;;  %2670 = vmatpush3.bf16.msra.mxu1 %v2221_v61 }
  0xe1   : > { %5546 = vst [vmem:[#allocation30_spill] sm:$0xff] %v4248_v49  ;;  %v4250_v47 = vpop.permute.xlu1 %2771  ;;  %2625 = vmatprep.subr.bf16.mxu0 %v3416_v51  ;;  %2666 = vmatprep.subr.bf16.mxu1 %v3416_v51 }
  0xe2   : > { %3066 = vrot.lane.b32.xlu0 %v4084_v18, %s3434_s12 }
  0xe3   : > { %3061 = vrot.lane.b32.xlu1 %v5547_v55, %s3433_s11  ;;  %v512_v55 = vld [vmem:[%s4301_s27 + $0x8] sm:$0xff] }
  0xe4   : > { %v4261_v33 = vpop.permute.xlu0 %2786  ;;  %2626 = vmatpush3.bf16.msra.mxu0 %v3416_v51  ;;  %2671 = vmatpush3.bf16.msra.mxu1 %v3416_v51 }
  0xe5   : > { %5548 = vst [vmem:[#allocation35_spill] sm:$0xff] %v4261_v33  ;;  %v4266_v53 = vpop.permute.xlu1 %2781 }
  0xe6   : > { %5549 = vst [vmem:[#allocation36_spill] sm:$0xff] %v4266_v53  ;;  %3076 = vrot.lane.b32.xlu0 %v4068_v8, %s3434_s12  ;;  %v3417_v8 = vld [vmem:[%s5369_s4 + $0x10] sm:$0xff]   ;;  %v528_v53 = vld [vmem:[%s4301_s27 + $0x88] sm:$0xff] }
  0xe7   : > { %3071 = vrot.lane.b32.xlu1 %v4144_v15, %s3434_s12  ;;  %2627 = vmatprep.subr.bf16.mxu0 %v3417_v8 }
  0xe8   : > { %v4275_v42 = vpop.permute.xlu0 %2796  ;;  %2628 = vmatpush3.bf16.msra.mxu0 %v3417_v8  ;;  %2667 = vmatprep.subr.bf16.mxu1 %v3417_v8 }
  0xe9   : > { %v4277_v18 = vpop.permute.xlu1 %2791  ;;  %2672 = vmatpush3.bf16.msra.mxu1 %v3417_v8  ;;  %v513_v8 = vld [vmem:[%s4301_s27 + $0x10] sm:$0xff] }
  0xea   : > { %5550 = vst [vmem:[#allocation40_spill] sm:$0xff] %v4277_v18  ;;  %3086 = vrot.lane.b32.xlu0 %v5525_v2, %s3435_s17  ;;  %v3418_v2 = vld [vmem:[%s5369_s4 + $0x8] sm:$0xff]  }
  0xeb   : > { %3081 = vrot.lane.b32.xlu1 %v4138_v20, %s3434_s12  ;;  %2629 = vmatprep.subr.bf16.mxu0 %v3418_v2 }
  0xec   : > { %v4286_v15 = vpop.permute.xlu0 %2806  ;;  %2630 = vmatpush3.bf16.msra.mxu0 %v3418_v2  ;;  %2668 = vmatprep.subr.bf16.mxu1 %v3418_v2 }
  0xed   : > { %v4289_v30 = vpop.permute.xlu1 %2801  ;;  %2673 = vmatpush3.bf16.msra.mxu1 %v3418_v2  ;;  %2631 = vmatprep.subr.bf16.mxu0 %v3419_v43  ;;  %v514_v2 = vld [vmem:[%s4301_s27 + $0x18] sm:$0xff] }
  0xee   : > { %3096 = vrot.lane.b32.xlu0 %v5523_v35, %s3435_s17  ;;  %2669 = vmatprep.subr.bf16.mxu1 %v3419_v43 }
  0xef   : > { %3091 = vrot.lane.b32.xlu1 %v5536_v32, %s3435_s17  ;;  %v511_v32 = vld [vmem:[%s4301_s27] sm:$0xff] }
  0xf0   : > { %v4305_v20 = vpop.permute.xlu0 %2816  ;;  %2632 = vmatpush3.bf16.msra.mxu0 %v3419_v43 }
  0xf1   : > { %5551 = vst [vmem:[#allocation58_spill] sm:$0xff] %v4305_v20  ;;  %v4307_v35 = vpop.permute.xlu1 %2811  ;;  %2674 = vmatpush3.bf16.msra.mxu1 %v3419_v43  ;;  %v5554_v20 = vld [vmem:[#allocation41_spill] sm:$0xff] }
  0xf2   : > { %3106 = vrot.lane.b32.xlu0 %v3891_v0, %s3436_s28  ;;  %v3125_v0 = vpack.i.bf16 %v512_v55, %v511_v32  ;;  %v529_v32 = vld [vmem:[%s4301_s27 + $0x90] sm:$0xff]  ;;  %v530_v55 = vld [vmem:[%s4301_s27 + $0x98] sm:$0xff] }
  0xf3   : > { %3101 = vrot.lane.b32.xlu1 %v5535_v16, %s3435_s17 }
  0xf4   : > { %v4318_v61 = vpop.permute.xlu0 %2826 }
  0xf5   : > { %5552 = vst [vmem:[#allocation59_spill] sm:$0xff] %v4318_v61  ;;  %v4320_v51 = vpop.permute.xlu1 %2821  ;;  %v527_v61 = vld [vmem:[%s4301_s27 + $0x80] sm:$0xff] }
  0xf6   : > { %5553 = vst [vmem:[#allocation60_spill] sm:$0xff] %v4320_v51  ;;  %3116 = vrot.lane.b32.xlu0 %v3917_v6, %s3436_s28  ;;  %v3135_v51 = vpack.i.bf16 %v514_v2, %v513_v8  ;;  %v3130_v43 = vpack.i.bf16 %v528_v53, %v527_v61  ;;  %v2719_v53 = vunpack.i.h.bf16 %v4198_v14  ;;  %v2718_v61 = vunpack.i.l.bf16 %v4198_v14 }
  0xf7   : > { %3111 = vrot.lane.b32.xlu1 %v5554_v20, %s3436_s28  ;;  %v2798_v8 = vunpack.i.l.bf16 %v4275_v42  ;;  %v2724_v14 = vunpack.i.h.bf16 %v4203_v17 }
  0xf8   : > { %v4328_v16 = vpop.permute.xlu0 %2836 }
  0xf9   : > { %v4332_v49 = vpop.permute.xlu1 %2831 }
  0xfa   : > { %5555 = vst [vmem:[#allocation41_spill] sm:$0xff] %v4332_v49  ;;  %3126 = vrot.lane.b32.xlu0 %v3125_v0, %s3437_s7  ;;  %v3140_v49 = vpack.i.bf16 %v530_v55, %v529_v32  ;;  %v2728_v32 = vunpack.i.l.bf16 %v4205_v13 }
  0xfb   : > { %3121 = vrot.lane.b32.xlu1 %v4025_v54, %s3436_s28  ;;  %v5556_v54 = vpack.i.bf16 %v3984_v41, %v4001_v39  ;;  %v1822_v39 = vsel %vm1812_vm0, %v3611_v52, %v2719_v53  ;;  %v1821_v41 = vsel %vm1812_vm0, %v3605_v48, %v2718_v61  ;;  %v2809_v53 = vunpack.i.h.bf16 %v4286_v15 }
  0xfc   : > { %v4337_v6 = vpop.permute.xlu0 %2846  ;;  %v1854_v52 = vsel %vm1845_vm1, %v1821_v41, %v2798_v8  ;;  %v2804_v8 = vunpack.i.h.bf16 %v4289_v30  ;;  %v1825_v41 = vsel %vm1812_vm0, %v3649_v46, %v2728_v32  ;;  %v2814_v32 = vunpack.i.h.bf16 %v4307_v35 }
  0xfd   : > { %v4341_v18 = vpop.permute.xlu1 %2841 }
  0xfe   : > { %3136 = vrot.lane.b32.xlu0 %v3135_v51, %s3437_s7  ;;  %v2799_v51 = vunpack.i.h.bf16 %v4275_v42  ;;  %v5557_v42 = vpack.i.bf16 %v4028_v11, %v3987_v27 }
  0xff   : > { %3131 = vrot.lane.b32.xlu1 %v3130_v43, %s3437_s7 }
 0x100   : > { %v4345_v20 = vpop.permute.xlu0 %2856  ;;  %v1855_v48 = vsel %vm1845_vm1, %v1822_v39, %v2799_v51 }
 0x101   : > { %v4347_v33 = vpop.permute.xlu1 %2851 }
 0x102   : > { %3146 = vrot.lane.b32.xlu0 %v5556_v54, %s3433_s11 }
 0x103   : > { %3141 = vrot.lane.b32.xlu1 %v3140_v49, %s3437_s7  ;;  %v2723_v49 = vunpack.i.l.bf16 %v4203_v17  ;;  %v2808_v17 = vunpack.i.l.bf16 %v4286_v15  ;;  %v2803_v15 = vunpack.i.l.bf16 %v4289_v30 }
 0x104   : > { %v4356_v0 = vpop.permute.xlu0 %2866 }
 0x105   : > { %v4360_v2 = vpop.permute.xlu1 %2861  ;;  %v1823_v51 = vsel %vm1812_vm0, %v3631_v22, %v2723_v49  ;;  %v2733_v22 = vunpack.i.l.bf16 %v4210_v56 }
 0x106   : > { %3156 = vrot.lane.b32.xlu0 %v4100_v60, %s3434_s12  ;;  %v2729_v60 = vunpack.i.h.bf16 %v4205_v13  ;;  %v1824_v13 = vsel %vm1812_vm0, %v3636_v31, %v2724_v14  ;;  %v2734_v31 = vunpack.i.h.bf16 %v4210_v56  ;;  %v1858_v14 = vsel %vm1845_vm1, %v1825_v41, %v2808_v17 }
 0x107   : > { %3151 = vrot.lane.b32.xlu1 %v5557_v42, %s3433_s11  ;;  %v1856_v56 = vsel %vm1845_vm1, %v1823_v51, %v2803_v15  ;;  %v2759_v51 = vunpack.i.h.bf16 %v4230_v40 }
 0x108   : > { %v2877_v43 = vpop.permute.xlu0 %2876  ;;  %v1826_v39 = vsel %vm1812_vm0, %v3654_v50, %v2729_v60  ;;  %v1857_v60 = vsel %vm1845_vm1, %v1824_v13, %v2804_v8  ;;  %v2758_v8 = vunpack.i.l.bf16 %v4230_v40  ;;  %v2839_v40 = vunpack.i.h.bf16 %v4328_v16 }
 0x109   : > { %v2879_v55 = vunpack.i.h.bf16 %v2877_v43  ;;  %v2878_v54 = vunpack.i.l.bf16 %v2877_v43  ;;  %v4380_v61 = vpop.permute.xlu1 %2871  ;;  %v1859_v30 = vsel %vm1845_vm1, %v1826_v39, %v2809_v53  ;;  %v516_v39 = vld [vmem:[%s4301_s27 + $0x28] sm:$0xff] }
 0x10a   : > { %3166 = vrot.lane.b32.xlu0 %v4094_v59, %s3434_s12 }
 0x10b   : > { %v4385_v27 = vsel %vm1878_vm9, %v1854_v52, %v2878_v54  ;;  %v4388_v11 = vsel %vm1878_vm9, %v1855_v48, %v2879_v55  ;;  %3161 = vrot.lane.b32.xlu1 %v4156_v34, %s3434_s12  ;;  %v2813_v54 = vunpack.i.l.bf16 %v4307_v35  ;;  %v1828_v35 = vsel %vm1812_vm0, %v3679_v36, %v2734_v31  ;;  %v515_v36 = vld [vmem:[%s4301_s27 + $0x20] sm:$0xff] }
 0x10c   : > { %v2887_v59 = vpop.permute.xlu0 %2886  ;;  %v1861_v15 = vsel %vm1845_vm1, %v1828_v35, %v2814_v32  ;;  %v4457_v31 = vld [vmem:[%s4301_s27 + $0xa0] sm:$0xff] }
 0x10d   : > { %v2889_v42 = vunpack.i.h.bf16 %v2887_v59  ;;  %v2888_v43 = vunpack.i.l.bf16 %v2887_v59  ;;  %v2882_v49 = vpop.permute.xlu1 %2881 }
 0x10e   : > { %3176 = vrot.lane.b32.xlu0 %v5527_v23, %s3435_s17  ;;  %v2884_v34 = vunpack.i.h.bf16 %v2882_v49  ;;  %v2883_v55 = vunpack.i.l.bf16 %v2882_v49  ;;  %v2763_v49 = vunpack.i.l.bf16 %v4240_v21 }
 0x10f   : > { %v4409_v50 = vsel %vm1878_vm9, %v1858_v14, %v2888_v43  ;;  %v4412_v46 = vsel %vm1878_vm9, %v1859_v30, %v2889_v42  ;;  %3171 = vrot.lane.b32.xlu1 %v4150_v45, %s3434_s12  ;;  %v1827_v45 = vsel %vm1812_vm0, %v3682_v37, %v2733_v22  ;;  %v2838_v42 = vunpack.i.l.bf16 %v4328_v16 }
 0x110   : > { %v4420_v23 = vpop.permute.xlu0 %2896  ;;  %v4423_v52 = vsel %vm1878_vm9, %v1856_v56, %v2883_v55  ;;  %v4426_v48 = vsel %vm1878_vm9, %v1857_v60, %v2884_v34  ;;  %v1860_v59 = vsel %vm1845_vm1, %v1827_v45, %v2813_v54  ;;  %v1838_v22 = vsel %vm1812_vm0, %v3795_v24, %v2759_v51  ;;  %v532_v34 = vld [vmem:[%s4301_s27 + $0xa8] sm:$0xff]  ;;  %v517_v55 = vld [vmem:[%s4301_s27 + $0x30] sm:$0xff] }
 0x111   : > { %v2892_v53 = vpop.permute.xlu1 %2891  ;;  %v1837_v14 = vsel %vm1812_vm0, %v3789_v62, %v2758_v8  ;;  %v2764_v30 = vunpack.i.h.bf16 %v4240_v21  ;;  %v2769_v60 = vunpack.i.h.bf16 %v4242_v10  ;;  %v2768_v56 = vunpack.i.l.bf16 %v4242_v10 }
 0x112   : > { %3186 = vrot.lane.b32.xlu0 %v5526_v58, %s3435_s17  ;;  %v2894_v17 = vunpack.i.h.bf16 %v2892_v53  ;;  %v2893_v13 = vunpack.i.l.bf16 %v2892_v53  ;;  %v1870_v54 = vsel %vm1845_vm1, %v1837_v14, %v2838_v42  ;;  %v1871_v62 = vsel %vm1845_vm1, %v1838_v22, %v2839_v40 }
 0x113   : > { %3181 = vrot.lane.b32.xlu1 %v5538_v57, %s3435_s17  ;;  %v3215_v57 = vpack.i.bf16 %v516_v39, %v515_v36  ;;  %v2849_v53 = vunpack.i.h.bf16 %v4337_v6  ;;  %v2848_v21 = vunpack.i.l.bf16 %v4337_v6  ;;  %v3220_v45 = vpack.i.bf16 %v532_v34, %v4457_v31  ;;  %v533_v34 = vld [vmem:[%s4301_s27 + $0xb0] sm:$0xff] }
 0x114   : > { %v4440_v58 = vpop.permute.xlu0 %2906  ;;  %v4445_v37 = vsel %vm1878_vm9, %v1860_v59, %v2893_v13  ;;  %v4448_v41 = vsel %vm1878_vm9, %v1861_v15, %v2894_v17  ;;  %v1840_v13 = vsel %vm1812_vm0, %v3812_v12, %v2764_v30  ;;  %v1839_v6 = vsel %vm1812_vm0, %v3815_v19, %v2763_v49 }
 0x115   : > { %v4452_v43 = vpop.permute.xlu1 %2901  ;;  %v2844_v51 = vunpack.i.h.bf16 %v4341_v18  ;;  %v2843_v8 = vunpack.i.l.bf16 %v4341_v18  ;;  %v1842_v15 = vsel %vm1812_vm0, %v3842_v29, %v2769_v60  ;;  %v1841_v59 = vsel %vm1812_vm0, %v3845_v25, %v2768_v56 }
 0x116   : > { %3196 = vrot.lane.b32.xlu0 %v3909_v44, %s3436_s28  ;;  %v518_v44 = vld [vmem:[%s4301_s27 + $0x38] sm:$0xff]  ;;  %v2774_v12 = vunpack.i.h.bf16 %v4250_v47  ;;  %v2773_v19 = vunpack.i.l.bf16 %v4250_v47  ;;  %v1874_v40 = vsel %vm1845_vm1, %v1841_v59, %v2848_v21  ;;  %v1875_v18 = vsel %vm1845_vm1, %v1842_v15, %v2849_v53 }
 0x117   : > { %3191 = vrot.lane.b32.xlu1 %v5537_v28, %s3435_s17  ;;  %v3225_v17 = vpack.i.bf16 %v518_v44, %v517_v55  ;;  %v1873_v22 = vsel %vm1845_vm1, %v1840_v13, %v2844_v51  ;;  %v1872_v47 = vsel %vm1845_vm1, %v1839_v6, %v2843_v8  ;;  %v2854_v14 = vunpack.i.h.bf16 %v4347_v33  ;;  %v534_v55 = vld [vmem:[%s4301_s27 + $0xb8] sm:$0xff] }
 0x118   : > { %v2917_v16 = vpop.permute.xlu0 %2916  ;;  %v2853_v30 = vunpack.i.l.bf16 %v4347_v33  ;;  %v1844_v60 = vsel %vm1812_vm0, %v3868_v4, %v2774_v12  ;;  %v1843_v33 = vsel %vm1812_vm0, %v3862_v3, %v2773_v19  ;;  %v5558_v3 = vpack.i.bf16 %v4013_v1, %v4031_v26  ;;  %v5560_v13 = vld [vmem:[#allocation45_spill] sm:$0xff]  ;;  %v5561_v12 = vld [vmem:[#allocation52_spill] sm:$0xff] }
 0x119   : > { %v2919_v32 = vunpack.i.h.bf16 %v2917_v16  ;;  %v2918_v24 = vunpack.i.l.bf16 %v2917_v16  ;;  %v4476_v35 = vpop.permute.xlu1 %2911 }
 0x11a   : > { %3206 = vrot.lane.b32.xlu0 %v3940_v38, %s3436_s28 }
 0x11b   : > { %v4481_v28 = vsel %vm1878_vm9, %v1870_v54, %v2918_v24  ;;  %v4484_v10 = vsel %vm1878_vm9, %v1871_v62, %v2919_v32  ;;  %3201 = vrot.lane.b32.xlu1 %v4010_v7, %s3436_s28  ;;  %v1877_v32 = vsel %vm1845_vm1, %v1844_v60, %v2854_v14  ;;  %v1876_v24 = vsel %vm1845_vm1, %v1843_v33, %v2853_v30  ;;  %v5568_v60 = vld [vmem:[#allocation13_spill] sm:$0xff] }
 0x11c   : > { %v2927_v38 = vpop.permute.xlu0 %2926  ;;  %v3230_v62 = vpack.i.bf16 %v534_v55, %v533_v34  ;;  %v5566_v34 = vld [vmem:[#allocation17_spill] sm:$0xff]  ;;  %v2709_v33 = vunpack.i.h.bf16 %v5568_v60 }
 0x11d   : > { %v2929_v36 = vunpack.i.h.bf16 %v2927_v38  ;;  %v2928_v39 = vunpack.i.l.bf16 %v2927_v38  ;;  %v2922_v7 = vpop.permute.xlu1 %2921  ;;  %v5567_v55 = vld [vmem:[#allocation33_spill] sm:$0xff] }
 0x11e   : > { %3216 = vrot.lane.b32.xlu0 %v3215_v57, %s3437_s7  ;;  %v2924_v42 = vunpack.i.h.bf16 %v2922_v7  ;;  %v2923_v29 = vunpack.i.l.bf16 %v2922_v7 }
 0x11f   : > { %v4505_v31 = vsel %vm1878_vm9, %v1874_v40, %v2928_v39  ;;  %v4508_v25 = vsel %vm1878_vm9, %v1875_v18, %v2929_v36  ;;  %3211 = vrot.lane.b32.xlu1 %v4053_v9, %s3436_s28 }
 0x120   : > { %v4516_v57 = vpop.permute.xlu0 %2936  ;;  %v4519_v49 = vsel %vm1878_vm9, %v1872_v47, %v2923_v29  ;;  %v4522_v16 = vsel %vm1878_vm9, %v1873_v22, %v2924_v42  ;;  %v5564_v47 = vld [vmem:[#allocation55_spill] sm:$0xff] }
 0x121   : > { %v2932_v44 = vpop.permute.xlu1 %2931 }
 0x122   : > { %3226 = vrot.lane.b32.xlu0 %v3225_v17, %s3437_s7  ;;  %v2934_v9 = vunpack.i.h.bf16 %v2932_v44  ;;  %v2933_v56 = vunpack.i.l.bf16 %v2932_v44 }
 0x123   : > { %3221 = vrot.lane.b32.xlu1 %v3220_v45, %s3437_s7  ;;  %v5559_v45 = vld [vmem:[#allocation43_spill] sm:$0xff] }
 0x124   : > { %v4534_v54 = vpop.permute.xlu0 %2946  ;;  %v4537_v53 = vsel %vm1878_vm9, %v1876_v24, %v2933_v56  ;;  %v4540_v21 = vsel %vm1878_vm9, %v1877_v32, %v2934_v9  ;;  %v3240_v6 = vpack.i.bf16 %v5560_v13, %v5559_v45  ;;  %v2708_v9 = vunpack.i.l.bf16 %v5568_v60  ;;  %v5570_v13 = vld [vmem:[#allocation50_spill] sm:$0xff] }
 0x125   : > { %v4542_v4 = vpop.permute.xlu1 %2941 }
 0x126   : > { %3236 = vrot.lane.b32.xlu0 %v5558_v3, %s3433_s11  ;;  %v520_v3 = vld [vmem:[%s4301_s27 + $0x48] sm:$0xff] }
 0x127   : > { %3231 = vrot.lane.b32.xlu1 %v3230_v62, %s3437_s7  ;;  %v519_v62 = vld [vmem:[%s4301_s27 + $0x40] sm:$0xff] }
 0x128   : > { %v2957_v17 = vpop.permute.xlu0 %2956 }
 0x129   : > { %v2959_v51 = vunpack.i.h.bf16 %v2957_v17  ;;  %v2958_v8 = vunpack.i.l.bf16 %v2957_v17  ;;  %v4551_v38 = vpop.permute.xlu1 %2951  ;;  %v5569_v17 = vld [vmem:[#allocation48_spill] sm:$0xff] }
 0x12a   : > { %3246 = vrot.lane.b32.xlu0 %v4120_v63, %s3434_s12  ;;  %v1295_v45 = vrot.slane %v5569_v17, 2 }
 0x12b   : > { %v4557_v15 = vsel %vm1911_vm10, %v4385_v27, %v2958_v8  ;;  %v4561_v26 = vsel %vm1911_vm10, %v4388_v11, %v2959_v51  ;;  %3241 = vrot.lane.b32.xlu1 %v3240_v6, %s3433_s11  ;;  %v5562_v11 = vld [vmem:[#allocation56_spill] sm:$0xff]  ;;  %v1296_v6 = vrot.slane %v5570_v13, 2  ;;  %v5571_v51 = vld [vmem:[#allocation15_spill] sm:$0xff] }
 0x12c   : > { %v2967_v1 = vpop.permute.xlu0 %2966  ;;  %v2714_v8 = vunpack.i.h.bf16 %v5571_v51 }
 0x12d   : > { %v2969_v59 = vunpack.i.h.bf16 %v2967_v1  ;;  %v2968_v36 = vunpack.i.l.bf16 %v2967_v1  ;;  %v2962_v39 = vpop.permute.xlu1 %2961  ;;  %v5572_v1 = vld [vmem:[#allocation49_spill] sm:$0xff] }
 0x12e   : > { %3256 = vrot.lane.b32.xlu0 %v5561_v12, %s3434_s12  ;;  %v2964_v19 = vunpack.i.h.bf16 %v2962_v39  ;;  %v2963_v40 = vunpack.i.l.bf16 %v2962_v39  ;;  %v5575_v39 = vld [vmem:[#allocation6_spill] sm:$0xff] }
 0x12f   : > { %v4568_v63 = vsel %vm1911_vm10, %v4409_v50, %v2968_v36  ;;  %v4572_v27 = vsel %vm1911_vm10, %v4412_v46, %v2969_v59  ;;  %3251 = vrot.lane.b32.xlu1 %v5562_v11, %s3434_s12  ;;  %v5563_v50 = vld [vmem:[#allocation16_spill] sm:$0xff]  ;;  %v5573_v59 = vld [vmem:[#allocation34_spill] sm:$0xff]  ;;  %v5574_v36 = vld [vmem:[#allocation5_spill] sm:$0xff]  ;;  %v1817_v12 = vsel %vm1812_vm0, %v5575_v39, %v2708_v9  ;;  %v2713_v11 = vunpack.i.l.bf16 %v5571_v51 }
 0x130   : > { %v4576_v18 = vpop.permute.xlu0 %2976  ;;  %v4580_v7 = vsel %vm1911_vm10, %v4423_v52, %v2963_v40  ;;  %v4584_v42 = vsel %vm1911_vm10, %v4426_v48, %v2964_v19  ;;  %v522_v51 = vld [vmem:[%s4301_s27 + $0x58] sm:$0xff] }
 0x131   : > { %v2972_v29 = vpop.permute.xlu1 %2971 }
 0x132   : > { %3266 = vrot.lane.b32.xlu0 %v5563_v50, %s3435_s17  ;;  %v2974_v22 = vunpack.i.h.bf16 %v2972_v29  ;;  %v2973_v46 = vunpack.i.l.bf16 %v2972_v29  ;;  %v5576_v29 = vld [vmem:[#allocation35_spill] sm:$0xff] }
 0x133   : > { %3261 = vrot.lane.b32.xlu1 %v5564_v47, %s3434_s12  ;;  %v2789_v50 = vunpack.i.h.bf16 %v5576_v29  ;;  %v5577_v47 = vld [vmem:[#allocation39_spill] sm:$0xff] }
 0x134   : > { %v4590_v14 = vpop.permute.xlu0 %2986  ;;  %v4594_v52 = vsel %vm1911_vm10, %v4445_v37, %v2973_v46  ;;  %v4598_v48 = vsel %vm1911_vm10, %v4448_v41, %v2974_v22  ;;  %v2788_v22 = vunpack.i.l.bf16 %v5576_v29 }
 0x135   : > { %5565 = vst [vmem:[#allocation43_spill] sm:$0xff] %v4598_v48  ;;  %v4600_v30 = vpop.permute.xlu1 %2981 }
 0x136   : > { %3276 = vrot.lane.b32.xlu0 %v5566_v34, %s3435_s17  ;;  %v3305_v34 = vpack.i.bf16 %v520_v3, %v519_v62  ;;  %v2868_v62 = vunpack.i.l.bf16 %v4356_v0  ;;  %v5581_v3 = vld [vmem:[#allocation44_spill] sm:$0xff] }
 0x137   : > { %3271 = vrot.lane.b32.xlu1 %v5567_v55, %s3435_s17  ;;  %v535_v55 = vld [vmem:[%s4301_s27 + $0xc0] sm:$0xff] }
 0x138   : > { %v2997_v44 = vpop.permute.xlu0 %2996 }
 0x139   : > { %v2999_v56 = vunpack.i.h.bf16 %v2997_v44  ;;  %v2998_v37 = vunpack.i.l.bf16 %v2997_v44  ;;  %v4608_v32 = vpop.permute.xlu1 %2991  ;;  %v536_v44 = vld [vmem:[%s4301_s27 + $0xc8] sm:$0xff] }
 0x13a   : > { %3286 = vrot.lane.b32.xlu0 %v5543_v5, %s3436_s28 }
 0x13b   : > { %v4614_v41 = vsel %vm1911_vm10, %v4481_v28, %v2998_v37  ;;  %v4618_v24 = vsel %vm1911_vm10, %v4484_v10, %v2999_v56  ;;  %3281 = vrot.lane.b32.xlu1 %v5573_v59, %s3435_s17  ;;  %v1818_v10 = vsel %vm1812_vm0, %v5574_v36, %v2709_v33  ;;  %v521_v37 = vld [vmem:[%s4301_s27 + $0x50] sm:$0xff]  ;;  %v2869_v36 = vunpack.i.h.bf16 %v4356_v0 }
 0x13c   : > { %v3007_v28 = vpop.permute.xlu0 %3006  ;;  %v5580_v59 = vld [vmem:[#allocation12_spill] sm:$0xff]  ;;  %v2948_v0 = vunpack.i.l.bf16 %v4534_v54  ;;  %v3315_v29 = vpack.i.bf16 %v522_v51, %v521_v37 }
 0x13d   : > { %v3009_v19 = vunpack.i.h.bf16 %v3007_v28  ;;  %v3008_v40 = vunpack.i.l.bf16 %v3007_v28  ;;  %v3002_v46 = vpop.permute.xlu1 %3001  ;;  %v1820_v28 = vsel %vm1812_vm0, %v5580_v59, %v2714_v8  ;;  %v2949_v8 = vunpack.i.h.bf16 %v4534_v54  ;;  %v537_v51 = vld [vmem:[%s4301_s27 + $0xd0] sm:$0xff] }
 0x13e   : > { %3296 = vrot.lane.b32.xlu0 %v5577_v47, %s3436_s28  ;;  %v3004_v60 = vunpack.i.h.bf16 %v3002_v46  ;;  %v3003_v33 = vunpack.i.l.bf16 %v3002_v46  ;;  %v5583_v46 = vld [vmem:[#allocation46_spill] sm:$0xff]  ;;  %v5584_v47 = vld [vmem:[#allocation37_spill] sm:$0xff] }
 0x13f   : > { %v4641_v9 = vsel %vm1911_vm10, %v4505_v31, %v3008_v40  ;;  %v4645_v56 = vsel %vm1911_vm10, %v4508_v25, %v3009_v19  ;;  %3291 = vrot.lane.b32.xlu1 %v5581_v3, %s3436_s28  ;;  %v3310_v19 = vpack.i.bf16 %v536_v44, %v535_v55  ;;  %v5585_v55 = vld [vmem:[#allocation40_spill] sm:$0xff] }
 0x140   : > { %5578 = vst [vmem:[#allocation45_spill] sm:$0xff] %v4641_v9  ;;  %5579 = vst [vmem:[#allocation52_spill] sm:$0xff] %v4645_v56  ;;  %v4655_v39 = vpop.permute.xlu0 %3016  ;;  %v4659_v31 = vsel %vm1911_vm10, %v4519_v49, %v3003_v33  ;;  %v4663_v25 = vsel %vm1911_vm10, %v4522_v16, %v3004_v60  ;;  %v3325_v49 = vpack.i.bf16 %v5584_v47, %v5583_v46  ;;  %v2794_v44 = vunpack.i.h.bf16 %v5585_v55  ;;  %v538_v46 = vld [vmem:[%s4301_s27 + $0xd8] sm:$0xff]  ;;  %v5614_v9 = vld [vmem:[#allocation23_spill] sm:$0xff] }
 0x141   : > { %5582 = vst [vmem:[#allocation56_spill] sm:$0xff] %v4663_v25  ;;  %v3012_v40 = vpop.permute.xlu1 %3011  ;;  %v1851_v33 = vsel %vm1845_vm1, %v1818_v10, %v2789_v50  ;;  %v1850_v16 = vsel %vm1845_vm1, %v1817_v12, %v2788_v22  ;;  %v2793_v3 = vunpack.i.l.bf16 %v5585_v55  ;;  %v2859_v56 = vunpack.i.h.bf16 %v4345_v20 }
 0x142   : > { %3306 = vrot.lane.b32.xlu0 %v3305_v34, %s3437_s7  ;;  %v3014_v60 = vunpack.i.h.bf16 %v3012_v40  ;;  %v3013_v59 = vunpack.i.l.bf16 %v3012_v40  ;;  %v1883_v54 = vsel %vm1878_vm9, %v1850_v16, %v2868_v62  ;;  %v1884_v5 = vsel %vm1878_vm9, %v1851_v33, %v2869_v36  ;;  %v5586_v34 = vld [vmem:[#allocation47_spill] sm:$0xff] }
 0x143   : > { %3301 = vrot.lane.b32.xlu1 %v5586_v34, %s3436_s28  ;;  %v2874_v62 = vunpack.i.h.bf16 %v4380_v61  ;;  %v2873_v36 = vunpack.i.l.bf16 %v4380_v61  ;;  %v1916_v40 = vsel %vm1911_vm10, %v1883_v54, %v2948_v0  ;;  %v1917_v47 = vsel %vm1911_vm10, %v1884_v5, %v2949_v8 }
 0x144   : > { %v3027_v37 = vpop.permute.xlu0 %3026  ;;  %v4682_v10 = vsel %vm1911_vm10, %v4537_v53, %v3013_v59  ;;  %v4686_v12 = vsel %vm1911_vm10, %v4540_v21, %v3014_v60  ;;  %v5589_v53 = vld [vmem:[#allocation10_spill] sm:$0xff]  ;;  %v3320_v59 = vpack.i.bf16 %v538_v46, %v537_v51  ;;  %v2954_v61 = vunpack.i.h.bf16 %v4551_v38 }
 0x145   : > { %5587 = vst [vmem:[#allocation16_spill] sm:$0xff] %v4682_v10  ;;  %5588 = vst [vmem:[#allocation55_spill] sm:$0xff] %v4686_v12  ;;  %v3029_v50 = vunpack.i.h.bf16 %v3027_v37  ;;  %v3028_v22 = vunpack.i.l.bf16 %v3027_v37  ;;  %v4692_v33 = vpop.permute.xlu1 %3021  ;;  %v1819_v16 = vsel %vm1812_vm0, %v5589_v53, %v2713_v11  ;;  %v2953_v0 = vunpack.i.l.bf16 %v4551_v38 }
 0x146   : > { %3316 = vrot.lane.b32.xlu0 %v3315_v29, %s3437_s7  ;;  %v1297_v11 = vsel %vm919_vm2, %v1295_v45, %v1296_v6  ;;  %v5590_v8 = vrot.slane %v5572_v1, 2  ;;  %v1853_v55 = vsel %vm1845_vm1, %v1820_v28, %v2794_v44  ;;  %v1852_v54 = vsel %vm1845_vm1, %v1819_v16, %v2793_v3 }
 0x147   : > { %v4698_v21 = vsel %vm1944_vm11, %v1916_v40, %v3028_v22  ;;  %v4701_v60 = vsel %vm1944_vm11, %v1917_v47, %v3029_v50  ;;  %3311 = vrot.lane.b32.xlu1 %v3310_v19, %s3437_s7  ;;  %v1885_v19 = vsel %vm1878_vm9, %v1852_v54, %v2873_v36  ;;  %v1886_v37 = vsel %vm1878_vm9, %v1853_v55, %v2874_v62  ;;  %v5591_v22 = vld [vmem:[#allocation11_spill] sm:$0xff]  ;;  %v5592_v40 = vld [vmem:[#allocation54_spill] sm:$0xff]  ;;  %v5597_v54 = vld [vmem:[#allocation29_spill] sm:$0xff] }
 0x148   : > { %v3037_v5 = vpop.permute.xlu0 %3036  ;;  %v1299_v29 = vsel %vm919_vm2, %v1296_v6, %v5590_v8  ;;  %v1918_v1 = vsel %vm1911_vm10, %v1885_v19, %v2953_v0  ;;  %v1919_v28 = vsel %vm1911_vm10, %v1886_v37, %v2954_v61  ;;  %v2698_v62 = vunpack.i.l.bf16 %v5591_v22  ;;  %v5595_v61 = vld [vmem:[#allocation9_spill] sm:$0xff]  ;;  %v5596_v8 = vld [vmem:[#allocation14_spill] sm:$0xff] }
 0x149   : > { %v3039_v38 = vunpack.i.h.bf16 %v3037_v5  ;;  %v3038_v34 = vunpack.i.l.bf16 %v3037_v5  ;;  %v3032_v51 = vpop.permute.xlu1 %3031  ;;  %v4732_v3 = vpack.i.bf16 %v1299_v29, %v1297_v11  ;;  %v2704_v0 = vunpack.i.h.bf16 %v5595_v61  ;;  %v5598_v19 = vld [vmem:[#allocation53_spill] sm:$0xff]  ;;  %v5599_v37 = vld [vmem:[#allocation2_spill] sm:$0xff] }
 0x14a   : > { %3326 = vrot.lane.b32.xlu0 %v3325_v49, %s3433_s11  ;;  %v3034_v17 = vunpack.i.h.bf16 %v3032_v51  ;;  %v3033_v45 = vunpack.i.l.bf16 %v3032_v51  ;;  %v2703_v5 = vunpack.i.l.bf16 %v5595_v61  ;;  %v2739_v29 = vunpack.i.h.bf16 %v5596_v8 }
 0x14b   : > { %v4723_v13 = vsel %vm1944_vm11, %v4557_v15, %v3038_v34  ;;  %v4727_v6 = vsel %vm1944_vm11, %v4561_v26, %v3039_v38  ;;  %3321 = vrot.lane.b32.xlu1 %v3320_v59, %s3437_s7  ;;  %v2699_v26 = vunpack.i.h.bf16 %v5591_v22  ;;  %v2738_v55 = vunpack.i.l.bf16 %v5596_v8  ;;  %v5608_v8 = vld [vmem:[#allocation21_spill] sm:$0xff] }
 0x14c   : > { %v3047_v44 = vpop.permute.xlu0 %3046  ;;  %v4735_v49 = vsel %vm1944_vm11, %v1918_v1, %v3033_v45  ;;  %v4738_v46 = vsel %vm1944_vm11, %v1919_v28, %v3034_v17  ;;  %v2744_v38 = vunpack.i.h.bf16 %v5597_v54  ;;  %v5600_v17 = vld [vmem:[#allocation3_spill] sm:$0xff]  ;;  %v2899_v25 = vunpack.i.h.bf16 %v4420_v23 }
 0x14d   : > { %v3049_v15 = vunpack.i.h.bf16 %v3047_v44  ;;  %v3048_v50 = vunpack.i.l.bf16 %v3047_v44  ;;  %v3042_v36 = vpop.permute.xlu1 %3041  ;;  %v1814_v51 = vsel %vm1812_vm0, %v5599_v37, %v2699_v26  ;;  %v1813_v45 = vsel %vm1812_vm0, %v5600_v17, %v2698_v62  ;;  %v5601_v28 = vld [vmem:[#allocation7_spill] sm:$0xff]  ;;  %v5602_v44 = vld [vmem:[#allocation8_spill] sm:$0xff] }
 0x14e   : > { %3336 = vrot.lane.b32.xlu0 %v5592_v40, %s3434_s12  ;;  %v3044_v47 = vunpack.i.h.bf16 %v3042_v36  ;;  %v3043_v53 = vunpack.i.l.bf16 %v3042_v36  ;;  %v5604_v36 = vld [vmem:[#allocation57_spill] sm:$0xff]  ;;  %v3350_v62 = vpack.i.bf16 %v5599_v37, %v5600_v17  ;;  %v5605_v40 = vld [vmem:[#allocation19_spill] sm:$0xff]  ;;  %vm1977_vm2 = vcmask 392192  }
 0x14f   : > { %v4746_v16 = vsel %vm1944_vm11, %v4568_v63, %v3048_v50  ;;  %v4750_v59 = vsel %vm1944_vm11, %v4572_v27, %v3049_v15  ;;  %3331 = vrot.lane.b32.xlu1 %v4732_v3, %s3433_s11  ;;  %v1815_v15 = vsel %vm1812_vm0, %v5602_v44, %v2703_v5  ;;  %v5603_v50 = vld [vmem:[#allocation30_spill] sm:$0xff]  ;;  %v4811_v44 = vld [vmem:[%s4301_s27 + $0x68] sm:$0xff] }
 0x150   : > { %5593 = vst [vmem:[#allocation17_spill] sm:$0xff] %v4746_v16  ;;  %5594 = vst [vmem:[#allocation33_spill] sm:$0xff] %v4750_v59  ;;  %v4756_v11 = vpop.permute.xlu0 %3056  ;;  %v4762_v63 = vsel %vm1944_vm11, %v4580_v7, %v3043_v53  ;;  %v4766_v27 = vsel %vm1944_vm11, %v4584_v42, %v3044_v47  ;;  %v2743_v7 = vunpack.i.l.bf16 %v5597_v54  ;;  %v1816_v42 = vsel %vm1812_vm0, %v5601_v28, %v2704_v0  ;;  %v5606_v53 = vld [vmem:[#allocation18_spill] sm:$0xff] }
 0x151   : > { %v4769_v34 = vpop.permute.xlu1 %3051  ;;  %v2779_v22 = vunpack.i.h.bf16 %v5603_v50  ;;  %v1830_v47 = vsel %vm1812_vm0, %v5605_v40, %v2739_v29  ;;  %v1829_v61 = vsel %vm1812_vm0, %v5606_v53, %v2738_v55  ;;  %v2778_v0 = vunpack.i.l.bf16 %v5603_v50  ;;  %v5610_v29 = vld [vmem:[#allocation20_spill] sm:$0xff]  ;;  %v4808_v55 = vld [vmem:[%s4301_s27 + $0x60] sm:$0xff]  ;;  %v4819_v50 = vld [vmem:[%s4301_s27 + $0xe8] sm:$0xff] }
 0x152   : > { %3346 = vrot.lane.b32.xlu0 %v5598_v19, %s3434_s12  ;;  %v3053_v1 = vunpack.i.l.bf16 %v4769_v34  ;;  %v1832_v54 = vsel %vm1812_vm0, %v5608_v8, %v2744_v38  ;;  %v5609_v19 = vld [vmem:[#allocation36_spill] sm:$0xff]  ;;  %v4816_v38 = vld [vmem:[%s4301_s27 + $0xe0] sm:$0xff] }
 0x153   : > { %3341 = vrot.lane.b32.xlu1 %v5604_v36, %s3434_s12  ;;  %v2784_v28 = vunpack.i.h.bf16 %v5609_v19  ;;  %v2783_v37 = vunpack.i.l.bf16 %v5609_v19  ;;  %v4822_v36 = vld [vmem:[%s4301_s27 + $0x70] sm:$0xff]  ;;  %v1847_v40 = vsel %vm1845_vm1, %v1814_v51, %v2779_v22  ;;  %v5612_v53 = vld [vmem:[#allocation58_spill] sm:$0xff]  ;;  %v1846_v59 = vsel %vm1845_vm1, %v1813_v45, %v2778_v0 }
 0x154   : > { %v4786_v26 = vpop.permute.xlu0 %3066  ;;  %v4797_v5 = vsel %vm1944_vm11, %v4594_v52, %v3053_v1  ;;  %v5611_v52 = vld [vmem:[#allocation22_spill] sm:$0xff]  ;;  %v2819_v8 = vunpack.i.h.bf16 %v5612_v53  ;;  %v2818_v19 = vunpack.i.l.bf16 %v5612_v53  ;;  %v2858_v22 = vunpack.i.l.bf16 %v4345_v20 }
 0x155   : > { %5607 = vst [vmem:[#allocation13_spill] sm:$0xff] %v4797_v5  ;;  %v4803_v17 = vpop.permute.xlu1 %3061  ;;  %v1831_v1 = vsel %vm1812_vm0, %v5611_v52, %v2743_v7  ;;  %v4832_v5 = vld [vmem:[%s4301_s27 + $0x78] sm:$0xff]  ;;  %v4835_v7 = vld [vmem:[%s4301_s27 + $0xf0] sm:$0xff]  ;;  %v1848_v16 = vsel %vm1845_vm1, %v1815_v15, %v2783_v37  ;;  %v2864_v0 = vunpack.i.h.bf16 %v4360_v2  ;;  %v5615_v37 = vld [vmem:[#allocation51_spill] sm:$0xff] }
 0x156   : > { %3356 = vrot.lane.b32.xlu0 %v5610_v29, %s3435_s17  ;;  %v5613_v29 = vld [vmem:[#allocation60_spill] sm:$0xff]  ;;  %v4838_v52 = vld [vmem:[%s4301_s27 + $0xf8] sm:$0xff]  ;;  %v1862_v20 = vsel %vm1845_vm1, %v1829_v61, %v2818_v19  ;;  %v1863_v15 = vsel %vm1845_vm1, %v1830_v47, %v2819_v8  ;;  %v1879_v53 = vsel %vm1878_vm9, %v1846_v59, %v2858_v22  ;;  %v1880_v61 = vsel %vm1878_vm9, %v1847_v40, %v2859_v56  ;;  %v5616_v19 = vld [vmem:[#allocation38_spill] sm:$0xff] }
 0x157   : > { %v2824_v12 = vunpack.i.h.bf16 %v5613_v29  ;;  %3351 = vrot.lane.b32.xlu1 %v3350_v62, %s3434_s12  ;;  %v2823_v51 = vunpack.i.l.bf16 %v5613_v29  ;;  %v1849_v62 = vsel %vm1845_vm1, %v1816_v42, %v2784_v28  ;;  %v2863_v29 = vunpack.i.l.bf16 %v4360_v2  ;;  %v5617_v22 = vld [vmem:[#allocation4_spill] sm:$0xff]  ;;  %s5264_s12 = scalar_lea.vmem %s5371_s6, %s2521_s20 }
 0x158   : > { %v4829_v10 = vpop.permute.xlu0 %3076  ;;  %v2903_v42 = vunpack.i.l.bf16 %v4452_v43  ;;  %v2904_v47 = vunpack.i.h.bf16 %v4452_v43  ;;  %v2943_v56 = vunpack.i.l.bf16 %v4542_v4  ;;  %v2979_v40 = vunpack.i.h.bf16 %v4576_v18 }
 0x159   : > { %v4848_v48 = vpop.permute.xlu1 %3071  ;;  %v1865_v28 = vsel %vm1845_vm1, %v1832_v54, %v2824_v12  ;;  %v1864_v2 = vsel %vm1845_vm1, %v1831_v1, %v2823_v51  ;;  %v2939_v12 = vunpack.i.h.bf16 %v4516_v57  ;;  %v2938_v54 = vunpack.i.l.bf16 %v4516_v57 }
 0x15a   : > { %3366 = vrot.lane.b32.xlu0 %v5614_v9, %s3435_s17  ;;  %v2898_v9 = vunpack.i.l.bf16 %v4420_v23  ;;  %v1881_v59 = vsel %vm1878_vm9, %v1848_v16, %v2863_v29  ;;  %v1882_v23 = vsel %vm1878_vm9, %v1849_v62, %v2864_v0  ;;  %v2944_v1 = vunpack.i.h.bf16 %v4542_v4 }
 0x15b   : > { %3361 = vrot.lane.b32.xlu1 %v5615_v37, %s3435_s17  ;;  %v2978_v57 = vunpack.i.l.bf16 %v4576_v18  ;;  %v2983_v51 = vunpack.i.l.bf16 %v4600_v30  ;;  %v1896_v16 = vsel %vm1878_vm9, %v1863_v15, %v2899_v25  ;;  %v1897_v62 = vsel %vm1878_vm9, %v1864_v2, %v2903_v42 }
 0x15c   : > { %v4866_v45 = vpop.permute.xlu0 %3086  ;;  %v1895_v43 = vsel %vm1878_vm9, %v1862_v20, %v2898_v9  ;;  %v2984_v0 = vunpack.i.h.bf16 %v4600_v30  ;;  %v3018_v4 = vunpack.i.l.bf16 %v4655_v39  ;;  %v1898_v29 = vsel %vm1878_vm9, %v1865_v28, %v2904_v47 }
 0x15d   : > { %v4876_v8 = vpop.permute.xlu1 %3081  ;;  %v1912_v18 = vsel %vm1911_vm10, %v1879_v53, %v2938_v54  ;;  %v1913_v20 = vsel %vm1911_vm10, %v1880_v61, %v2939_v12  ;;  %v3019_v9 = vunpack.i.h.bf16 %v4655_v39  ;;  %v1914_v25 = vsel %vm1911_vm10, %v1881_v59, %v2943_v56 }
 0x15e   : > { %3376 = vrot.lane.b32.xlu0 %v5616_v19, %s3436_s28  ;;  %v1915_v30 = vsel %vm1911_vm10, %v1882_v23, %v2944_v1  ;;  %v3024_v42 = vunpack.i.h.bf16 %v4692_v33  ;;  %v3023_v15 = vunpack.i.l.bf16 %v4692_v33  ;;  %v1928_v53 = vsel %vm1911_vm10, %v1895_v43, %v2978_v57 }
 0x15f   : > { %3371 = vrot.lane.b32.xlu1 %v5617_v22, %s3435_s17  ;;  %v5618_v22 = vld [vmem:[#allocation42_spill] sm:$0xff]  ;;  %v1929_v28 = vsel %vm1911_vm10, %v1896_v16, %v2979_v40  ;;  %v4911_v39 = vsel %vm1911_vm10, %v1897_v62, %v2983_v51  ;;  %v3058_v2 = vunpack.i.l.bf16 %v4756_v11  ;;  %v4917_v47 = vsel %vm1911_vm10, %v1898_v29, %v2984_v0 }
 0x160   : > { %v4890_v37 = vpop.permute.xlu0 %3096  ;;  %v1945_v12 = vsel %vm1944_vm11, %v1912_v18, %v3018_v4  ;;  %v3054_v33 = vunpack.i.h.bf16 %v4769_v34  ;;  %v3068_v54 = vunpack.i.l.bf16 %v4786_v26  ;;  %v1946_v59 = vsel %vm1944_vm11, %v1913_v20, %v3019_v9 }
 0x161   : > { %v4900_v19 = vpop.permute.xlu1 %3091  ;;  %v3069_v23 = vunpack.i.h.bf16 %v4786_v26  ;;  %v3079_v1 = vunpack.i.h.bf16 %v4829_v10  ;;  %v3078_v56 = vunpack.i.l.bf16 %v4829_v10  ;;  %v5619_v43 = vpack.i.bf16 %v4811_v44, %v4808_v55  ;;  %v5620_v55 = vld [vmem:[#allocation31_spill] sm:$0xff] }
 0x162   : > { %3386 = vrot.lane.b32.xlu0 %v5618_v22, %s3436_s28  ;;  %v1947_v40 = vsel %vm1944_vm11, %v1914_v25, %v3023_v15  ;;  %v1948_v34 = vsel %vm1944_vm11, %v1915_v30, %v3024_v42  ;;  %v3074_v57 = vunpack.i.h.bf16 %v4848_v48  ;;  %v3073_v51 = vunpack.i.l.bf16 %v4848_v48 }
 0x163   : > { %3381 = vrot.lane.b32.xlu1 %v4732_v3, %s3436_s28  ;;  %v3059_v26 = vunpack.i.h.bf16 %v4756_v11  ;;  %v1962_v10 = vsel %vm1944_vm11, %v1929_v28, %v3058_v2  ;;  %v3089_v16 = vunpack.i.h.bf16 %v4866_v45  ;;  %v3088_v62 = vunpack.i.l.bf16 %v4866_v45 }
 0x164   : > { %v3107_v61 = vpop.permute.xlu0 %3106  ;;  %v1961_v0 = vsel %vm1944_vm11, %v1928_v53, %v3054_v33  ;;  %v3063_v4 = vunpack.i.l.bf16 %v4803_v17  ;;  %v1978_v29 = vsel %vm1977_vm2, %v1945_v12, %v3068_v54  ;;  %v1979_v18 = vsel %vm1977_vm2, %v1946_v59, %v3069_v23 }
 0x165   : > { %v4926_v3 = vpop.permute.xlu1 %3101  ;;  %v3108_v48 = vunpack.i.l.bf16 %v3107_v61  ;;  %v1980_v20 = vsel %vm1977_vm2, %v1947_v40, %v3078_v56  ;;  %v1981_v9 = vsel %vm1977_vm2, %v1948_v34, %v3079_v1  ;;  %v3109_v22 = vunpack.i.h.bf16 %v3107_v61 }
 0x166   : > { %3396 = vrot.lane.b32.xlu0 %v5619_v43, %s3437_s7  ;;  %v5621_v45 = vpack.i.bf16 %v4832_v5, %v4822_v36  ;;  %v1994_v30 = vsel %vm1977_vm2, %v1961_v0, %v3073_v51  ;;  %v1995_v42 = vsel %vm1977_vm2, %v1962_v10, %v3074_v57  ;;  %v3084_v15 = vunpack.i.h.bf16 %v4876_v8 }
 0x167   : > { %3391 = vrot.lane.b32.xlu1 %v5620_v55, %s3436_s28  ;;  %v3098_v53 = vunpack.i.l.bf16 %v4890_v37  ;;  %v2011_v28 = vsel %vm2010_vm12, %v1978_v29, %v3088_v62  ;;  %v2012_v2 = vsel %vm2010_vm12, %v1979_v18, %v3089_v16  ;;  %v3093_v61 = vunpack.i.l.bf16 %v4900_v19 }
 0x168   : > { %v3117_v44 = vpop.permute.xlu0 %3116  ;;  %v3099_v12 = vunpack.i.h.bf16 %v4890_v37  ;;  %v5622_v5 = vpack.i.bf16 %v4819_v50, %v4816_v38  ;;  %v3094_v33 = vunpack.i.h.bf16 %v4900_v19  ;;  %v2044_v23 = vsel %vm2043_vm13, %v2011_v28, %v3108_v48 }
 0x169   : > { %v3112_v25 = vpop.permute.xlu1 %3111  ;;  %v3119_v56 = vunpack.i.h.bf16 %v3117_v44  ;;  %v3118_v43 = vunpack.i.l.bf16 %v3117_v44  ;;  %v2045_v34 = vsel %vm2043_vm13, %v2012_v2, %v3109_v22  ;;  %v3083_v37 = vunpack.i.l.bf16 %v4876_v8 }
 0x16a   : > { %3406 = vrot.lane.b32.xlu0 %v5621_v45, %s3437_s7  ;;  %v3113_v1 = vunpack.i.l.bf16 %v3112_v25  ;;  %v2013_v57 = vsel %vm2010_vm12, %v1980_v20, %v3098_v53  ;;  %v2027_v19 = vsel %vm2010_vm12, %v1994_v30, %v3093_v61  ;;  %v2014_v51 = vsel %vm2010_vm12, %v1981_v9, %v3099_v12 }
 0x16b   : > { %3401 = vrot.lane.b32.xlu1 %v5622_v5, %s3437_s7  ;;  %v3114_v10 = vunpack.i.h.bf16 %v3112_v25  ;;  %v5623_v16 = vpack.i.bf16 %v4838_v52, %v4835_v7  ;;  %v2028_v8 = vsel %vm2010_vm12, %v1995_v42, %v3094_v33  ;;  %v3104_v44 = vunpack.i.h.bf16 %v4926_v3 }
 0x16c   : > { %v3127_v36 = vpop.permute.xlu0 %3126  ;;  %v3103_v48 = vunpack.i.l.bf16 %v4926_v3  ;;  %v2046_v18 = vsel %vm2043_vm13, %v2013_v57, %v3118_v43  ;;  %v2047_v20 = vsel %vm2043_vm13, %v2014_v51, %v3119_v56  ;;  %v2060_v7 = vsel %vm2043_vm13, %v2027_v19, %v3113_v1  ;;  %v5624_v57 = vld [vmem:[#allocation26_spill] sm:$0xff]  ;;  %v5625_v51 = vld [vmem:[#allocation32_spill] sm:$0xff] }
 0x16d   : > { %v3129_v54 = vunpack.i.h.bf16 %v3127_v36  ;;  %v3128_v59 = vunpack.i.l.bf16 %v3127_v36  ;;  %v3122_v40 = vpop.permute.xlu1 %3121  ;;  %v2061_v3 = vsel %vm2043_vm13, %v2028_v8, %v3114_v10  ;;  %v1963_v2 = vsel %vm1944_vm11, %v4911_v39, %v3059_v26 }
 0x16e   : > { %v3124_v30 = vunpack.i.h.bf16 %v3122_v40  ;;  %v3123_v42 = vunpack.i.l.bf16 %v3122_v40  ;;  %v1964_v61 = vsel %vm1944_vm11, %v4917_v47, %v3063_v4  ;;  %v1996_v36 = vsel %vm1977_vm2, %v1963_v2, %v3083_v37  ;;  %v5631_v2 = vld [vmem:[#allocation27_spill] sm:$0xff] }
 0x16f   : > { %v2077_v38 = vsel %vm2076_vm14, %v2044_v23, %v3128_v59  ;;  %v2078_v50 = vsel %vm2076_vm14, %v2045_v34, %v3129_v54  ;;  %3411 = vrot.lane.b32.xlu1 %v5623_v16, %s3437_s7  ;;  %v1997_v33 = vsel %vm1977_vm2, %v1964_v61, %v3084_v15  ;;  %v2029_v11 = vsel %vm2010_vm12, %v1996_v36, %v3103_v48 }
 0x170   : > { %v3137_v62 = vpop.permute.xlu0 %3136  ;;  %v2109_v55 = vpack.c.bf16 %v2078_v50, %v2077_v38  ;;  %v2030_v23 = vsel %vm2010_vm12, %v1997_v33, %v3104_v44  ;;  %v2062_v47 = vsel %vm2043_vm13, %v2029_v11, %v3123_v42  ;;  %v2749_v38 = vunpack.i.h.bf16 %v5624_v57 }
 0x171   : > { %v3139_v0 = vunpack.i.h.bf16 %v3137_v62  ;;  %v3138_v29 = vunpack.i.l.bf16 %v3137_v62  ;;  %v3132_v9 = vpop.permute.xlu1 %3131  ;;  %v2063_v4 = vsel %vm2043_vm13, %v2030_v23, %v3124_v30  ;;  %v2748_v19 = vunpack.i.l.bf16 %v5624_v57  ;;  %v5626_v62 = vld [vmem:[#allocation59_spill] sm:$0xff]  ;;  %v5630_v30 = vld [vmem:[#allocation28_spill] sm:$0xff] }
 0x172   : > { %2633 = vmatprep.mubr.msk.bf16.mxu0 %vm2171_vm15, %v2109_v55  ;;  %v3134_v52 = vunpack.i.h.bf16 %v3132_v9  ;;  %v3133_v22 = vunpack.i.l.bf16 %v3132_v9  ;;  %v2754_v10 = vunpack.i.h.bf16 %v5625_v51  ;;  %v2753_v16 = vunpack.i.l.bf16 %v5625_v51 }
 0x173   : > { %v2079_v25 = vsel %vm2076_vm14, %v2046_v18, %v3138_v29  ;;  %v2080_v45 = vsel %vm2076_vm14, %v2047_v20, %v3139_v0  ;;  %v2829_v55 = vunpack.i.h.bf16 %v5626_v62  ;;  %v2828_v8 = vunpack.i.l.bf16 %v5626_v62  ;;  %v5627_v0 = vld [vmem:[#allocation41_spill] sm:$0xff]  ;;  %v5628_v18 = vld [vmem:[#allocation24_spill] sm:$0xff] }
 0x174   : > { %v2110_v53 = vpack.c.bf16 %v2080_v45, %v2079_v25  ;;  %v4986_v28 = vpop.permute.xlu0 %3146  ;;  %v2093_v12 = vsel %vm2076_vm14, %v2060_v7, %v3133_v22  ;;  %v2094_v5 = vsel %vm2076_vm14, %v2061_v3, %v3134_v52  ;;  %v2834_v29 = vunpack.i.h.bf16 %v5627_v0  ;;  %v5629_v25 = vld [vmem:[#allocation25_spill] sm:$0xff] }
 0x175   : > { %v3142_v54 = vpop.permute.xlu1 %3141  ;;  %v2117_v59 = vpack.c.bf16 %v2094_v5, %v2093_v12  ;;  %v2833_v48 = vunpack.i.l.bf16 %v5627_v0  ;;  %v1834_v20 = vsel %vm1812_vm0, %v5628_v18, %v2749_v38  ;;  %v2909_v9 = vunpack.i.h.bf16 %v4440_v58 }
 0x176   : > { %2634 = vmatmul.mubr.msk.bf16.vlgmr.msra.gmra.mxu0 %vm2171_vm15, %v2110_v53  ;;  %v3144_v39 = vunpack.i.h.bf16 %v3142_v54  ;;  %v3143_v26 = vunpack.i.l.bf16 %v3142_v54  ;;  %v2908_v7 = vunpack.i.l.bf16 %v4440_v58  ;;  %v2913_v52 = vunpack.i.l.bf16 %v4476_v35 }
 0x177   : > { %2649 = vmatprep.mubr.msk.bf16.mxu1 %vm2171_vm15, %v2117_v59  ;;  %v1833_v45 = vsel %vm1812_vm0, %v5629_v25, %v2748_v19  ;;  %v1836_v42 = vsel %vm1812_vm0, %v5630_v30, %v2754_v10  ;;  %v2914_v53 = vunpack.i.h.bf16 %v4476_v35  ;;  %v2988_v3 = vunpack.i.l.bf16 %v4590_v14 }
 0x178   : > { %v5005_v1 = vpop.permute.xlu0 %3156  ;;  %v2095_v15 = vsel %vm2076_vm14, %v2062_v47, %v3143_v26  ;;  %v2096_v56 = vsel %vm2076_vm14, %v2063_v4, %v3144_v39  ;;  %v1835_v61 = vsel %vm1812_vm0, %v5631_v2, %v2753_v16  ;;  %v1866_v12 = vsel %vm1845_vm1, %v1833_v45, %v2828_v8 }
 0x179   : > { %v2118_v43 = vpack.c.bf16 %v2096_v56, %v2095_v15  ;;  %v5009_v40 = vpop.permute.xlu1 %3151  ;;  %v1867_v58 = vsel %vm1845_vm1, %v1834_v20, %v2829_v55  ;;  %v2989_v5 = vunpack.i.h.bf16 %v4590_v14  ;;  %v1869_v33 = vsel %vm1845_vm1, %v1836_v42, %v2834_v29 }
 0x17a   : > { %v1868_v54 = vsel %vm1845_vm1, %v1835_v61, %v2833_v48  ;;  %v2994_v59 = vunpack.i.h.bf16 %v4608_v32  ;;  %v2993_v35 = vunpack.i.l.bf16 %v4608_v32  ;;  %v1899_v11 = vsel %vm1878_vm9, %v1866_v12, %v2908_v7 }
 0x17b   : > { %2650 = vmatmul.mubr.msk.bf16.vlgmr.msra.gmra.mxu1 %vm2171_vm15, %v2118_v43  ;;  %v1900_v23 = vsel %vm1878_vm9, %v1867_v58, %v2909_v9  ;;  %v1901_v39 = vsel %vm1878_vm9, %v1868_v54, %v2913_v52  ;;  %v3064_v26 = vunpack.i.h.bf16 %v4803_v17  ;;  %v1902_v14 = vsel %vm1878_vm9, %v1869_v33, %v2914_v53 }
 0x17c   : > { %v3167_v34 = vpop.permute.xlu0 %3166  ;;  %v1932_v4 = vsel %vm1911_vm10, %v1899_v11, %v2988_v3  ;;  %v3148_v15 = vunpack.i.l.bf16 %v4986_v28  ;;  %v3158_v56 = vunpack.i.l.bf16 %v5005_v1  ;;  %v1933_v43 = vsel %vm1911_vm10, %v1900_v23, %v2989_v5 }
 0x17d   : > { %v5012_v37 = vpop.permute.xlu1 %3161  ;;  %v3159_v32 = vunpack.i.h.bf16 %v5005_v1  ;;  %v3169_v57 = vunpack.i.h.bf16 %v3167_v34  ;;  %v3168_v38 = vunpack.i.l.bf16 %v3167_v34  ;;  %v5063_v51 = vsel %vm1911_vm10, %v1901_v39, %v2993_v35 }
 0x17e   : > { %v5066_v17 = vsel %vm1911_vm10, %v1902_v14, %v2994_v59  ;;  %v3164_v10 = vunpack.i.h.bf16 %v5012_v37  ;;  %v3163_v16 = vunpack.i.l.bf16 %v5012_v37  ;;  %v1965_v62 = vsel %vm1944_vm11, %v1932_v4, %v3064_v26 }
 0x17f   : > { %v3149_v55 = vunpack.i.h.bf16 %v4986_v28  ;;  %v1966_v0 = vsel %vm1944_vm11, %v1933_v43, %v3148_v15  ;;  %v3153_v29 = vunpack.i.l.bf16 %v5009_v40  ;;  %v1982_v48 = vsel %vm1977_vm2, %v4698_v21, %v3158_v56 }
 0x180   : > { %v5015_v50 = vpop.permute.xlu0 %3176  ;;  %v1983_v37 = vsel %vm1977_vm2, %v4701_v60, %v3159_v32  ;;  %v1985_v20 = vsel %vm1977_vm2, %v4738_v46, %v3169_v57  ;;  %v1984_v28 = vsel %vm1977_vm2, %v4735_v49, %v3168_v38  ;;  %v1998_v7 = vsel %vm1977_vm2, %v1965_v62, %v3163_v16 }
 0x181   : > { %v5022_v44 = vpop.permute.xlu1 %3171  ;;  %v3179_v1 = vunpack.i.h.bf16 %v5015_v50  ;;  %v3178_v34 = vunpack.i.l.bf16 %v5015_v50  ;;  %v1999_v52 = vsel %vm1977_vm2, %v1966_v0, %v3164_v10 }
 0x182   : > { %v3174_v25 = vunpack.i.h.bf16 %v5022_v44  ;;  %v3173_v54 = vunpack.i.l.bf16 %v5022_v44 }
 0x183   : > { %v2015_v45 = vsel %vm2010_vm12, %v1982_v48, %v3178_v34  ;;  %v2016_v60 = vsel %vm2010_vm12, %v1983_v37, %v3179_v1  ;;  %v1967_v48 = vsel %vm1944_vm11, %v5063_v51, %v3149_v55 }
 0x184   : > { %v5031_v22 = vpop.permute.xlu0 %3186 }
 0x185   : > { %v5044_v36 = vpop.permute.xlu1 %3181  ;;  %v3188_v21 = vunpack.i.l.bf16 %v5031_v22  ;;  %v3189_v46 = vunpack.i.h.bf16 %v5031_v22 }
 0x186   : > { %v3183_v30 = vunpack.i.l.bf16 %v5044_v36  ;;  %v3184_v49 = vunpack.i.h.bf16 %v5044_v36 }
 0x187   : > { %v2017_v59 = vsel %vm2010_vm12, %v1984_v28, %v3188_v21  ;;  %v2018_v11 = vsel %vm2010_vm12, %v1985_v20, %v3189_v46  ;;  %v2000_v28 = vsel %vm1977_vm2, %v1967_v48, %v3173_v54 }
 0x188   : > { %v3197_v47 = vpop.permute.xlu0 %3196  ;;  %v2031_v36 = vsel %vm2010_vm12, %v1998_v7, %v3183_v30 }
 0x189   : > { %v5060_v19 = vpop.permute.xlu1 %3191  ;;  %v3198_v18 = vunpack.i.l.bf16 %v3197_v47  ;;  %v3199_v9 = vunpack.i.h.bf16 %v3197_v47  ;;  %v2032_v47 = vsel %vm2010_vm12, %v1999_v52, %v3184_v49 }
 0x18a   : > { %v3194_v14 = vunpack.i.h.bf16 %v5060_v19  ;;  %v3193_v44 = vunpack.i.l.bf16 %v5060_v19 }
 0x18b   : > { %v2048_v53 = vsel %vm2043_vm13, %v2015_v45, %v3198_v18  ;;  %v2049_v61 = vsel %vm2043_vm13, %v2016_v60, %v3199_v9  ;;  %v1968_v18 = vsel %vm1944_vm11, %v5066_v17, %v3153_v29 }
 0x18c   : > { %v3207_v8 = vpop.permute.xlu0 %3206  ;;  %v2001_v9 = vsel %vm1977_vm2, %v1968_v18, %v3174_v25  ;;  %v2033_v52 = vsel %vm2010_vm12, %v2000_v28, %v3193_v44 }
 0x18d   : > { %v3202_v50 = vpop.permute.xlu1 %3201  ;;  %v3209_v58 = vunpack.i.h.bf16 %v3207_v8  ;;  %v3208_v5 = vunpack.i.l.bf16 %v3207_v8  ;;  %v2034_v21 = vsel %vm2010_vm12, %v2001_v9, %v3194_v14 }
 0x18e   : > { %v3203_v12 = vunpack.i.l.bf16 %v3202_v50  ;;  %v3204_v23 = vunpack.i.h.bf16 %v3202_v50 }
 0x18f   : > { %v2050_v43 = vsel %vm2043_vm13, %v2017_v59, %v3208_v5  ;;  %v2051_v32 = vsel %vm2043_vm13, %v2018_v11, %v3209_v58 }
 0x190   : > { %v3217_v42 = vpop.permute.xlu0 %3216  ;;  %v2064_v56 = vsel %vm2043_vm13, %v2031_v36, %v3203_v12  ;;  %v2065_v1 = vsel %vm2043_vm13, %v2032_v47, %v3204_v23  ;;  %v3154_v12 = vunpack.i.h.bf16 %v5009_v40 }
 0x191   : > { %v3219_v3 = vunpack.i.h.bf16 %v3217_v42  ;;  %v3218_v2 = vunpack.i.l.bf16 %v3217_v42  ;;  %v3212_v33 = vpop.permute.xlu1 %3211 }
 0x192   : > { %v3214_v34 = vunpack.i.h.bf16 %v3212_v33  ;;  %v3213_v8 = vunpack.i.l.bf16 %v3212_v33  ;;  %v1969_v23 = vsel %vm1944_vm11, %v4614_v41, %v3154_v12 }
 0x193   : > { %v2081_v35 = vsel %vm2076_vm14, %v2048_v53, %v3218_v2  ;;  %v2082_v22 = vsel %vm2076_vm14, %v2049_v61, %v3219_v3 }
 0x194   : > { %v2111_v39 = vpack.c.bf16 %v2082_v22, %v2081_v35  ;;  %v3227_v26 = vpop.permute.xlu0 %3226  ;;  %v2066_v17 = vsel %vm2043_vm13, %v2033_v52, %v3213_v8  ;;  %v2067_v29 = vsel %vm2043_vm13, %v2034_v21, %v3214_v34 }
 0x195   : > { %v3229_v4 = vunpack.i.h.bf16 %v3227_v26  ;;  %v3228_v15 = vunpack.i.l.bf16 %v3227_v26  ;;  %v3222_v57 = vpop.permute.xlu1 %3221 }
 0x196   : > { %2637 = vmatprep.mubr.msk.bf16.mxu0 %vm2171_vm15, %v2111_v39  ;;  %v3224_v38 = vunpack.i.h.bf16 %v3222_v57  ;;  %v3223_v10 = vunpack.i.l.bf16 %v3222_v57 }
 0x197   : > { %v2083_v16 = vsel %vm2076_vm14, %v2050_v43, %v3228_v15  ;;  %v2084_v62 = vsel %vm2076_vm14, %v2051_v32, %v3229_v4 }
 0x198   : > { %v2112_v19 = vpack.c.bf16 %v2084_v62, %v2083_v16  ;;  %v5111_v0 = vpop.permute.xlu0 %3236  ;;  %v2097_v37 = vsel %vm2076_vm14, %v2064_v56, %v3223_v10  ;;  %v2098_v20 = vsel %vm2076_vm14, %v2065_v1, %v3224_v38 }
 0x199   : > { %v2119_v50 = vpack.c.bf16 %v2098_v20, %v2097_v37  ;;  %v3232_v7 = vpop.permute.xlu1 %3231  ;;  %v3238_v5 = vunpack.i.l.bf16 %v5111_v0  ;;  %v3239_v39 = vunpack.i.h.bf16 %v5111_v0 }
 0x19a   : > { %2638 = vmatmul.mubr.msk.bf16.gmra.mxu0 %vm2171_vm15, %v2112_v19  ;;  %v3234_v51 = vunpack.i.h.bf16 %v3232_v7  ;;  %v3233_v55 = vunpack.i.l.bf16 %v3232_v7 }
 0x19b   : > { %2653 = vmatprep.mubr.msk.bf16.mxu1 %vm2171_vm15, %v2119_v50  ;;  %v1970_v40 = vsel %vm1944_vm11, %v4618_v24, %v3238_v5 }
 0x19c   : > { %v3247_v45 = vpop.permute.xlu0 %3246  ;;  %v2099_v60 = vsel %vm2076_vm14, %v2066_v17, %v3233_v55  ;;  %v2100_v25 = vsel %vm2076_vm14, %v2067_v29, %v3234_v51 }
 0x19d   : > { %v2120_v30 = vpack.c.bf16 %v2100_v25, %v2099_v60  ;;  %v5129_v46 = vpop.permute.xlu1 %3241  ;;  %v3248_v33 = vunpack.i.l.bf16 %v3247_v45  ;;  %v3249_v54 = vunpack.i.h.bf16 %v3247_v45 }
 0x19e   : > { %v3243_v4 = vunpack.i.l.bf16 %v5129_v46 }
 0x19f   : > { %2654 = vmatmul.mubr.msk.bf16.gmra.mxu1 %vm2171_vm15, %v2120_v30  ;;  %v1986_v15 = vsel %vm1977_vm2, %v4723_v13, %v3248_v33  ;;  %v1987_v56 = vsel %vm1977_vm2, %v4727_v6, %v3249_v54 }
 0x1a0   : > { %v3257_v42 = vpop.permute.xlu0 %3256 }
 0x1a1   : > { %v3252_v49 = vpop.permute.xlu1 %3251  ;;  %v3259_v59 = vunpack.i.h.bf16 %v3257_v42  ;;  %v3258_v35 = vunpack.i.l.bf16 %v3257_v42 }
 0x1a2   : > { %v3254_v36 = vunpack.i.h.bf16 %v3252_v49  ;;  %v3253_v11 = vunpack.i.l.bf16 %v3252_v49 }
 0x1a3   : > { %v1989_v41 = vsel %vm1977_vm2, %v4766_v27, %v3259_v59  ;;  %v1988_v43 = vsel %vm1977_vm2, %v4762_v63, %v3258_v35 }
 0x1a4   : > { %v3267_v53 = vpop.permute.xlu0 %3266  ;;  %v2002_v38 = vsel %vm1977_vm2, %v1969_v23, %v3253_v11  ;;  %v2003_v24 = vsel %vm1977_vm2, %v1970_v40, %v3254_v36  ;;  %v5632_v36 = vld [vmem:[#allocation56_spill] sm:$0xff] }
 0x1a5   : > { %v5132_v3 = vpop.permute.xlu1 %3261  ;;  %v3269_v26 = vunpack.i.h.bf16 %v3267_v53  ;;  %v3268_v47 = vunpack.i.l.bf16 %v3267_v53  ;;  %v1972_v11 = vsel %vm1944_vm11, %v5632_v36, %v3243_v4 }
 0x1a6   : > { %v3264_v10 = vunpack.i.h.bf16 %v5132_v3  ;;  %v3263_v28 = vunpack.i.l.bf16 %v5132_v3 }
 0x1a7   : > { %v2019_v13 = vsel %vm2010_vm12, %v1986_v15, %v3268_v47  ;;  %v2020_v62 = vsel %vm2010_vm12, %v1987_v56, %v3269_v26 }
 0x1a8   : > { %v3277_v2 = vpop.permute.xlu0 %3276 }
 0x1a9   : > { %v3272_v61 = vpop.permute.xlu1 %3271  ;;  %v3278_v16 = vunpack.i.l.bf16 %v3277_v2  ;;  %v3279_v1 = vunpack.i.h.bf16 %v3277_v2 }
 0x1aa   : > { %v3273_v6 = vunpack.i.l.bf16 %v3272_v61  ;;  %v3274_v27 = vunpack.i.h.bf16 %v3272_v61 }
 0x1ab   : > { %v2021_v9 = vsel %vm2010_vm12, %v1988_v43, %v3278_v16  ;;  %v2022_v21 = vsel %vm2010_vm12, %v1989_v41, %v3279_v1 }
 0x1ac   : > { %v3287_v58 = vpop.permute.xlu0 %3286  ;;  %v2035_v52 = vsel %vm2010_vm12, %v2002_v38, %v3273_v6  ;;  %v2036_v29 = vsel %vm2010_vm12, %v2003_v24, %v3274_v27 }
 0x1ad   : > { %v5136_v22 = vpop.permute.xlu1 %3281  ;;  %v3288_v44 = vunpack.i.l.bf16 %v3287_v58  ;;  %v3289_v32 = vunpack.i.h.bf16 %v3287_v58 }
 0x1ae   : > { %v3284_v45 = vunpack.i.h.bf16 %v5136_v22  ;;  %v3283_v30 = vunpack.i.l.bf16 %v5136_v22  ;;  %v1971_v22 = vsel %vm1944_vm11, %v4659_v31, %v3239_v39 }
 0x1af   : > { %v2052_v8 = vsel %vm2043_vm13, %v2019_v13, %v3288_v44  ;;  %v2053_v0 = vsel %vm2043_vm13, %v2020_v62, %v3289_v32  ;;  %v2004_v47 = vsel %vm1977_vm2, %v1971_v22, %v3263_v28 }
 0x1b0   : > { %v3297_v14 = vpop.permute.xlu0 %3296  ;;  %v2037_v44 = vsel %vm2010_vm12, %v2004_v47, %v3283_v30 }
 0x1b1   : > { %v3292_v57 = vpop.permute.xlu1 %3291  ;;  %v3299_v18 = vunpack.i.h.bf16 %v3297_v14  ;;  %v3298_v37 = vunpack.i.l.bf16 %v3297_v14  ;;  %v2005_v14 = vsel %vm1977_vm2, %v1972_v11, %v3264_v10 }
 0x1b2   : > { %v3293_v48 = vunpack.i.l.bf16 %v3292_v57  ;;  %v3294_v51 = vunpack.i.h.bf16 %v3292_v57  ;;  %v2038_v56 = vsel %vm2010_vm12, %v2005_v14, %v3284_v45 }
 0x1b3   : > { %v2054_v49 = vsel %vm2043_vm13, %v2021_v9, %v3298_v37  ;;  %v2055_v53 = vsel %vm2043_vm13, %v2022_v21, %v3299_v18  ;;  %v5635_v21 = vld [vmem:[#allocation52_spill] sm:$0xff] }
 0x1b4   : > { %v3307_v34 = vpop.permute.xlu0 %3306  ;;  %v2068_v42 = vsel %vm2043_vm13, %v2035_v52, %v3293_v48  ;;  %v2069_v5 = vsel %vm2043_vm13, %v2036_v29, %v3294_v51 }
 0x1b5   : > { %v3309_v63 = vunpack.i.h.bf16 %v3307_v34  ;;  %v3308_v19 = vunpack.i.l.bf16 %v3307_v34  ;;  %v3302_v20 = vpop.permute.xlu1 %3301  ;;  %v3244_v34 = vunpack.i.h.bf16 %v5129_v46 }
 0x1b6   : > { %v3304_v33 = vunpack.i.h.bf16 %v3302_v20  ;;  %v3303_v54 = vunpack.i.l.bf16 %v3302_v20  ;;  %v5633_v20 = vld [vmem:[#allocation45_spill] sm:$0xff] }
 0x1b7   : > { %v2085_v50 = vsel %vm2076_vm14, %v2052_v8, %v3308_v19  ;;  %v2086_v7 = vsel %vm2076_vm14, %v2053_v0, %v3309_v63  ;;  %v1973_v28 = vsel %vm1944_vm11, %v5633_v20, %v3244_v34 }
 0x1b8   : > { %v2113_v55 = vpack.c.bf16 %v2086_v7, %v2085_v50  ;;  %v3317_v17 = vpop.permute.xlu0 %3316  ;;  %v2070_v4 = vsel %vm2043_vm13, %v2037_v44, %v3303_v54  ;;  %v2071_v41 = vsel %vm2043_vm13, %v2038_v56, %v3304_v33  ;;  %v5634_v7 = vld [vmem:[#allocation43_spill] sm:$0xff] }
 0x1b9   : > { %v3319_v60 = vunpack.i.h.bf16 %v3317_v17  ;;  %v3318_v25 = vunpack.i.l.bf16 %v3317_v17  ;;  %v3312_v3 = vpop.permute.xlu1 %3311 }
 0x1ba   : > { %2641 = vmatprep.mubr.msk.bf16.mxu0 %vm2171_vm15, %v2113_v55  ;;  %v3314_v2 = vunpack.i.h.bf16 %v3312_v3  ;;  %v3313_v61 = vunpack.i.l.bf16 %v3312_v3 }
 0x1bb   : > { %v2087_v12 = vsel %vm2076_vm14, %v2054_v49, %v3318_v25  ;;  %v2088_v58 = vsel %vm2076_vm14, %v2055_v53, %v3319_v60  ;;  %v5636_v60 = vld [vmem:[#allocation17_spill] sm:$0xff] }
 0x1bc   : > { %v2114_v59 = vpack.c.bf16 %v2088_v58, %v2087_v12  ;;  %v3327_v35 = vpop.permute.xlu0 %3326  ;;  %v2101_v23 = vsel %vm2076_vm14, %v2068_v42, %v3313_v61  ;;  %v2102_v26 = vsel %vm2076_vm14, %v2069_v5, %v3314_v2  ;;  %v5637_v42 = vld [vmem:[#allocation33_spill] sm:$0xff] }
 0x1bd   : > { %v2121_v40 = vpack.c.bf16 %v2102_v26, %v2101_v23  ;;  %v3322_v15 = vpop.permute.xlu1 %3321  ;;  %v3329_v27 = vunpack.i.h.bf16 %v3327_v35  ;;  %v3328_v8 = vunpack.i.l.bf16 %v3327_v35  ;;  %v5638_v53 = vld [vmem:[#allocation13_spill] sm:$0xff] }
 0x1be   : > { %2642 = vmatmul.mubr.msk.bf16.gmra.mxu0 %vm2171_vm15, %v2114_v59  ;;  %v3324_v31 = vunpack.i.h.bf16 %v3322_v15  ;;  %v3323_v39 = vunpack.i.l.bf16 %v3322_v15 }
 0x1bf   : > { %2657 = vmatprep.mubr.msk.bf16.mxu1 %vm2171_vm15, %v2121_v40  ;;  %v1960_v52 = vsel %vm1944_vm11, %v5634_v7, %v3329_v27  ;;  %v1974_v46 = vsel %vm1944_vm11, %v5635_v21, %v3328_v8 }
 0x1c0   : > { %v3337_v43 = vpop.permute.xlu0 %3336  ;;  %v2103_v32 = vsel %vm2076_vm14, %v2070_v4, %v3323_v39  ;;  %v2104_v57 = vsel %vm2076_vm14, %v2071_v41, %v3324_v31 }
 0x1c1   : > { %v2122_v38 = vpack.c.bf16 %v2104_v57, %v2103_v32  ;;  %v5191_v24 = vpop.permute.xlu1 %3331  ;;  %v3338_v19 = vunpack.i.l.bf16 %v3337_v43  ;;  %v3339_v0 = vunpack.i.h.bf16 %v3337_v43 }
 0x1c2   : > { %v3334_v29 = vunpack.i.h.bf16 %v5191_v24  ;;  %v3333_v45 = vunpack.i.l.bf16 %v5191_v24 }
 0x1c3   : > { %2658 = vmatmul.mubr.msk.bf16.gmra.mxu1 %vm2171_vm15, %v2122_v38  ;;  %v1990_v25 = vsel %vm1977_vm2, %v5636_v60, %v3338_v19  ;;  %v1991_v49 = vsel %vm1977_vm2, %v5637_v42, %v3339_v0 }
 0x1c4   : > { %v3347_v10 = vpop.permute.xlu0 %3346 }
 0x1c5   : > { %v3342_v16 = vpop.permute.xlu1 %3341  ;;  %v3349_v48 = vunpack.i.h.bf16 %v3347_v10  ;;  %v3348_v18 = vunpack.i.l.bf16 %v3347_v10 }
 0x1c6   : > { %v3344_v9 = vunpack.i.h.bf16 %v3342_v16  ;;  %v3343_v50 = vunpack.i.l.bf16 %v3342_v16 }
 0x1c7   : > { %v1992_v3 = vsel %vm1977_vm2, %v5638_v53, %v3348_v18  ;;  %v1993_v2 = vsel %vm1977_vm2, %v1960_v52, %v3349_v48  ;;  %v5640_v52 = vld [vmem:[#allocation55_spill] sm:$0xff] }
 0x1c8   : > { %v3357_v13 = vpop.permute.xlu0 %3356  ;;  %v2006_v58 = vsel %vm1977_vm2, %v1973_v28, %v3343_v50  ;;  %v2007_v5 = vsel %vm1977_vm2, %v1974_v46, %v3344_v9  ;;  %v5639_v50 = vld [vmem:[#allocation16_spill] sm:$0xff]  ;;  %v1976_v21 = vsel %vm1944_vm11, %v5640_v52, %v3334_v29 }
 0x1c9   : > { %v5194_v62 = vpop.permute.xlu1 %3351  ;;  %v3359_v51 = vunpack.i.h.bf16 %v3357_v13  ;;  %v3358_v55 = vunpack.i.l.bf16 %v3357_v13  ;;  %v1975_v7 = vsel %vm1944_vm11, %v5639_v50, %v3333_v45 }
 0x1ca   : > { %v3354_v33 = vunpack.i.h.bf16 %v5194_v62  ;;  %v3353_v39 = vunpack.i.l.bf16 %v5194_v62 }
 0x1cb   : > { %v2023_v59 = vsel %vm2010_vm12, %v1990_v25, %v3358_v55  ;;  %v2024_v35 = vsel %vm2010_vm12, %v1991_v49, %v3359_v51 }
 0x1cc   : > { %v3367_v6 = vpop.permute.xlu0 %3366  ;;  %v2008_v55 = vsel %vm1977_vm2, %v1975_v7, %v3353_v39 }
 0x1cd   : > { %v3362_v1 = vpop.permute.xlu1 %3361  ;;  %v3368_v54 = vunpack.i.l.bf16 %v3367_v6  ;;  %v3369_v36 = vunpack.i.h.bf16 %v3367_v6 }
 0x1ce   : > { %v3363_v22 = vunpack.i.l.bf16 %v3362_v1  ;;  %v3364_v23 = vunpack.i.h.bf16 %v3362_v1 }
 0x1cf   : > { %v2025_v4 = vsel %vm2010_vm12, %v1992_v3, %v3368_v54  ;;  %v2026_v57 = vsel %vm2010_vm12, %v1993_v2, %v3369_v36 }
 0x1d0   : > { %v3377_v63 = vpop.permute.xlu0 %3376  ;;  %v2039_v32 = vsel %vm2010_vm12, %v2006_v58, %v3363_v22  ;;  %v2040_v16 = vsel %vm2010_vm12, %v2007_v5, %v3364_v23 }
 0x1d1   : > { %v5197_v37 = vpop.permute.xlu1 %3371  ;;  %v3378_v30 = vunpack.i.l.bf16 %v3377_v63  ;;  %v3379_v61 = vunpack.i.h.bf16 %v3377_v63 }
 0x1d2   : > { %v3374_v13 = vunpack.i.h.bf16 %v5197_v37  ;;  %v3373_v62 = vunpack.i.l.bf16 %v5197_v37 }
 0x1d3   : > { %v2056_v26 = vsel %vm2043_vm13, %v2023_v59, %v3378_v30  ;;  %v2057_v40 = vsel %vm2043_vm13, %v2024_v35, %v3379_v61 }
 0x1d4   : > { %v3387_v17 = vpop.permute.xlu0 %3386  ;;  %v2041_v30 = vsel %vm2010_vm12, %v2008_v55, %v3373_v62 }
 0x1d5   : > { %v3382_v12 = vpop.permute.xlu1 %3381  ;;  %v3389_v44 = vunpack.i.h.bf16 %v3387_v17  ;;  %v3388_v56 = vunpack.i.l.bf16 %v3387_v17  ;;  %v2009_v17 = vsel %vm1977_vm2, %v1976_v21, %v3354_v33 }
 0x1d6   : > { %v3383_v15 = vunpack.i.l.bf16 %v3382_v12  ;;  %v3384_v38 = vunpack.i.h.bf16 %v3382_v12  ;;  %v2042_v45 = vsel %vm2010_vm12, %v2009_v17, %v3374_v13  ;;  %v5257_v12 = vld [vmem:[%s5370_s5] ss:$0 sm:$0xff] }
 0x1d7   : > { %v2058_v27 = vsel %vm2043_vm13, %v2025_v4, %v3388_v56  ;;  %v2059_v8 = vsel %vm2043_vm13, %v2026_v57, %v3389_v44 }
 0x1d8   : > { %v3397_v11 = vpop.permute.xlu0 %3396  ;;  %v2072_v34 = vsel %vm2043_vm13, %v2039_v32, %v3383_v15  ;;  %v2073_v20 = vsel %vm2043_vm13, %v2040_v16, %v3384_v38 }
 0x1d9   : > { %v3399_v47 = vunpack.i.h.bf16 %v3397_v11  ;;  %v3398_v14 = vunpack.i.l.bf16 %v3397_v11  ;;  %v3392_v31 = vpop.permute.xlu1 %3391 }
 0x1da   : > { %v3394_v28 = vunpack.i.h.bf16 %v3392_v31  ;;  %v3393_v9 = vunpack.i.l.bf16 %v3392_v31 }
 0x1db   : > { %v2089_v41 = vsel %vm2076_vm14, %v2056_v26, %v3398_v14  ;;  %v2090_v43 = vsel %vm2076_vm14, %v2057_v40, %v3399_v47 }
 0x1dc   : > { %v2115_v24 = vpack.c.bf16 %v2090_v43, %v2089_v41  ;;  %v3407_v10 = vpop.permute.xlu0 %3406  ;;  %v2074_v29 = vsel %vm2043_vm13, %v2041_v30, %v3393_v9  ;;  %v2075_v53 = vsel %vm2043_vm13, %v2042_v45, %v3394_v28 }
 0x1dd   : > { %v3409_v6 = vunpack.i.h.bf16 %v3407_v10  ;;  %v3408_v1 = vunpack.i.l.bf16 %v3407_v10  ;;  %v3402_v63 = vpop.permute.xlu1 %3401 }
 0x1de   : > { %2645 = vmatprep.mubr.msk.bf16.mxu0 %vm2171_vm15, %v2115_v24  ;;  %v3404_v19 = vunpack.i.h.bf16 %v3402_v63  ;;  %v3403_v0 = vunpack.i.l.bf16 %v3402_v63 }
 0x1df   : > { %v2091_v48 = vsel %vm2076_vm14, %v2058_v27, %v3408_v1  ;;  %v2092_v18 = vsel %vm2076_vm14, %v2059_v8, %v3409_v6 }
 0x1e0   : > { %v2116_v37 = vpack.c.bf16 %v2092_v18, %v2091_v48  ;;  %v2105_v46 = vsel %vm2076_vm14, %v2072_v34, %v3403_v0  ;;  %v2106_v51 = vsel %vm2076_vm14, %v2073_v20, %v3404_v19 }
 0x1e1   : > { %v2123_v60 = vpack.c.bf16 %v2106_v51, %v2105_v46  ;;  %v3412_v25 = vpop.permute.xlu1 %3411 }
 0x1e2   : > { %2646 = vmatmul.mubr.msk.bf16.gmra.mxu0 %vm2171_vm15, %v2116_v37  ;;  %v3414_v42 = vunpack.i.h.bf16 %v3412_v25  ;;  %v3413_v49 = vunpack.i.l.bf16 %v3412_v25 }
 0x1e3   : > { %2661 = vmatprep.mubr.msk.bf16.mxu1 %vm2171_vm15, %v2123_v60 }
 0x1e4   : > { %v2107_v3 = vsel %vm2076_vm14, %v2074_v29, %v3413_v49  ;;  %v2108_v2 = vsel %vm2076_vm14, %v2075_v53, %v3414_v42 }
 0x1e5   : > { %v2124_v61 = vpack.c.bf16 %v2108_v2, %v2107_v3 }
 0x1e7   : > { %2662 = vmatmul.mubr.msk.bf16.gmra.mxu1 %vm2171_vm15, %v2124_v61 }
 0x236   : > { %v2635_v58 = vpop.f32.mrf.mxu0 }
 0x237   : > { %v2266_v5 = vadd.f32 %v2635_v58, %v5257_v12 }
 0x238   : > { %v2257_v33 = vpop.f32.mrf.mxu0 }
 0x239   : > { %2386 = vst.msk [vmem:[%s5264_s12 + $0x10] sm:$0xff] %vm1812_vm0, %v2266_v5  ;;  %v2258_v54 = vadd.f32 %v5257_v12, %v2257_v33 }
 0x23a   : > { %v2636_v59 = vpop.f32.mrf.mxu0 }
 0x23b   : > { %2384 = vst.msk [vmem:[%s5264_s12] sm:$0xff] %vm1812_vm0, %v2258_v54  ;;  %v2269_v35 = vadd.f32 %v2636_v59, %v5257_v12  ;;  %v2651_v22 = vpop.f32.mrf.mxu1 }
 0x23c   : > { %v2260_v36 = vpop.f32.mrf.mxu0  ;;  %v2330_v11 = vadd.f32 %v2651_v22, %v5257_v12 }
 0x23d   : > { %2387 = vst.msk [vmem:[%s5264_s12 + $0x18] sm:$0xff] %vm1812_vm0, %v2269_v35  ;;  %v2261_v23 = vadd.f32 %v5257_v12, %v2260_v36  ;;  %v2321_v26 = vpop.f32.mrf.mxu1 }
 0x23e   : > { %2402 = vst.msk [vmem:[%s5264_s12 + $0x90] sm:$0xff] %vm1812_vm0, %v2330_v11  ;;  %v2322_v47 = vadd.f32 %v5257_v12, %v2321_v26 }
 0x23f   : > { %2385 = vst.msk [vmem:[%s5264_s12 + $0x8] sm:$0xff] %vm1812_vm0, %v2261_v23  ;;  %v2652_v14 = vpop.f32.mrf.mxu1 }
 0x240   : > { %2400 = vst.msk [vmem:[%s5264_s12 + $0x80] sm:$0xff] %vm1812_vm0, %v2322_v47  ;;  %v2333_v40 = vadd.f32 %v2652_v14, %v5257_v12 }
 0x241   : > { %v2324_v15 = vpop.f32.mrf.mxu1 }
 0x242   : > { %2403 = vst.msk [vmem:[%s5264_s12 + $0x98] sm:$0xff] %vm1812_vm0, %v2333_v40  ;;  %v2325_v44 = vadd.f32 %v5257_v12, %v2324_v15 }
 0x244   : > { %2401 = vst.msk [vmem:[%s5264_s12 + $0x88] sm:$0xff] %vm1812_vm0, %v2325_v44 }
 0x25a   : > { %v2639_v56 = vpop.f32.mrf.mxu0 }
 0x25b   : > { %v2282_v31 = vadd.f32 %v2639_v56, %v5257_v12 }
 0x25c   : > { %v2273_v39 = vpop.f32.mrf.mxu0 }
 0x25d   : > { %2390 = vst.msk [vmem:[%s5264_s12 + $0x30] sm:$0xff] %vm1812_vm0, %v2282_v31  ;;  %v2274_v4 = vadd.f32 %v5257_v12, %v2273_v39 }
 0x25e   : > { %v2640_v41 = vpop.f32.mrf.mxu0 }
 0x25f   : > { %2388 = vst.msk [vmem:[%s5264_s12 + $0x20] sm:$0xff] %vm1812_vm0, %v2274_v4  ;;  %v2285_v43 = vadd.f32 %v2640_v41, %v5257_v12  ;;  %v2655_v32 = vpop.f32.mrf.mxu1 }
 0x260   : > { %v2276_v57 = vpop.f32.mrf.mxu0  ;;  %v2346_v38 = vadd.f32 %v2655_v32, %v5257_v12 }
 0x261   : > { %2391 = vst.msk [vmem:[%s5264_s12 + $0x38] sm:$0xff] %vm1812_vm0, %v2285_v43  ;;  %v2277_v24 = vadd.f32 %v5257_v12, %v2276_v57  ;;  %v2337_v10 = vpop.f32.mrf.mxu1 }
 0x262   : > { %2406 = vst.msk [vmem:[%s5264_s12 + $0xb0] sm:$0xff] %vm1812_vm0, %v2346_v38  ;;  %v2338_v16 = vadd.f32 %v5257_v12, %v2337_v10 }
 0x263   : > { %2389 = vst.msk [vmem:[%s5264_s12 + $0x28] sm:$0xff] %vm1812_vm0, %v2277_v24  ;;  %v2656_v13 = vpop.f32.mrf.mxu1 }
 0x264   : > { %2404 = vst.msk [vmem:[%s5264_s12 + $0xa0] sm:$0xff] %vm1812_vm0, %v2338_v16  ;;  %v2349_v6 = vadd.f32 %v2656_v13, %v5257_v12 }
 0x265   : > { %v2340_v1 = vpop.f32.mrf.mxu1 }
 0x266   : > { %2407 = vst.msk [vmem:[%s5264_s12 + $0xb8] sm:$0xff] %vm1812_vm0, %v2349_v6  ;;  %v2341_v62 = vadd.f32 %v5257_v12, %v2340_v1 }
 0x268   : > { %2405 = vst.msk [vmem:[%s5264_s12 + $0xa8] sm:$0xff] %vm1812_vm0, %v2341_v62 }
 0x27e   : > { %v2643_v34 = vpop.f32.mrf.mxu0 }
 0x27f   : > { %v2298_v27 = vadd.f32 %v2643_v34, %v5257_v12 }
 0x280   : > { %v2289_v8 = vpop.f32.mrf.mxu0 }
 0x281   : > { %2394 = vst.msk [vmem:[%s5264_s12 + $0x50] sm:$0xff] %vm1812_vm0, %v2298_v27  ;;  %v2290_v63 = vadd.f32 %v5257_v12, %v2289_v8 }
 0x282   : > { %v2644_v19 = vpop.f32.mrf.mxu0 }
 0x283   : > { %2392 = vst.msk [vmem:[%s5264_s12 + $0x40] sm:$0xff] %vm1812_vm0, %v2290_v63  ;;  %v2301_v0 = vadd.f32 %v2644_v19, %v5257_v12  ;;  %v2659_v48 = vpop.f32.mrf.mxu1 }
 0x284   : > { %v2292_v18 = vpop.f32.mrf.mxu0  ;;  %v2362_v20 = vadd.f32 %v2659_v48, %v5257_v12 }
 0x285   : > { %2395 = vst.msk [vmem:[%s5264_s12 + $0x58] sm:$0xff] %vm1812_vm0, %v2301_v0  ;;  %v2293_v28 = vadd.f32 %v5257_v12, %v2292_v18  ;;  %v2353_v9 = vpop.f32.mrf.mxu1 }
 0x286   : > { %2410 = vst.msk [vmem:[%s5264_s12 + $0xd0] sm:$0xff] %vm1812_vm0, %v2362_v20  ;;  %v2354_v37 = vadd.f32 %v5257_v12, %v2353_v9 }
 0x287   : > { %2393 = vst.msk [vmem:[%s5264_s12 + $0x48] sm:$0xff] %vm1812_vm0, %v2293_v28  ;;  %v2660_v50 = vpop.f32.mrf.mxu1 }
 0x288   : > { %2408 = vst.msk [vmem:[%s5264_s12 + $0xc0] sm:$0xff] %vm1812_vm0, %v2354_v37  ;;  %v2365_v7 = vadd.f32 %v2660_v50, %v5257_v12 }
 0x289   : > { %v2356_v52 = vpop.f32.mrf.mxu1 }
 0x28a   : > { %2411 = vst.msk [vmem:[%s5264_s12 + $0xd8] sm:$0xff] %vm1812_vm0, %v2365_v7  ;;  %v2357_v21 = vadd.f32 %v5257_v12, %v2356_v52 }
 0x28c   : > { %2409 = vst.msk [vmem:[%s5264_s12 + $0xc8] sm:$0xff] %vm1812_vm0, %v2357_v21 }
 0x2a2   : > { %v2647_v46 = vpop.f32.mrf.mxu0 }
 0x2a3   : > { %v2314_v51 = vadd.f32 %v2647_v46, %v5257_v12 }
 0x2a4   : > { %v2305_v55 = vpop.f32.mrf.mxu0 }
 0x2a5   : > { %2398 = vst.msk [vmem:[%s5264_s12 + $0x70] sm:$0xff] %vm1812_vm0, %v2314_v51  ;;  %v2306_v17 = vadd.f32 %v5257_v12, %v2305_v55 }
 0x2a6   : > { %v2648_v60 = vpop.f32.mrf.mxu0 }
 0x2a7   : > { %2396 = vst.msk [vmem:[%s5264_s12 + $0x60] sm:$0xff] %vm1812_vm0, %v2306_v17  ;;  %v2317_v25 = vadd.f32 %v2648_v60, %v5257_v12  ;;  %v2663_v30 = vpop.f32.mrf.mxu1 }
 0x2a8   : > { %v2308_v45 = vpop.f32.mrf.mxu0  ;;  %v2378_v42 = vadd.f32 %v2663_v30, %v5257_v12 }
 0x2a9   : > { %2399 = vst.msk [vmem:[%s5264_s12 + $0x78] sm:$0xff] %vm1812_vm0, %v2317_v25  ;;  %v2309_v49 = vadd.f32 %v5257_v12, %v2308_v45  ;;  %v2369_v29 = vpop.f32.mrf.mxu1 }
 0x2aa   : > { %2414 = vst.msk [vmem:[%s5264_s12 + $0xf0] sm:$0xff] %vm1812_vm0, %v2378_v42  ;;  %v2370_v53 = vadd.f32 %v5257_v12, %v2369_v29 }
 0x2ab   : > { %2397 = vst.msk [vmem:[%s5264_s12 + $0x68] sm:$0xff] %vm1812_vm0, %v2309_v49  ;;  %v2664_v3 = vpop.f32.mrf.mxu1 }
 0x2ac   : > { %2412 = vst.msk [vmem:[%s5264_s12 + $0xe0] sm:$0xff] %vm1812_vm0, %v2370_v53  ;;  %v2381_v2 = vadd.f32 %v2664_v3, %v5257_v12 }
 0x2ad   : > { %v2372_v61 = vpop.f32.mrf.mxu1 }
 0x2ae   : > { %2415 = vst.msk [vmem:[%s5264_s12 + $0xf8] sm:$0xff] %vm1812_vm0, %v2381_v2  ;;  %v2373_v58 = vadd.f32 %v5257_v12, %v2372_v61 }
 0x2b0   : > { %2413 = vst.msk [vmem:[%s5264_s12 + $0xe8] sm:$0xff] %vm1812_vm0, %v2373_v58 }
 0x2b1 PF: > { %s16_s21 = sadd.s32 1, %s3426_s21  }
 0x2b2   : > { %p13_p4 = scmp.ge.s32.totalorder %s16_s21, 4  }
 0x2b4   :  { %15 = sbr.rel (!%p13_p4) target bundleno = 1 (0x1), region = 77 }

</bundles_post_ra>
